<compile_context>
chip_gen: v7x
topology: tpu7x:2x2x1
jax: 0.10.0
libtpu: 0.0.40
codegen_flags: <defaults>
</compile_context>

<pallas_src>
import jax
import jax.numpy as jnp
import numpy as np
from jax.experimental import pallas as pl
from jax.experimental.pallas import tpu as pltpu


def _seq_lens(dim):
    L1 = dim - 2
    P1 = L1 // 2
    L2 = P1 - 2
    P2 = L2 // 2
    L3 = P2 - 2
    P3 = L3 // 2
    return L1, P1, L2, P2, L3, P3


def _round_up(n, m):
    return ((n + m - 1) // m) * m


def _rep_spec(arr):
    zeros = (0,) * arr.ndim
    return pl.BlockSpec(arr.shape, lambda i, _z=zeros: _z)


def make_cnn_kernel(dim, tb):
    _, P1, L2, P2, L3, P3 = _seq_lens(dim)
    C2 = 2 * P2          # conv2 positions actually needed by pool2
    C3 = 2 * P3          # conv3 positions actually needed by pool3

    def kernel(xp_ref,
               w1_ref, ew1_ref,
               w2_ref, ew2_ref,
               w3_ref, ew3_ref,
               f1w_ref, f1b_ref, f2w_ref, f2b_ref,
               f3w_ref, f3b_ref, f4w_ref, f4b_ref,
               out_ref):
        f32 = jnp.float32
        bf16 = jnp.bfloat16

        # ---- layer 1: conv1(1->256,k=3) at even & odd positions via one
        #      matmul over host-built patches; relu + BN; pool1 = lane max.
        #      Rows are position-major: r = l*tb + t (t = sample in tile).
        xp = xp_ref[...]                                     # (P1*tb, 8) f32
        ew1 = ew1_ref[...]                                   # (3, 512)
        y1 = jnp.dot(xp, w1_ref[...], preferred_element_type=f32)  # (P1*tb,512)
        y1 = jnp.maximum(y1 + ew1[0:1, :], 0.0)
        y1 = y1 * ew1[1:2, :] + ew1[2:3, :]
        p1 = jnp.maximum(y1[:, 0:256], y1[:, 256:512])       # (P1*tb, 256)

        # ---- layer 2: conv2(256->128,k=3) as one fused-K bf16 matmul;
        #      relu + BN; pool2 via aligned reshape/slice max.
        patch2 = jnp.concatenate(
            [p1[k * tb:(k + C2) * tb, :].astype(bf16) for k in range(3)],
            axis=1)                                          # (C2*tb, 768)
        y2 = jnp.dot(patch2, w2_ref[...], preferred_element_type=f32)
        ew2 = ew2_ref[...]
        y2 = jnp.maximum(y2 + ew2[0:1, :], 0.0)
        y2 = y2 * ew2[1:2, :] + ew2[2:3, :]                  # (C2*tb, 128)
        y2 = y2.reshape(P2, 2 * tb, 128)
        p2 = jnp.maximum(y2[:, 0:tb, :], y2[:, tb:2 * tb, :])
        p2 = p2.reshape(P2 * tb, 128)                        # (P2*tb, 128)

        # ---- layer 3: conv3(128->64,k=3), same structure.
        patch3 = jnp.concatenate(
            [p2[k * tb:(k + C3) * tb, :].astype(bf16) for k in range(3)],
            axis=1)                                          # (C3*tb, 384)
        y3 = jnp.dot(patch3, w3_ref[...], preferred_element_type=f32)
        ew3 = ew3_ref[...]
        y3 = jnp.maximum(y3 + ew3[0:1, :], 0.0)
        y3 = y3 * ew3[1:2, :] + ew3[2:3, :]                  # (C3*tb, 64)
        y3 = y3.reshape(P3, 2 * tb, 64)
        p3 = jnp.maximum(y3[:, 0:tb, :], y3[:, tb:2 * tb, :])  # (P3, tb, 64)

        # ---- flatten (row-major l*64+c order; fc1 weight permuted on host)
        h = jnp.concatenate([p3[l] for l in range(P3)], axis=1)  # (tb, 64*P3)
        ht = jnp.transpose(h).astype(bf16)                        # (64*P3, tb)

        # ---- fc1..fc4 in feature-major form so output is a lane-dense row.
        a = jnp.maximum(jnp.dot(f1w_ref[...], ht,
                                preferred_element_type=f32) + f1b_ref[...],
                        0.0)                                      # (256, tb)
        a = jnp.maximum(jnp.dot(f2w_ref[...], a.astype(bf16),
                                preferred_element_type=f32) + f2b_ref[...],
                        0.0)                                      # (128, tb)
        a = jnp.maximum(jnp.dot(f3w_ref[...], a.astype(bf16),
                                preferred_element_type=f32) + f3b_ref[...],
                        0.0)                                      # (64, tb)
        logit = jnp.dot(f4w_ref[...], a.astype(bf16),
                        preferred_element_type=f32) + f4b_ref[...]  # (1, tb)
        out_ref[...] = 1.0 / (1.0 + jnp.exp(-logit))

    return kernel


def init_params(key, dim):
    _, _, _, _, _, P3 = _seq_lens(dim)
    in_dim = 64 * P3
    keys = iter(jax.random.split(key, 26))

    def unif(shape, fan_in):
        bound = 1.0 / np.sqrt(fan_in)
        return jax.random.uniform(next(keys), shape, jnp.float32, -bound, bound)

    p = {}
    p['conv1_w'] = unif((256, 1, 3), 1 * 3)
    p['conv1_b'] = unif((256,), 1 * 3)
    p['conv2_w'] = unif((128, 256, 3), 256 * 3)
    p['conv2_b'] = unif((128,), 256 * 3)
    p['conv3_w'] = unif((64, 128, 3), 128 * 3)
    p['conv3_b'] = unif((64,), 128 * 3)
    for i, c in zip((1, 2, 3), (256, 128, 64)):
        p[f'bn{i}_gamma'] = 1.0 + 0.1 * jax.random.normal(next(keys), (c,), jnp.float32)
        p[f'bn{i}_beta'] = 0.1 * jax.random.normal(next(keys), (c,), jnp.float32)
        p[f'bn{i}_mean'] = 0.05 * jax.random.normal(next(keys), (c,), jnp.float32)
        p[f'bn{i}_var'] = jnp.abs(jax.random.normal(next(keys), (c,), jnp.float32)) * 0.5 + 0.75
    p['fc1_w'] = unif((256, in_dim), in_dim)
    p['fc1_b'] = unif((256,), in_dim)
    p['fc2_w'] = unif((128, 256), 256)
    p['fc2_b'] = unif((128,), 256)
    p['fc3_w'] = unif((64, 128), 128)
    p['fc3_b'] = unif((64,), 128)
    p['fc4_w'] = unif((1, 64), 64)
    p['fc4_b'] = unif((1,), 64)
    return p


def _bn_scale_shift(p, i, eps=1e-5):
    s = p[f'bn{i}_gamma'] / jnp.sqrt(p[f'bn{i}_var'] + eps)
    t = p[f'bn{i}_beta'] - p[f'bn{i}_mean'] * s
    return s, t


def prep_kernel_args(p, dim):
    _, _, _, _, _, P3 = _seq_lens(dim)
    f32, bf16 = jnp.float32, jnp.bfloat16

    # conv1 weight in even|odd block form (K padded to 8).
    w1 = p['conv1_w'][:, 0, :]                         # (256, 3) [c, k]
    w1cat = jnp.zeros((8, 512), f32)
    w1cat = w1cat.at[0:3, 0:256].set(w1.T)             # even taps
    w1cat = w1cat.at[3:6, 256:512].set(w1.T)           # odd taps

    s1, t1 = _bn_scale_shift(p, 1)
    ew1 = jnp.stack([jnp.concatenate([p['conv1_b'], p['conv1_b']]),
                     jnp.concatenate([s1, s1]),
                     jnp.concatenate([t1, t1])], axis=0)          # (3, 512)

    # fused-K conv weights: row index k*Cin + c.
    w2cat = jnp.transpose(p['conv2_w'], (2, 1, 0)).reshape(3 * 256, 128).astype(bf16)
    s2, t2 = _bn_scale_shift(p, 2)
    ew2 = jnp.stack([p['conv2_b'], s2, t2], axis=0)               # (3, 128)

    w3cat = jnp.transpose(p['conv3_w'], (2, 1, 0)).reshape(3 * 128, 64).astype(bf16)
    s3, t3 = _bn_scale_shift(p, 3)
    ew3 = jnp.stack([p['conv3_b'], s3, t3], axis=0)               # (3, 64)

    # fc1: permute columns from torch channel-major (c*P3+l) to kernel l*64+c.
    f1w = p['fc1_w'].reshape(256, 64, P3).transpose(0, 2, 1).reshape(256, P3 * 64)
    f1w = f1w.astype(bf16)
    f1b = p['fc1_b'].reshape(256, 1)
    f2w = p['fc2_w'].astype(bf16)
    f2b = p['fc2_b'].reshape(128, 1)
    f3w = p['fc3_w'].astype(bf16)
    f3b = p['fc3_b'].reshape(64, 1)
    f4w = p['fc4_w'].astype(bf16)
    f4b = p['fc4_b'].reshape(1, 1)

    return (w1cat, ew1, w2cat, ew2, w3cat, ew3,
            f1w, f1b, f2w, f2b, f3w, f3b, f4w, f4b)


def _build_patches(x, dim, tb, nb):
    """Even/odd conv1 im2col patches, position-major and batch-blocked.

    Returns (nb, P1*tb, 8) with row l*tb + t:
      cols 0..2 = x[2l+k], cols 3..5 = x[2l+1+k], cols 6..7 = 0.
    """
    B = x.shape[0]
    _, P1, _, _, _, _ = _seq_lens(dim)
    bp = nb * tb
    xs = x[:, 0, :].astype(jnp.float32)                         # (B, dim)
    cols = [xs[:, k:k + 2 * P1:2] for k in range(3)]            # even taps
    cols += [xs[:, k + 1:k + 1 + 2 * P1:2] for k in range(3)]   # odd taps
    xp = jnp.stack(cols, axis=-1)                               # (B, P1, 6)
    xp = jnp.pad(xp, ((0, bp - B), (0, 0), (0, 2)))             # (Bp, P1, 8)
    xp = xp.reshape(nb, tb, P1, 8).transpose(0, 2, 1, 3)        # (nb, P1, tb, 8)
    return xp.reshape(nb, P1 * tb, 8)


def cnn_forward(x, params, dim, block_b=64):
    B = x.shape[0]
    _, P1, _, _, _, _ = _seq_lens(dim)

    tb = _round_up(min(block_b, _round_up(B, 8)), 8)   # batch tile (mult of 8)
    nb = -(-B // tb)                                   # grid steps

    xp = _build_patches(x, dim, tb, nb)
    wargs = prep_kernel_args(params, dim)
    kernel = make_cnn_kernel(dim, tb)

    in_specs = [pl.BlockSpec((None, P1 * tb, 8), lambda i: (i, 0, 0))]
    in_specs += [_rep_spec(a) for a in wargs]

    out = pl.pallas_call(
        kernel,
        out_shape=jax.ShapeDtypeStruct((nb, 1, tb), jnp.float32),
        grid=(nb,),
        in_specs=in_specs,
        out_specs=pl.BlockSpec((None, 1, tb), lambda i: (i, 0, 0)),
        compiler_params=pltpu.CompilerParams(
            dimension_semantics=("parallel",),
            vmem_limit_bytes=40 * 1024 * 1024),
    )(xp, *wargs)
    return out.reshape(nb * tb)[:B].reshape(B, 1)


def ref_forward(x, p, eps=1e-5):
    """Pure-JAX f32 reference mirroring the PyTorch forward (eval mode)."""
    def conv1d(h, w, b):
        y = jax.lax.conv_general_dilated(
            h, w, window_strides=(1,), padding='VALID',
            dimension_numbers=('NCH', 'OIH', 'NCH'))
        return y + b[None, :, None]

    def bn(h, i):
        s, t = _bn_scale_shift(p, i, eps)
        return h * s[None, :, None] + t[None, :, None]

    def pool(h):
        B, C, L = h.shape
        P = L // 2
        return h[:, :, :2 * P].reshape(B, C, P, 2).max(-1)

    h = x.astype(jnp.float32)
    for i, (w, b) in enumerate([(p['conv1_w'], p['conv1_b']),
                                (p['conv2_w'], p['conv2_b']),
                                (p['conv3_w'], p['conv3_b'])], start=1):
        h = pool(bn(jnp.maximum(conv1d(h, w, b), 0.0), i))
    h = h.reshape(h.shape[0], -1)                     # channel-major flatten
    h = jnp.maximum(h @ p['fc1_w'].T + p['fc1_b'], 0.0)
    h = jnp.maximum(h @ p['fc2_w'].T + p['fc2_b'], 0.0)
    h = jnp.maximum(h @ p['fc3_w'].T + p['fc3_b'], 0.0)
    h = h @ p['fc4_w'].T + p['fc4_b']
    return jax.nn.sigmoid(h)


if __name__ == "__main__":
    dim = 64          # input sequence length (fc1 in_dim = 64 * 6 = 384)
    B = 20
    key = jax.random.PRNGKey(0)
    pkey, xkey = jax.random.split(key)
    params = init_params(pkey, dim)
    x = jax.random.normal(xkey, (B, 1, dim), jnp.float32)    # NCL, like PyTorch

    # Small batch tile so the test exercises a multi-step grid + batch padding.
    out = cnn_forward(x, params, dim, block_b=8)
    out = jax.block_until_ready(out)

    ref = jax.block_until_ready(ref_forward(x, params))
    np.testing.assert_allclose(np.asarray(out), np.asarray(ref),
                               rtol=1e-2, atol=1e-2)
    print("KERNEL_OK")
</pallas_src>

<mosaic_0001>
module attributes {stable_mosaic.version = 11 : i64} {
  func.func @kernel(%arg0: i32, %arg1: memref<1x248x8xf32, #tpu.memory_space<vmem>>, %arg2: memref<8x512xf32, #tpu.memory_space<vmem>>, %arg3: memref<3x512xf32, #tpu.memory_space<vmem>>, %arg4: memref<768x128xbf16, #tpu.memory_space<vmem>>, %arg5: memref<3x128xf32, #tpu.memory_space<vmem>>, %arg6: memref<384x64xbf16, #tpu.memory_space<vmem>>, %arg7: memref<3x64xf32, #tpu.memory_space<vmem>>, %arg8: memref<256x384xbf16, #tpu.memory_space<vmem>>, %arg9: memref<256x1xf32, #tpu.memory_space<vmem>>, %arg10: memref<128x256xbf16, #tpu.memory_space<vmem>>, %arg11: memref<128x1xf32, #tpu.memory_space<vmem>>, %arg12: memref<64x128xbf16, #tpu.memory_space<vmem>>, %arg13: memref<64x1xf32, #tpu.memory_space<vmem>>, %arg14: memref<1x64xbf16, #tpu.memory_space<vmem>>, %arg15: memref<1x1xf32, #tpu.memory_space<vmem>>, %arg16: memref<1x1x8xf32, #tpu.memory_space<vmem>>) attributes {dimension_semantics = [#tpu.dimension_semantics<parallel>], iteration_bounds = array<i64: 3>, scalar_prefetch = 0 : i64, scratch_operands = 0 : i64, tpu.core_type = #tpu.core_type<tc>, window_params = [{transform_indices = @transform_0, window_bounds = array<i64: 1, 248, 8>}, {pipeline_mode = #tpu.pipeline_mode<synchronous>, transform_indices = @transform_1, window_bounds = array<i64: 8, 512>}, {pipeline_mode = #tpu.pipeline_mode<synchronous>, transform_indices = @transform_2, window_bounds = array<i64: 3, 512>}, {pipeline_mode = #tpu.pipeline_mode<synchronous>, transform_indices = @transform_3, window_bounds = array<i64: 768, 128>}, {pipeline_mode = #tpu.pipeline_mode<synchronous>, transform_indices = @transform_4, window_bounds = array<i64: 3, 128>}, {pipeline_mode = #tpu.pipeline_mode<synchronous>, transform_indices = @transform_5, window_bounds = array<i64: 384, 64>}, {pipeline_mode = #tpu.pipeline_mode<synchronous>, transform_indices = @transform_6, window_bounds = array<i64: 3, 64>}, {pipeline_mode = #tpu.pipeline_mode<synchronous>, transform_indices = @transform_7, window_bounds = array<i64: 256, 384>}, {pipeline_mode = #tpu.pipeline_mode<synchronous>, transform_indices = @transform_8, window_bounds = array<i64: 256, 1>}, {pipeline_mode = #tpu.pipeline_mode<synchronous>, transform_indices = @transform_9, window_bounds = array<i64: 128, 256>}, {pipeline_mode = #tpu.pipeline_mode<synchronous>, transform_indices = @transform_10, window_bounds = array<i64: 128, 1>}, {pipeline_mode = #tpu.pipeline_mode<synchronous>, transform_indices = @transform_11, window_bounds = array<i64: 64, 128>}, {pipeline_mode = #tpu.pipeline_mode<synchronous>, transform_indices = @transform_12, window_bounds = array<i64: 64, 1>}, {pipeline_mode = #tpu.pipeline_mode<synchronous>, transform_indices = @transform_13, window_bounds = array<i64: 1, 64>}, {pipeline_mode = #tpu.pipeline_mode<synchronous>, transform_indices = @transform_14, window_bounds = array<i64: 1, 1>}, {transform_indices = @transform_15, window_bounds = array<i64: 1, 1, 8>}]} {
    %c0 = arith.constant 0 : index
    %c0_0 = arith.constant 0 : index
    %c0_1 = arith.constant 0 : index
    %0 = vector.load %arg1[%c0, %c0_0, %c0_1] : memref<1x248x8xf32, #tpu.memory_space<vmem>>, vector<1x248x8xf32>
    %1 = vector.shape_cast %0 : vector<1x248x8xf32> to vector<248x8xf32>
    %c0_2 = arith.constant 0 : index
    %c0_3 = arith.constant 0 : index
    %2 = vector.load %arg3[%c0_2, %c0_3] : memref<3x512xf32, #tpu.memory_space<vmem>>, vector<3x512xf32>
    %c0_4 = arith.constant 0 : index
    %c0_5 = arith.constant 0 : index
    %3 = vector.load %arg2[%c0_4, %c0_5] : memref<8x512xf32, #tpu.memory_space<vmem>>, vector<8x512xf32>
    %cst = arith.constant dense<0.000000e+00> : vector<248x512xf32>
    %4 = tpu.matmul %1, %3, %cst {dimension_numbers = #tpu.dot_dimension_numbers<[1], [0], [0], [1], [0, 0, 1, 1], [], []>} : vector<248x8xf32>, vector<8x512xf32>, vector<248x512xf32> -> vector<248x512xf32>
    %5 = vector.extract_strided_slice %2 {offsets = [0, 0], sizes = [1, 512], strides = [1, 1]} : vector<3x512xf32> to vector<1x512xf32>
    %6 = vector.broadcast %5 : vector<1x512xf32> to vector<248x512xf32>
    %7 = arith.addf %4, %6 : vector<248x512xf32>
    %cst_6 = arith.constant 0.000000e+00 : f32
    %8 = vector.broadcast %cst_6 : f32 to vector<248x512xf32>
    %9 = arith.maximumf %7, %8 : vector<248x512xf32>
    %10 = vector.extract_strided_slice %2 {offsets = [1, 0], sizes = [1, 512], strides = [1, 1]} : vector<3x512xf32> to vector<1x512xf32>
    %11 = vector.broadcast %10 : vector<1x512xf32> to vector<248x512xf32>
    %12 = arith.mulf %9, %11 : vector<248x512xf32>
    %13 = vector.extract_strided_slice %2 {offsets = [2, 0], sizes = [1, 512], strides = [1, 1]} : vector<3x512xf32> to vector<1x512xf32>
    %14 = vector.broadcast %13 : vector<1x512xf32> to vector<248x512xf32>
    %15 = arith.addf %12, %14 : vector<248x512xf32>
    %16 = vector.extract_strided_slice %15 {offsets = [0, 0], sizes = [248, 256], strides = [1, 1]} : vector<248x512xf32> to vector<248x256xf32>
    %17 = vector.extract_strided_slice %15 {offsets = [0, 256], sizes = [248, 256], strides = [1, 1]} : vector<248x512xf32> to vector<248x256xf32>
    %18 = arith.maximumf %16, %17 : vector<248x256xf32>
    %19 = vector.extract_strided_slice %18 {offsets = [0, 0], sizes = [224, 256], strides = [1, 1]} : vector<248x256xf32> to vector<224x256xf32>
    %20 = arith.truncf %19 : vector<224x256xf32> to vector<224x256xbf16>
    %21 = vector.extract_strided_slice %18 {offsets = [8, 0], sizes = [224, 256], strides = [1, 1]} : vector<248x256xf32> to vector<224x256xf32>
    %22 = arith.truncf %21 : vector<224x256xf32> to vector<224x256xbf16>
    %23 = vector.extract_strided_slice %18 {offsets = [16, 0], sizes = [224, 256], strides = [1, 1]} : vector<248x256xf32> to vector<224x256xf32>
    %24 = arith.truncf %23 : vector<224x256xf32> to vector<224x256xbf16>
    %25 = tpu.concatenate %20, %22, %24 in 1 : vector<224x256xbf16>, vector<224x256xbf16>, vector<224x256xbf16> -> vector<224x768xbf16>
    %c0_7 = arith.constant 0 : index
    %c0_8 = arith.constant 0 : index
    %26 = vector.load %arg4[%c0_7, %c0_8] : memref<768x128xbf16, #tpu.memory_space<vmem>>, vector<768x128xbf16>
    %cst_9 = arith.constant dense<0.000000e+00> : vector<224x128xf32>
    %27 = tpu.matmul %25, %26, %cst_9 {dimension_numbers = #tpu.dot_dimension_numbers<[1], [0], [0], [1], [0, 0, 1, 1], [], []>} : vector<224x768xbf16>, vector<768x128xbf16>, vector<224x128xf32> -> vector<224x128xf32>
    %c0_10 = arith.constant 0 : index
    %c0_11 = arith.constant 0 : index
    %28 = vector.load %arg5[%c0_10, %c0_11] : memref<3x128xf32, #tpu.memory_space<vmem>>, vector<3x128xf32>
    %29 = vector.extract_strided_slice %28 {offsets = [0, 0], sizes = [1, 128], strides = [1, 1]} : vector<3x128xf32> to vector<1x128xf32>
    %30 = vector.broadcast %29 : vector<1x128xf32> to vector<224x128xf32>
    %31 = arith.addf %27, %30 : vector<224x128xf32>
    %cst_12 = arith.constant 0.000000e+00 : f32
    %32 = vector.broadcast %cst_12 : f32 to vector<224x128xf32>
    %33 = arith.maximumf %31, %32 : vector<224x128xf32>
    %34 = vector.extract_strided_slice %28 {offsets = [1, 0], sizes = [1, 128], strides = [1, 1]} : vector<3x128xf32> to vector<1x128xf32>
    %35 = vector.broadcast %34 : vector<1x128xf32> to vector<224x128xf32>
    %36 = arith.mulf %33, %35 : vector<224x128xf32>
    %37 = vector.extract_strided_slice %28 {offsets = [2, 0], sizes = [1, 128], strides = [1, 1]} : vector<3x128xf32> to vector<1x128xf32>
    %38 = vector.broadcast %37 : vector<1x128xf32> to vector<224x128xf32>
    %39 = arith.addf %36, %38 : vector<224x128xf32>
    %40 = vector.shape_cast %39 : vector<224x128xf32> to vector<14x16x128xf32>
    %41 = vector.extract_strided_slice %40 {offsets = [0, 0, 0], sizes = [14, 8, 128], strides = [1, 1, 1]} : vector<14x16x128xf32> to vector<14x8x128xf32>
    %42 = vector.extract_strided_slice %40 {offsets = [0, 8, 0], sizes = [14, 8, 128], strides = [1, 1, 1]} : vector<14x16x128xf32> to vector<14x8x128xf32>
    %43 = arith.maximumf %41, %42 : vector<14x8x128xf32>
    %44 = vector.shape_cast %43 : vector<14x8x128xf32> to vector<112x128xf32>
    %45 = vector.extract_strided_slice %44 {offsets = [0, 0], sizes = [96, 128], strides = [1, 1]} : vector<112x128xf32> to vector<96x128xf32>
    %46 = arith.truncf %45 : vector<96x128xf32> to vector<96x128xbf16>
    %47 = vector.extract_strided_slice %44 {offsets = [8, 0], sizes = [96, 128], strides = [1, 1]} : vector<112x128xf32> to vector<96x128xf32>
    %48 = arith.truncf %47 : vector<96x128xf32> to vector<96x128xbf16>
    %49 = vector.extract_strided_slice %44 {offsets = [16, 0], sizes = [96, 128], strides = [1, 1]} : vector<112x128xf32> to vector<96x128xf32>
    %50 = arith.truncf %49 : vector<96x128xf32> to vector<96x128xbf16>
    %51 = tpu.concatenate %46, %48, %50 in 1 : vector<96x128xbf16>, vector<96x128xbf16>, vector<96x128xbf16> -> vector<96x384xbf16>
    %c0_13 = arith.constant 0 : index
    %c0_14 = arith.constant 0 : index
    %52 = vector.load %arg6[%c0_13, %c0_14] : memref<384x64xbf16, #tpu.memory_space<vmem>>, vector<384x64xbf16>
    %cst_15 = arith.constant dense<0.000000e+00> : vector<96x64xf32>
    %53 = tpu.matmul %51, %52, %cst_15 {dimension_numbers = #tpu.dot_dimension_numbers<[1], [0], [0], [1], [0, 0, 1, 1], [], []>} : vector<96x384xbf16>, vector<384x64xbf16>, vector<96x64xf32> -> vector<96x64xf32>
    %c0_16 = arith.constant 0 : index
    %c0_17 = arith.constant 0 : index
    %54 = vector.load %arg7[%c0_16, %c0_17] : memref<3x64xf32, #tpu.memory_space<vmem>>, vector<3x64xf32>
    %55 = vector.extract_strided_slice %54 {offsets = [0, 0], sizes = [1, 64], strides = [1, 1]} : vector<3x64xf32> to vector<1x64xf32>
    %56 = vector.broadcast %55 : vector<1x64xf32> to vector<96x64xf32>
    %57 = arith.addf %53, %56 : vector<96x64xf32>
    %cst_18 = arith.constant 0.000000e+00 : f32
    %58 = vector.broadcast %cst_18 : f32 to vector<96x64xf32>
    %59 = arith.maximumf %57, %58 : vector<96x64xf32>
    %60 = vector.extract_strided_slice %54 {offsets = [1, 0], sizes = [1, 64], strides = [1, 1]} : vector<3x64xf32> to vector<1x64xf32>
    %61 = vector.broadcast %60 : vector<1x64xf32> to vector<96x64xf32>
    %62 = arith.mulf %59, %61 : vector<96x64xf32>
    %63 = vector.extract_strided_slice %54 {offsets = [2, 0], sizes = [1, 64], strides = [1, 1]} : vector<3x64xf32> to vector<1x64xf32>
    %64 = vector.broadcast %63 : vector<1x64xf32> to vector<96x64xf32>
    %65 = arith.addf %62, %64 : vector<96x64xf32>
    %66 = vector.shape_cast %65 : vector<96x64xf32> to vector<6x16x64xf32>
    %67 = vector.extract_strided_slice %66 {offsets = [0, 0, 0], sizes = [6, 8, 64], strides = [1, 1, 1]} : vector<6x16x64xf32> to vector<6x8x64xf32>
    %68 = vector.extract_strided_slice %66 {offsets = [0, 8, 0], sizes = [6, 8, 64], strides = [1, 1, 1]} : vector<6x16x64xf32> to vector<6x8x64xf32>
    %69 = arith.maximumf %67, %68 : vector<6x8x64xf32>
    %70 = vector.extract_strided_slice %69 {offsets = [0, 0, 0], sizes = [1, 8, 64], strides = [1, 1, 1]} : vector<6x8x64xf32> to vector<1x8x64xf32>
    %71 = vector.shape_cast %70 : vector<1x8x64xf32> to vector<8x64xf32>
    %72 = vector.extract_strided_slice %69 {offsets = [1, 0, 0], sizes = [1, 8, 64], strides = [1, 1, 1]} : vector<6x8x64xf32> to vector<1x8x64xf32>
    %73 = vector.shape_cast %72 : vector<1x8x64xf32> to vector<8x64xf32>
    %74 = vector.extract_strided_slice %69 {offsets = [2, 0, 0], sizes = [1, 8, 64], strides = [1, 1, 1]} : vector<6x8x64xf32> to vector<1x8x64xf32>
    %75 = vector.shape_cast %74 : vector<1x8x64xf32> to vector<8x64xf32>
    %76 = vector.extract_strided_slice %69 {offsets = [3, 0, 0], sizes = [1, 8, 64], strides = [1, 1, 1]} : vector<6x8x64xf32> to vector<1x8x64xf32>
    %77 = vector.shape_cast %76 : vector<1x8x64xf32> to vector<8x64xf32>
    %78 = vector.extract_strided_slice %69 {offsets = [4, 0, 0], sizes = [1, 8, 64], strides = [1, 1, 1]} : vector<6x8x64xf32> to vector<1x8x64xf32>
    %79 = vector.shape_cast %78 : vector<1x8x64xf32> to vector<8x64xf32>
    %80 = vector.extract_strided_slice %69 {offsets = [5, 0, 0], sizes = [1, 8, 64], strides = [1, 1, 1]} : vector<6x8x64xf32> to vector<1x8x64xf32>
    %81 = vector.shape_cast %80 : vector<1x8x64xf32> to vector<8x64xf32>
    %82 = tpu.concatenate %71, %73, %75, %77, %79, %81 in 1 : vector<8x64xf32>, vector<8x64xf32>, vector<8x64xf32>, vector<8x64xf32>, vector<8x64xf32>, vector<8x64xf32> -> vector<8x384xf32>
    %83 = tpu.transpose %82, [1, 0] : vector<8x384xf32> -> vector<384x8xf32>
    %84 = arith.truncf %83 : vector<384x8xf32> to vector<384x8xbf16>
    %c0_19 = arith.constant 0 : index
    %c0_20 = arith.constant 0 : index
    %85 = vector.load %arg8[%c0_19, %c0_20] : memref<256x384xbf16, #tpu.memory_space<vmem>>, vector<256x384xbf16>
    %cst_21 = arith.constant dense<0.000000e+00> : vector<256x8xf32>
    %86 = tpu.matmul %85, %84, %cst_21 {dimension_numbers = #tpu.dot_dimension_numbers<[1], [0], [0], [1], [0, 0, 1, 1], [], []>} : vector<256x384xbf16>, vector<384x8xbf16>, vector<256x8xf32> -> vector<256x8xf32>
    %c0_22 = arith.constant 0 : index
    %c0_23 = arith.constant 0 : index
    %87 = vector.load %arg9[%c0_22, %c0_23] : memref<256x1xf32, #tpu.memory_space<vmem>>, vector<256x1xf32>
    %88 = vector.broadcast %87 : vector<256x1xf32> to vector<256x8xf32>
    %89 = arith.addf %86, %88 : vector<256x8xf32>
    %cst_24 = arith.constant 0.000000e+00 : f32
    %90 = vector.broadcast %cst_24 : f32 to vector<256x8xf32>
    %91 = arith.maximumf %89, %90 : vector<256x8xf32>
    %c0_25 = arith.constant 0 : index
    %c0_26 = arith.constant 0 : index
    %92 = vector.load %arg10[%c0_25, %c0_26] : memref<128x256xbf16, #tpu.memory_space<vmem>>, vector<128x256xbf16>
    %93 = arith.truncf %91 : vector<256x8xf32> to vector<256x8xbf16>
    %cst_27 = arith.constant dense<0.000000e+00> : vector<128x8xf32>
    %94 = tpu.matmul %92, %93, %cst_27 {dimension_numbers = #tpu.dot_dimension_numbers<[1], [0], [0], [1], [0, 0, 1, 1], [], []>} : vector<128x256xbf16>, vector<256x8xbf16>, vector<128x8xf32> -> vector<128x8xf32>
    %c0_28 = arith.constant 0 : index
    %c0_29 = arith.constant 0 : index
    %95 = vector.load %arg11[%c0_28, %c0_29] : memref<128x1xf32, #tpu.memory_space<vmem>>, vector<128x1xf32>
    %96 = vector.broadcast %95 : vector<128x1xf32> to vector<128x8xf32>
    %97 = arith.addf %94, %96 : vector<128x8xf32>
    %cst_30 = arith.constant 0.000000e+00 : f32
    %98 = vector.broadcast %cst_30 : f32 to vector<128x8xf32>
    %99 = arith.maximumf %97, %98 : vector<128x8xf32>
    %c0_31 = arith.constant 0 : index
    %c0_32 = arith.constant 0 : index
    %100 = vector.load %arg12[%c0_31, %c0_32] : memref<64x128xbf16, #tpu.memory_space<vmem>>, vector<64x128xbf16>
    %101 = arith.truncf %99 : vector<128x8xf32> to vector<128x8xbf16>
    %cst_33 = arith.constant dense<0.000000e+00> : vector<64x8xf32>
    %102 = tpu.matmul %100, %101, %cst_33 {dimension_numbers = #tpu.dot_dimension_numbers<[1], [0], [0], [1], [0, 0, 1, 1], [], []>} : vector<64x128xbf16>, vector<128x8xbf16>, vector<64x8xf32> -> vector<64x8xf32>
    %c0_34 = arith.constant 0 : index
    %c0_35 = arith.constant 0 : index
    %103 = vector.load %arg13[%c0_34, %c0_35] : memref<64x1xf32, #tpu.memory_space<vmem>>, vector<64x1xf32>
    %104 = vector.broadcast %103 : vector<64x1xf32> to vector<64x8xf32>
    %105 = arith.addf %102, %104 : vector<64x8xf32>
    %cst_36 = arith.constant 0.000000e+00 : f32
    %106 = vector.broadcast %cst_36 : f32 to vector<64x8xf32>
    %107 = arith.maximumf %105, %106 : vector<64x8xf32>
    %c0_37 = arith.constant 0 : index
    %c0_38 = arith.constant 0 : index
    %108 = vector.load %arg14[%c0_37, %c0_38] : memref<1x64xbf16, #tpu.memory_space<vmem>>, vector<1x64xbf16>
    %109 = arith.truncf %107 : vector<64x8xf32> to vector<64x8xbf16>
    %cst_39 = arith.constant dense<0.000000e+00> : vector<1x8xf32>
    %110 = tpu.matmul %108, %109, %cst_39 {dimension_numbers = #tpu.dot_dimension_numbers<[1], [0], [0], [1], [0, 0, 1, 1], [], []>} : vector<1x64xbf16>, vector<64x8xbf16>, vector<1x8xf32> -> vector<1x8xf32>
    %c0_40 = arith.constant 0 : index
    %c0_41 = arith.constant 0 : index
    %111 = vector.load %arg15[%c0_40, %c0_41] : memref<1x1xf32, #tpu.memory_space<vmem>>, vector<1x1xf32>
    %112 = vector.broadcast %111 : vector<1x1xf32> to vector<1x8xf32>
    %113 = arith.addf %110, %112 : vector<1x8xf32>
    %cst_42 = arith.constant 0.000000e+00 : f32
    %114 = vector.broadcast %cst_42 : f32 to vector<1x8xf32>
    %115 = arith.subf %114, %113 : vector<1x8xf32>
    %116 = math.exp %115 : vector<1x8xf32>
    %cst_43 = arith.constant 1.000000e+00 : f32
    %117 = vector.broadcast %cst_43 : f32 to vector<1x8xf32>
    %118 = arith.addf %117, %116 : vector<1x8xf32>
    %cst_44 = arith.constant 1.000000e+00 : f32
    %119 = vector.broadcast %cst_44 : f32 to vector<1x8xf32>
    %120 = arith.divf %119, %118 : vector<1x8xf32>
    %c0_45 = arith.constant 0 : index
    %c0_46 = arith.constant 0 : index
    %c0_47 = arith.constant 0 : index
    %121 = vector.load %arg16[%c0_45, %c0_46, %c0_47] : memref<1x1x8xf32, #tpu.memory_space<vmem>>, vector<1x1x8xf32>
    %122 = vector.shape_cast %121 : vector<1x1x8xf32> to vector<1x8xf32>
    %123 = vector.shape_cast %120 : vector<1x8xf32> to vector<1x1x8xf32>
    tpu.vector_store %arg16[%c0_45, %c0_46, %c0_47], %123 {strides = array<i32>} : memref<1x1x8xf32, #tpu.memory_space<vmem>>, vector<1x1x8xf32>,
    return
  }
  func.func @transform_0(%arg0: i32) -> (i32, i32, i32) {
    %c0_i32 = arith.constant 0 : i32
    %c0_i32_0 = arith.constant 0 : i32
    %c0_i32_1 = arith.constant 0 : i32
    return %arg0, %c0_i32, %c0_i32_0 : i32, i32, i32
  }
  func.func @transform_1(%arg0: i32) -> (i32, i32) {
    %c0_i32 = arith.constant 0 : i32
    %c0_i32_0 = arith.constant 0 : i32
    %c0_i32_1 = arith.constant 0 : i32
    return %c0_i32, %c0_i32_0 : i32, i32
  }
  func.func @transform_2(%arg0: i32) -> (i32, i32) {
    %c0_i32 = arith.constant 0 : i32
    %c0_i32_0 = arith.constant 0 : i32
    %c0_i32_1 = arith.constant 0 : i32
    return %c0_i32, %c0_i32_0 : i32, i32
  }
  func.func @transform_3(%arg0: i32) -> (i32, i32) {
    %c0_i32 = arith.constant 0 : i32
    %c0_i32_0 = arith.constant 0 : i32
    %c0_i32_1 = arith.constant 0 : i32
    return %c0_i32, %c0_i32_0 : i32, i32
  }
  func.func @transform_4(%arg0: i32) -> (i32, i32) {
    %c0_i32 = arith.constant 0 : i32
    %c0_i32_0 = arith.constant 0 : i32
    %c0_i32_1 = arith.constant 0 : i32
    return %c0_i32, %c0_i32_0 : i32, i32
  }
  func.func @transform_5(%arg0: i32) -> (i32, i32) {
    %c0_i32 = arith.constant 0 : i32
    %c0_i32_0 = arith.constant 0 : i32
    %c0_i32_1 = arith.constant 0 : i32
    return %c0_i32, %c0_i32_0 : i32, i32
  }
  func.func @transform_6(%arg0: i32) -> (i32, i32) {
    %c0_i32 = arith.constant 0 : i32
    %c0_i32_0 = arith.constant 0 : i32
    %c0_i32_1 = arith.constant 0 : i32
    return %c0_i32, %c0_i32_0 : i32, i32
  }
  func.func @transform_7(%arg0: i32) -> (i32, i32) {
    %c0_i32 = arith.constant 0 : i32
    %c0_i32_0 = arith.constant 0 : i32
    %c0_i32_1 = arith.constant 0 : i32
    return %c0_i32, %c0_i32_0 : i32, i32
  }
  func.func @transform_8(%arg0: i32) -> (i32, i32) {
    %c0_i32 = arith.constant 0 : i32
    %c0_i32_0 = arith.constant 0 : i32
    %c0_i32_1 = arith.constant 0 : i32
    return %c0_i32, %c0_i32_0 : i32, i32
  }
  func.func @transform_9(%arg0: i32) -> (i32, i32) {
    %c0_i32 = arith.constant 0 : i32
    %c0_i32_0 = arith.constant 0 : i32
    %c0_i32_1 = arith.constant 0 : i32
    return %c0_i32, %c0_i32_0 : i32, i32
  }
  func.func @transform_10(%arg0: i32) -> (i32, i32) {
    %c0_i32 = arith.constant 0 : i32
    %c0_i32_0 = arith.constant 0 : i32
    %c0_i32_1 = arith.constant 0 : i32
    return %c0_i32, %c0_i32_0 : i32, i32
  }
  func.func @transform_11(%arg0: i32) -> (i32, i32) {
    %c0_i32 = arith.constant 0 : i32
    %c0_i32_0 = arith.constant 0 : i32
    %c0_i32_1 = arith.constant 0 : i32
    return %c0_i32, %c0_i32_0 : i32, i32
  }
  func.func @transform_12(%arg0: i32) -> (i32, i32) {
    %c0_i32 = arith.constant 0 : i32
    %c0_i32_0 = arith.constant 0 : i32
    %c0_i32_1 = arith.constant 0 : i32
    return %c0_i32, %c0_i32_0 : i32, i32
  }
  func.func @transform_13(%arg0: i32) -> (i32, i32) {
    %c0_i32 = arith.constant 0 : i32
    %c0_i32_0 = arith.constant 0 : i32
    %c0_i32_1 = arith.constant 0 : i32
    return %c0_i32, %c0_i32_0 : i32, i32
  }
  func.func @transform_14(%arg0: i32) -> (i32, i32) {
    %c0_i32 = arith.constant 0 : i32
    %c0_i32_0 = arith.constant 0 : i32
    %c0_i32_1 = arith.constant 0 : i32
    return %c0_i32, %c0_i32_0 : i32, i32
  }
  func.func @transform_15(%arg0: i32) -> (i32, i32, i32) {
    %c0_i32 = arith.constant 0 : i32
    %c0_i32_0 = arith.constant 0 : i32
    %c0_i32_1 = arith.constant 0 : i32
    return %arg0, %c0_i32, %c0_i32_0 : i32, i32, i32
  }
}

</mosaic_0001>

<bundles_post_ra>
// kernel: tpu_custom_call.1
= control target key start
LH: loop header
LB: loop body
LE: loop exit
PB: predicated region body
PF: predicated region fallthrough
CT: control target
= control target key end

     0   :  { %s8249_s0 = inlined_call_operand.vmem [shape: f32[3,248,8], index: 0, kind: input, shape index: {}]   ;;  %s8250_s1 = inlined_call_operand.vmem [shape: f32[8,512], index: 1, kind: input, shape index: {}]   ;;  %s8251_s2 = inlined_call_operand.vmem [shape: f32[3,512], index: 2, kind: input, shape index: {}]   ;;  %s8252_s3 = inlined_call_operand.vmem [shape: bf16[768,128], index: 3, kind: input, shape index: {}]   ;;  %s8253_s4 = inlined_call_operand.vmem [shape: f32[3,128], index: 4, kind: input, shape index: {}]   ;;  %s8254_s5 = inlined_call_operand.vmem [shape: bf16[384,64], index: 5, kind: input, shape index: {}]   ;;  %s8255_s6 = inlined_call_operand.vmem [shape: f32[3,64], index: 6, kind: input, shape index: {}]   ;;  %s8256_s7 = inlined_call_operand.vmem [shape: bf16[256,384], index: 7, kind: input, shape index: {}]   ;;  %s8257_s8 = inlined_call_operand.vmem [shape: f32[256,1], index: 8, kind: input, shape index: {}]   ;;  %s8258_s9 = inlined_call_operand.vmem [shape: bf16[128,256], index: 9, kind: input, shape index: {}]   ;;  %s8259_s10 = inlined_call_operand.vmem [shape: f32[128,1], index: 10, kind: input, shape index: {}]   ;;  %s8260_s11 = inlined_call_operand.vmem [shape: bf16[64,128], index: 11, kind: input, shape index: {}]   ;;  %s8261_s12 = inlined_call_operand.vmem [shape: f32[64,1], index: 12, kind: input, shape index: {}]   ;;  %s8262_s13 = inlined_call_operand.vmem [shape: bf16[1,64], index: 13, kind: input, shape index: {}]   ;;  %s8263_s14 = inlined_call_operand.<no memory space> [shape: f32[1,1], index: 14, kind: input, shape index: {}]   ;;  %s8264_s15 = inlined_call_operand.hbm [shape: f32[3,1,8], index: 15, kind: output, shape index: {}]  }
   0x1   :  { %8293 = sst [smem:[#allocation29_spill]] %s8249_s0  ;;  %v20_v0 = vstv %s8263_s14 }
   0x2   :  { %21 = vst [vmem:[#allocation2] sm:$0x1] %v20_v0 }
   0x3   :  { %22 = vsyncpa [#allocation4], 0 }
   0x4   :  { %24 = vsyncpa [#allocation4 + $0x1], 0  ;;  %s6043_s20 = smov 0   ;;  %s6045_s21 = smov 0  }
   0x5   :  { %s6047_s22 = smov 0   ;;  %s6049_s23 = smov 0  }
   0x6 LB: > { %8294 = sst [smem:[#allocation6_spill]] %s5949_s22  ;;  %s6064_s14 = sadd.s32 4294967295, %s5953_s23   ;;  %s5953_s23 = sphi %s6049_s23, %s8341_s23   ;;  %s5949_s22 = sphi %s6047_s22, %s8343_s22   ;;  %s5945_s21 = sphi %s6045_s21, %s8345_s21   ;;  %s5941_s20 = sphi %s6043_s20, %s8344_s20  }
   0x7   : > { %s4682_s24 = sadd.s32 4294967294, %s5953_s23   ;;  %s6068_s25 = sadd.s32 1, %s5953_s23  }
   0x8   : > { %8295 = sst [smem:[#allocation7_spill]] %s6068_s25  ;;  %s357_s26 = sadd.s32 1, %s5949_s22 }
   0x9   : > { %s354_s27 = ssub.s32 %s5953_s23, %s6068_s25  ;;  %p367_p0 = scmp.ne.s32.totalorder %s5949_s22, %s5945_s21 }
   0xa   : > { %p355_p1 = scmp.eq.s32.totalorder %s354_s27, 0  ;;  %p368_p2 = scmp.eq.s32.totalorder %s6064_s14, 2 }
   0xb   : > { %p373_p3 = scmp.ne.s32.totalorder %s5945_s21, %s5941_s20  ;;  %p374_p4 = scmp.eq.s32.totalorder %s4682_s24, 2 }
   0xc   : > { %s6079_s28 = scalar_select %p355_p1, %s5949_s22, %s357_s26  }
   0xd   : > { %p6081_p5 = por %p368_p2, %p367_p0  ;;  %p6085_p6 = por %p374_p4, %p373_p3 }
   0xe   : > { %8296 = sst [smem:[#allocation8_spill]] %s6079_s28  ;;  %p4685_p7 = scmp.ge.s32.totalorder %s5953_s23, 1 }
   0xf   : > { %s8298_s30 = scalar_select %p6085_p6, 1, 0 }
  0x10   : > { %p442_p8 = scmp.lt.s32.totalorder %s5953_s23, 4 }
  0x11   : > { %8299 = sst [smem:[#allocation9_spill]] %s8298_s30 }
  0x12   : > { %p443_p9 = pnand %p4685_p7, %p442_p8 }
  0x14   : > { %446 = sbr.rel (%p443_p9) target bundleno = 2422 (0x976), region = 80 }
  0x1b   : > { %v529_v1 = vld [vmem:[%s8250_s1 + $0x8] sm:$0xff]  ;;  %v528_v2 = vld [vmem:[%s8250_s1] sm:$0xff]  ;;  %p489_p10 = scmp.lt.s32.totalorder %s6064_s14, 2  ;;  %v8269_v3 = vmov 0.0   ;;  %v531_v4 = vld [vmem:[%s8250_s1 + $0x18] sm:$0xff]  ;;  %vm570_vm0 = vcmask 64512  }
  0x1c   : > { %5588 = vmatprep.subr.mxu1 %v529_v1  ;;  %908 = vmatprep.mubr.f32.mxu1 %v8269_v3  ;;  %v5723_v5 = vld [vmem:[%s8252_s3 + $0x40] sm:$0xff]   ;;  %v530_v6 = vld [vmem:[%s8250_s1 + $0x10] sm:$0xff]  ;;  %s8300_s0 = sld [smem:[#allocation29_spill]]  ;;  %v5725_v8 = vld [vmem:[%s8252_s3 + $0x48] sm:$0xff]   ;;  %vm3076_vm1 = vcmask 523264   ;;  %vm5958_vm2 = vmmov 0  }
  0x1d   : > { %5589 = vmatpush1.msra.mxu1 %v528_v2  ;;  %s490_s27 = scalar_select %p489_p10, %s6064_s14, 2  ;;  %664 = vmatprep.subr.mxu0 %v529_v1  ;;  %v5724_v7 = vld [vmem:[%s8252_s3] sm:$0xff]   ;;  %v5726_v13 = vld [vmem:[%s8252_s3 + $0x8] sm:$0xff]   ;;  %v5729_v17 = vld [vmem:[%s8252_s3 + $0x50] sm:$0xff]   ;;  %vm4612_vm3 = vcmask 57344  }
  0x1e   : > { %665 = vmatpush1.msra.mxu0 %v528_v2  ;;  %728 = vmatprep.mubr.f32.mxu0 %v8269_v3  ;;  %v5727_v11 = vld [vmem:[%s8252_s3 + $0xc0] sm:$0xff]   ;;  %v5730_v19 = vld [vmem:[%s8252_s3 + $0xc8] sm:$0xff]   ;;  %v5731_v37 = vld [vmem:[%s8252_s3 + $0x10] sm:$0xff]   ;;  %s4890_s19 = sshll.u32 %s6064_s14, 4  ;;  %s5959_s14 = smov [#allocation3]  }
  0x1f   : > { %s5590_s18 = smul.u32 248, %s490_s27  ;;  %913 = vmatprep.subr.mxu1 %v531_v4  ;;  %4893 = vmatprep.subr.bf16.mxu0 %v5723_v5  ;;  %v5728_v16 = vld [vmem:[%s8252_s3 + $0x80] sm:$0xff]   ;;  %v5732_v38 = vld [vmem:[%s8252_s3 + $0x88] sm:$0xff]   ;;  %v5733_v40 = vld [vmem:[%s8252_s3 + $0x58] sm:$0xff]   ;;  %s5895_s22 = sshll.u32 %s5959_s14, 4  ;;  %s5896_s22 = int_to_ptr.vmem [resolvable:$false] %s5895_s22 }
  0x20   : > { %v5734_v41 = vld [vmem:[%s8252_s3 + $0xd0] sm:$0xff]   ;;  %v5735_v42 = vld [vmem:[%s8252_s3 + $0x18] sm:$0xff]   ;;  %v5737_v44 = vld [vmem:[%s8252_s3 + $0x60] sm:$0xff]   ;;  %s5897_s25 = scalar_lea.vmem %s5896_s22, 32 }
  0x21   : > { %v5736_v43 = vld [vmem:[%s8252_s3 + $0x90] sm:$0xff]   ;;  %v5738_v45 = vld [vmem:[%s8252_s3 + $0xd8] sm:$0xff]   ;;  %v5739_v47 = vld [vmem:[%s8252_s3 + $0x20] sm:$0xff]  }
  0x22   : > { %s6116_s16 = scalar_lea.vmem %s8300_s0, %s5590_s18  ;;  %v5740_v48 = vld [vmem:[%s8252_s3 + $0x98] sm:$0xff]   ;;  %v5741_v49 = vld [vmem:[%s8252_s3 + $0x68] sm:$0xff]   ;;  %v5742_v50 = vld [vmem:[%s8252_s3 + $0xe0] sm:$0xff]   ;;  %s487_s18 = sand.u32 1, %s5945_s21  }
  0x23   : > { %v6122_v9 = vld [vmem:[%s6116_s16 + $0xf0] sm:$0xff]  ;;  %v495_v10 = vld [vmem:[%s6116_s16] sm:$0xff]  ;;  %v496_v12 = vld [vmem:[%s6116_s16 + $0x8] sm:$0xff]  ;;  %s488_s24 = scalar_lea.vmem [#allocation3], %s487_s18  ;;  %s8207_s0 = scalar_lea.hbm %s8264_s15, %s4890_s19 }
  0x24   : > { %4717 = vmatmul.mubr.msk.f32.vlgmr.msra.gmra.mrb[0].mxu1 %vm570_vm0, %v6122_v9  ;;  %4687 = vmatmul.mubr.msk.f32.vlgmr.msra.gmra.mrb[0].mxu0 %vm570_vm0, %v495_v10  ;;  %v497_v14 = vld [vmem:[%s6116_s16 + $0x10] sm:$0xff]  ;;  %v498_v15 = vld [vmem:[%s6116_s16 + $0x18] sm:$0xff]  ;;  %v499_v18 = vld [vmem:[%s6116_s16 + $0x20] sm:$0xff]  ;;  %s4615_s28 = scalar_lea.sflag [#allocation4], %s487_s18 }
  0x25   : > { %914 = vmatpush1.msra.mxu1 %v530_v6  ;;  %977 = vmatprep.mubr.f32.mxu1 %v8269_v3  ;;  %v500_v20 = vld [vmem:[%s6116_s16 + $0x28] sm:$0xff]  ;;  %v501_v21 = vld [vmem:[%s6116_s16 + $0x30] sm:$0xff]  ;;  %v502_v22 = vld [vmem:[%s6116_s16 + $0x38] sm:$0xff]  ;;  %v534_v6 = vlaneseq }
  0x26   : > { %734 = vmatprep.mubr.f32.mxu0 %v8269_v3  ;;  %4894 = vmatpush3.bf16.msra.mxu0 %v5724_v7  ;;  %v503_v23 = vld [vmem:[%s6116_s16 + $0x40] sm:$0xff]  ;;  %v504_v24 = vld [vmem:[%s6116_s16 + $0x48] sm:$0xff]  ;;  %v505_v25 = vld [vmem:[%s6116_s16 + $0x50] sm:$0xff] }
  0x27   : > { %4895 = vmatprep.subr.bf16.mxu0 %v5725_v8  ;;  %4993 = vmatprep.subr.bf16.mxu1 %v5727_v11  ;;  %v506_v26 = vld [vmem:[%s6116_s16 + $0x58] sm:$0xff]  ;;  %v507_v27 = vld [vmem:[%s6116_s16 + $0x60] sm:$0xff]  ;;  %v508_v28 = vld [vmem:[%s6116_s16 + $0x68] sm:$0xff]  ;;  %v535_v7 = vshrl.u32 %v534_v6, 7 }
  0x28   : > { %4718 = vmatmul.mubr.msk.f32.vlgmr.msra.gmra.mrb[2].mxu1 %vm570_vm0, %v495_v10  ;;  %4688 = vmatmul.mubr.msk.f32.gmra.mrb[2].mxu0 %vm570_vm0, %v496_v12  ;;  %v509_v29 = vld [vmem:[%s6116_s16 + $0x70] sm:$0xff]  ;;  %v510_v30 = vld [vmem:[%s6116_s16 + $0x78] sm:$0xff]  ;;  %v511_v31 = vld [vmem:[%s6116_s16 + $0x80] sm:$0xff] }
  0x29   : > { %983 = vmatprep.mubr.f32.mxu1 %v8269_v3  ;;  %740 = vmatprep.mubr.f32.mxu0 %v8269_v3  ;;  %v512_v32 = vld [vmem:[%s6116_s16 + $0x88] sm:$0xff]  ;;  %v513_v33 = vld [vmem:[%s6116_s16 + $0x90] sm:$0xff]  ;;  %v514_v34 = vld [vmem:[%s6116_s16 + $0x98] sm:$0xff]  ;;  %v6368_v10 = vsub.s32 0, %v535_v7 }
  0x2a   : > { %4896 = vmatpush3.bf16.msra.mxu0 %v5726_v13  ;;  %4994 = vmatpush3.bf16.msra.mxu1 %v5728_v16  ;;  %v515_v35 = vld [vmem:[%s6116_s16 + $0xa0] sm:$0xff]  ;;  %v516_v36 = vld [vmem:[%s6116_s16 + $0xa8] sm:$0xff]  ;;  %v517_v39 = vld [vmem:[%s6116_s16 + $0xb0] sm:$0xff] }
  0x2b   : > { %4897 = vmatprep.subr.bf16.mxu0 %v5729_v17  ;;  %4995 = vmatprep.subr.bf16.mxu1 %v5730_v19  ;;  %v518_v46 = vld [vmem:[%s6116_s16 + $0xb8] sm:$0xff]  ;;  %v519_v51 = vld [vmem:[%s6116_s16 + $0xc0] sm:$0xff]  ;;  %v5743_v52 = vld [vmem:[%s8252_s3 + $0x28] sm:$0xff]   ;;  %8301 = vst [vmem:[#allocation10_spill] sm:$0xff] %v6368_v10  ;;  %v6379_v17 = vsub.s32 2, %v535_v7 }
  0x2c   : > { %4719 = vmatmul.mubr.msk.f32.gmra.mrb[4].mxu1 %vm570_vm0, %v496_v12  ;;  %4689 = vmatmul.mubr.msk.f32.gmra.mrb[4].mxu0 %vm570_vm0, %v497_v14  ;;  %v5744_v53 = vld [vmem:[%s8252_s3 + $0xa0] sm:$0xff]   ;;  %v5745_v54 = vld [vmem:[%s8252_s3 + $0x70] sm:$0xff]   ;;  %v5746_v55 = vld [vmem:[%s8252_s3 + $0xe8] sm:$0xff]   ;;  %v540_v12 = vsub.s32 4, %v535_v7 }
  0x2d   : > { %989 = vmatprep.mubr.f32.mxu1 %v8269_v3  ;;  %746 = vmatprep.mubr.f32.mxu0 %v8269_v3  ;;  %v520_v56 = vld [vmem:[%s6116_s16 + $0xc8] sm:$0xff]  ;;  %v5747_v57 = vld [vmem:[%s8252_s3 + $0x30] sm:$0xff]   ;;  %v5749_v59 = vld [vmem:[%s8252_s3 + $0x78] sm:$0xff]   ;;  %8303 = vst [vmem:[#allocation12_spill] sm:$0xff] %v6379_v17 }
  0x2e   : > { %4898 = vmatpush3.bf16.msra.mxu0 %v5731_v37  ;;  %4996 = vmatpush3.bf16.msra.mxu1 %v5732_v38  ;;  %v5748_v58 = vld [vmem:[%s8252_s3 + $0xa8] sm:$0xff]   ;;  %v5750_v60 = vld [vmem:[%s8252_s3 + $0xf0] sm:$0xff]   ;;  %v5751_v62 = vld [vmem:[%s8252_s3 + $0x38] sm:$0xff]  }
  0x2f   : > { %4899 = vmatprep.subr.bf16.mxu0 %v5733_v40  ;;  %4997 = vmatprep.subr.bf16.mxu1 %v5734_v41  ;;  %v521_v61 = vld [vmem:[%s6116_s16 + $0xd0] sm:$0xff]  ;;  %v522_v0 = vld [vmem:[%s6116_s16 + $0xd8] sm:$0xff]  ;;  %v523_v1 = vld [vmem:[%s6116_s16 + $0xe0] sm:$0xff] }
  0x30   : > { %4720 = vmatmul.mubr.msk.f32.gmra.mrb[6].mxu1 %vm570_vm0, %v497_v14  ;;  %4690 = vmatmul.mubr.msk.f32.gmra.mrb[6].mxu0 %vm570_vm0, %v498_v15  ;;  %v5752_v63 = vld [vmem:[%s8252_s3 + $0xb0] sm:$0xff]   ;;  %v524_v2 = vld [vmem:[%s6116_s16 + $0xe8] sm:$0xff]  ;;  %v5753_v4 = vld [vmem:[%s8252_s3 + $0xf8] sm:$0xff]   ;;  %v6374_v14 = vsub.s32 1, %v535_v7  ;;  %s5956_s16 = smov 64  }
  0x31   : > { %995 = vmatprep.mubr.f32.mxu1 %v8269_v3  ;;  %752 = vmatprep.mubr.f32.mxu0 %v8269_v3  ;;  %v5754_v5 = vld [vmem:[%s8252_s3 + $0xb8] sm:$0xff]   ;;  %v5755_v8 = vld [vmem:[%s8252_s3 + $0x140] sm:$0xff]   ;;  %v527_v16 = vld [vmem:[%s8251_s2 + $0x8] sm:$0x77] }
  0x32   : > { %4900 = vmatpush3.bf16.msra.mxu0 %v5735_v42  ;;  %4998 = vmatpush3.bf16.msra.mxu1 %v5736_v43  ;;  %v526_v11 = vld [vmem:[%s8251_s2] sm:$0x77]  ;;  %8302 = vst [vmem:[#allocation11_spill] sm:$0xff] %v6374_v14  ;;  %v1449_v40 = vrot.slane %v527_v16, %v6379_v17 }
  0x33   : > { %4901 = vmatprep.subr.bf16.mxu0 %v5737_v44  ;;  %4999 = vmatprep.subr.bf16.mxu1 %v5738_v45  ;;  %v537_v13 = vrot.slane %v526_v11, %v6368_v10 }
  0x34   : > { %4721 = vmatmul.mubr.msk.f32.gmra.mrb[8].mxu1 %vm570_vm0, %v498_v15  ;;  %4691 = vmatmul.mubr.msk.f32.gmra.mrb[8].mxu0 %vm570_vm0, %v499_v18  ;;  %v541_v15 = vrot.slane %v526_v11, %v540_v12 }
  0x35   : > { %1001 = vmatprep.mubr.f32.mxu1 %v8269_v3  ;;  %758 = vmatprep.mubr.f32.mxu0 %v8269_v3  ;;  %v6382_v19 = vrot.slane %v537_v13, %v6368_v10 }
  0x36   : > { %4902 = vmatpush3.bf16.msra.mxu0 %v5739_v47  ;;  %5000 = vmatpush3.bf16.msra.mxu1 %v5740_v48 }
  0x37   : > { %4903 = vmatprep.subr.bf16.mxu0 %v5741_v49  ;;  %5001 = vmatprep.subr.bf16.mxu1 %v5742_v50 }
  0x38   : > { %4722 = vmatmul.mubr.msk.f32.gmra.mrb[10].mxu1 %vm570_vm0, %v499_v18  ;;  %4692 = vmatmul.mubr.msk.f32.gmra.mrb[10].mxu0 %vm570_vm0, %v500_v20  ;;  %v1444_v18 = vsub.s32 6, %v535_v7 }
  0x39   : > { %1007 = vmatprep.mubr.f32.mxu1 %v8269_v3  ;;  %764 = vmatprep.mubr.f32.mxu0 %v8269_v3 }
  0x3a   : > { %4904 = vmatpush3.bf16.msra.mxu0 %v5743_v52  ;;  %5002 = vmatpush3.bf16.msra.mxu1 %v5744_v53  ;;  %v1453_v41 = vrot.slane %v527_v16, %v1444_v18 }
  0x3b   : > { %4905 = vmatprep.subr.bf16.mxu0 %v5745_v54  ;;  %5003 = vmatprep.subr.bf16.mxu1 %v5746_v55 }
  0x3c   : > { %4723 = vmatmul.mubr.msk.f32.gmra.mrb[12].mxu1 %vm570_vm0, %v500_v20  ;;  %4693 = vmatmul.mubr.msk.f32.gmra.mrb[12].mxu0 %vm570_vm0, %v501_v21  ;;  %v1285_v20 = vrot.slane %v526_v11, %v6374_v14 }
  0x3d   : > { %1013 = vmatprep.mubr.f32.mxu1 %v8269_v3  ;;  %770 = vmatprep.mubr.f32.mxu0 %v8269_v3 }
  0x3e   : > { %4906 = vmatpush3.bf16.msra.mxu0 %v5747_v57  ;;  %5004 = vmatpush3.bf16.msra.mxu1 %v5748_v58  ;;  %v6425_v58 = vrot.slane %v1449_v40, %v6379_v17 }
  0x3f   : > { %4907 = vmatprep.subr.bf16.mxu0 %v5749_v59  ;;  %5005 = vmatprep.subr.bf16.mxu1 %v5750_v60  ;;  %v6428_v59 = vrot.slane %v1453_v41, %v6379_v17 }
  0x40   : > { %4724 = vmatmul.mubr.msk.f32.gmra.mrb[14].mxu1 %vm570_vm0, %v501_v21  ;;  %4694 = vmatmul.mubr.msk.f32.gmra.mrb[14].mxu0 %vm570_vm0, %v502_v22  ;;  %v545_v21 = vrot.slane %v527_v16, %v6368_v10 }
  0x41   : > { %1019 = vmatprep.mubr.f32.mxu1 %v8269_v3  ;;  %776 = vmatprep.mubr.f32.mxu0 %v8269_v3 }
  0x42   : > { %4908 = vmatpush3.bf16.msra.mxu0 %v5751_v62  ;;  %5006 = vmatpush3.bf16.msra.mxu1 %v5752_v63 }
  0x43   : > { %5007 = vmatprep.subr.bf16.mxu1 %v5753_v4  ;;  %5093 = vmatprep.subr.bf16.mxu0 %v5755_v8 }
  0x44   : > { %4725 = vmatmul.mubr.msk.f32.gmra.mrb[16].mxu1 %vm570_vm0, %v502_v22  ;;  %4695 = vmatmul.mubr.msk.f32.gmra.mrb[16].mxu0 %vm570_vm0, %v503_v23  ;;  %v6387_v22 = vrot.slane %v541_v15, %v6368_v10 }
  0x45   : > { %1025 = vmatprep.mubr.f32.mxu1 %v8269_v3  ;;  %782 = vmatprep.mubr.f32.mxu0 %v8269_v3 }
  0x46   : > { %5008 = vmatpush3.bf16.msra.mxu1 %v5754_v5 }
  0x48   : > { %4726 = vmatmul.mubr.msk.f32.gmra.mrb[18].mxu1 %vm570_vm0, %v503_v23  ;;  %4696 = vmatmul.mubr.msk.f32.gmra.mrb[18].mxu0 %vm570_vm0, %v504_v24 }
  0x49   : > { %1031 = vmatprep.mubr.f32.mxu1 %v8269_v3  ;;  %788 = vmatprep.mubr.f32.mxu0 %v8269_v3 }
  0x4c   : > { %4727 = vmatmul.mubr.msk.f32.gmra.mrb[20].mxu1 %vm570_vm0, %v504_v24  ;;  %4697 = vmatmul.mubr.msk.f32.gmra.mrb[20].mxu0 %vm570_vm0, %v505_v25  ;;  %v549_v24 = vrot.slane %v527_v16, %v540_v12 }
  0x4d   : > { %1037 = vmatprep.mubr.f32.mxu1 %v8269_v3  ;;  %794 = vmatprep.mubr.f32.mxu0 %v8269_v3 }
  0x4e   : > { %v6403_v37 = vrot.slane %v549_v24, %v6368_v10 }
  0x50   : > { %4728 = vmatmul.mubr.msk.f32.gmra.mrb[22].mxu1 %vm570_vm0, %v505_v25  ;;  %4698 = vmatmul.mubr.msk.f32.gmra.mrb[22].mxu0 %vm570_vm0, %v506_v26 }
  0x51   : > { %1043 = vmatprep.mubr.f32.mxu1 %v8269_v3  ;;  %800 = vmatprep.mubr.f32.mxu0 %v8269_v3 }
  0x54   : > { %4729 = vmatmul.mubr.msk.f32.gmra.mrb[24].mxu1 %vm570_vm0, %v506_v26  ;;  %4699 = vmatmul.mubr.msk.f32.gmra.mrb[24].mxu0 %vm570_vm0, %v507_v27 }
  0x55   : > { %1049 = vmatprep.mubr.f32.mxu1 %v8269_v3  ;;  %806 = vmatprep.mubr.f32.mxu0 %v8269_v3 }
  0x58   : > { %4730 = vmatmul.mubr.msk.f32.gmra.mrb[26].mxu1 %vm570_vm0, %v507_v27  ;;  %4700 = vmatmul.mubr.msk.f32.gmra.mrb[26].mxu0 %vm570_vm0, %v508_v28  ;;  %v1441_v27 = vrot.slane %v526_v11, %v6379_v17 }
  0x59   : > { %1055 = vmatprep.mubr.f32.mxu1 %v8269_v3  ;;  %812 = vmatprep.mubr.f32.mxu0 %v8269_v3 }
  0x5a   : > { %v6407_v42 = vrot.slane %v1441_v27, %v6379_v17 }
  0x5c   : > { %4731 = vmatmul.mubr.msk.f32.gmra.mrb[28].mxu1 %vm570_vm0, %v508_v28  ;;  %4701 = vmatmul.mubr.msk.f32.gmra.mrb[28].mxu0 %vm570_vm0, %v509_v29  ;;  %v1445_v28 = vrot.slane %v526_v11, %v1444_v18 }
  0x5d   : > { %1061 = vmatprep.mubr.f32.mxu1 %v8269_v3  ;;  %818 = vmatprep.mubr.f32.mxu0 %v8269_v3 }
  0x5e   : > { %v6410_v44 = vrot.slane %v1445_v28, %v6379_v17 }
  0x60   : > { %4732 = vmatmul.mubr.msk.f32.gmra.mrb[30].mxu1 %vm570_vm0, %v509_v29  ;;  %4702 = vmatmul.mubr.msk.f32.gmra.mrb[30].mxu0 %vm570_vm0, %v510_v30 }
  0x61   : > { %1067 = vmatprep.mubr.f32.mxu1 %v8269_v3  ;;  %824 = vmatprep.mubr.f32.mxu0 %v8269_v3 }
  0x64   : > { %4733 = vmatmul.mubr.msk.f32.gmra.mrb[32].mxu1 %vm570_vm0, %v510_v30  ;;  %4703 = vmatmul.mubr.msk.f32.gmra.mrb[32].mxu0 %vm570_vm0, %v511_v31 }
  0x65   : > { %1073 = vmatprep.mubr.f32.mxu1 %v8269_v3  ;;  %830 = vmatprep.mubr.f32.mxu0 %v8269_v3 }
  0x68   : > { %4734 = vmatmul.mubr.msk.f32.gmra.mrb[34].mxu1 %vm570_vm0, %v511_v31  ;;  %4704 = vmatmul.mubr.msk.f32.gmra.mrb[34].mxu0 %vm570_vm0, %v512_v32  ;;  %v6392_v31 = vrot.slane %v1285_v20, %v6374_v14 }
  0x69   : > { %1079 = vmatprep.mubr.f32.mxu1 %v8269_v3  ;;  %836 = vmatprep.mubr.f32.mxu0 %v8269_v3 }
  0x6c   : > { %4735 = vmatmul.mubr.msk.f32.gmra.mrb[36].mxu1 %vm570_vm0, %v512_v32  ;;  %4705 = vmatmul.mubr.msk.f32.gmra.mrb[36].mxu0 %vm570_vm0, %v513_v33 }
  0x6d   : > { %1085 = vmatprep.mubr.f32.mxu1 %v8269_v3  ;;  %842 = vmatprep.mubr.f32.mxu0 %v8269_v3 }
  0x70   : > { %4736 = vmatmul.mubr.msk.f32.gmra.mrb[38].mxu1 %vm570_vm0, %v513_v33  ;;  %4706 = vmatmul.mubr.msk.f32.gmra.mrb[38].mxu0 %vm570_vm0, %v514_v34  ;;  %v6395_v33 = vrot.slane %v545_v21, %v6368_v10 }
  0x71   : > { %1091 = vmatprep.mubr.f32.mxu1 %v8269_v3  ;;  %848 = vmatprep.mubr.f32.mxu0 %v8269_v3 }
  0x74   : > { %4737 = vmatmul.mubr.msk.f32.gmra.mrb[40].mxu1 %vm570_vm0, %v514_v34  ;;  %4707 = vmatmul.mubr.msk.f32.gmra.mrb[40].mxu0 %vm570_vm0, %v515_v35  ;;  %v1293_v34 = vrot.slane %v527_v16, %v6374_v14 }
  0x75   : > { %1097 = vmatprep.mubr.f32.mxu1 %v8269_v3  ;;  %854 = vmatprep.mubr.f32.mxu0 %v8269_v3 }
  0x76   : > { %v6415_v49 = vrot.slane %v1293_v34, %v6374_v14 }
  0x78   : > { %4738 = vmatmul.mubr.msk.f32.gmra.mrb[42].mxu1 %vm570_vm0, %v515_v35  ;;  %4708 = vmatmul.mubr.msk.f32.gmra.mrb[42].mxu0 %vm570_vm0, %v516_v36 }
  0x79   : > { %1103 = vmatprep.mubr.f32.mxu1 %v8269_v3  ;;  %860 = vmatprep.mubr.f32.mxu0 %v8269_v3 }
  0x7c   : > { %4739 = vmatmul.mubr.msk.f32.gmra.mrb[44].mxu1 %vm570_vm0, %v516_v36  ;;  %4709 = vmatmul.mubr.msk.f32.gmra.mrb[44].mxu0 %vm570_vm0, %v517_v39 }
  0x7d   : > { %1109 = vmatprep.mubr.f32.mxu1 %v8269_v3  ;;  %866 = vmatprep.mubr.f32.mxu0 %v8269_v3 }
  0x80   : > { %4740 = vmatmul.mubr.msk.f32.gmra.mrb[46].mxu1 %vm570_vm0, %v517_v39  ;;  %4710 = vmatmul.mubr.msk.f32.gmra.mrb[46].mxu0 %vm570_vm0, %v518_v46 }
  0x81   : > { %1115 = vmatprep.mubr.f32.mxu1 %v8269_v3  ;;  %872 = vmatprep.mubr.f32.mxu0 %v8269_v3 }
  0x84   : > { %4741 = vmatmul.mubr.msk.f32.gmra.mrb[48].mxu1 %vm570_vm0, %v518_v46  ;;  %4711 = vmatmul.mubr.msk.f32.gmra.mrb[48].mxu0 %vm570_vm0, %v519_v51 }
  0x85   : > { %1121 = vmatprep.mubr.f32.mxu1 %v8269_v3  ;;  %878 = vmatprep.mubr.f32.mxu0 %v8269_v3 }
  0x88   : > { %4742 = vmatmul.mubr.msk.f32.gmra.mrb[50].mxu1 %vm570_vm0, %v519_v51  ;;  %4712 = vmatmul.mubr.msk.f32.gmra.mrb[50].mxu0 %vm570_vm0, %v520_v56 }
  0x89   : > { %1127 = vmatprep.mubr.f32.mxu1 %v8269_v3  ;;  %884 = vmatprep.mubr.f32.mxu0 %v8269_v3 }
  0x8c   : > { %4743 = vmatmul.mubr.msk.f32.gmra.mrb[52].mxu1 %vm570_vm0, %v520_v56  ;;  %4713 = vmatmul.mubr.msk.f32.gmra.mrb[52].mxu0 %vm570_vm0, %v521_v61 }
  0x8d   : > { %1133 = vmatprep.mubr.f32.mxu1 %v8269_v3  ;;  %890 = vmatprep.mubr.f32.mxu0 %v8269_v3 }
  0x90   : > { %4744 = vmatmul.mubr.msk.f32.gmra.mrb[54].mxu1 %vm570_vm0, %v521_v61  ;;  %4714 = vmatmul.mubr.msk.f32.gmra.mrb[54].mxu0 %vm570_vm0, %v522_v0 }
  0x91   : > { %1139 = vmatprep.mubr.f32.mxu1 %v8269_v3  ;;  %896 = vmatprep.mubr.f32.mxu0 %v8269_v3 }
  0x94   : > { %4745 = vmatmul.mubr.msk.f32.gmra.mrb[56].mxu1 %vm570_vm0, %v522_v0  ;;  %4715 = vmatmul.mubr.msk.f32.gmra.mrb[56].mxu0 %vm570_vm0, %v523_v1 }
  0x95   : > { %1145 = vmatprep.mubr.f32.mxu1 %v8269_v3  ;;  %902 = vmatprep.mubr.f32.mxu0 %v8269_v3 }
  0x98   : > { %4746 = vmatmul.mubr.msk.f32.gmra.mrb[58].mxu1 %vm570_vm0, %v523_v1  ;;  %4716 = vmatmul.mubr.msk.f32.gmra.mrb[58].mxu0 %vm570_vm0, %v524_v2 }
  0x99   : > { %1151 = vmatprep.mubr.f32.mxu1 %v8269_v3 }
  0x9c   : > { %4747 = vmatmul.mubr.msk.f32.gmra.mrb[60].mxu1 %vm570_vm0, %v524_v2 }
  0x9d   : > { %1157 = vmatprep.mubr.f32.mxu1 %v8269_v3 }
  0xa0   : > { %4748 = vmatmul.mubr.msk.f32.gmra.mrb[62].mxu1 %vm570_vm0, %v6122_v9  ;;  %v1288_v9 = vsub.s32 5, %v535_v7 }
  0xa2   : > { %v1289_v23 = vrot.slane %v526_v11, %v1288_v9  ;;  %v1297_v38 = vrot.slane %v527_v16, %v1288_v9 }
  0xa4   : > { %v6400_v36 = vrot.slane %v1289_v23, %v6374_v14  ;;  %v6421_v55 = vrot.slane %v1297_v38, %v6374_v14 }
  0xf7   : > { %v910_v25 = vpop.f32.mrb[0].mxu1  ;;  %v730_v26 = vpop.f32.mrb[0].mxu0 }
  0xf8   : > { %v911_v29 = vpop.f32.mrb[1].mxu1  ;;  %v731_v30 = vadd.f32 %v730_v26, %v6382_v19  ;;  %v732_v32 = vpop.f32.mrb[1].mxu0 }
  0xf9   : > { %v733_v35 = vadd.f32 %v732_v32, %v6387_v22 }
  0xfa   : > { %v1162_v39 = vmax.f32 %v731_v30, 0.0 }
  0xfb   : > { %v1163_v43 = vmax.f32 %v733_v35, 0.0  ;;  %v979_v45 = vpop.f32.mrb[2].mxu1  ;;  %v736_v46 = vpop.f32.mrb[2].mxu0 }
  0xfc   : > { %v1318_v47 = vmul.f32 %v6392_v31, %v1162_v39  ;;  %v980_v48 = vadd.f32 %v979_v45, %v6395_v33  ;;  %v981_v50 = vpop.f32.mrb[3].mxu1  ;;  %v737_v51 = vadd.f32 %v736_v46, %v6382_v19  ;;  %v738_v52 = vpop.f32.mrb[3].mxu0 }
  0xfd   : > { %v1319_v53 = vmul.f32 %v6400_v36, %v1163_v43  ;;  %v982_v54 = vadd.f32 %v981_v50, %v6403_v37  ;;  %v739_v56 = vadd.f32 %v738_v52, %v6387_v22 }
  0xfe   : > { %v1164_v57 = vmax.f32 %v980_v48, 0.0  ;;  %v1166_v60 = vmax.f32 %v737_v51, 0.0  ;;  %v1474_v61 = vadd.f32 %v6407_v42, %v1318_v47 }
  0xff   : > { %v6432_v62 = vadd.f32 %v6410_v44, %v1319_v53  ;;  %v1165_v63 = vmax.f32 %v982_v54, 0.0  ;;  %v1167_v0 = vmax.f32 %v739_v56, 0.0  ;;  %v985_v1 = vpop.f32.mrb[4].mxu1  ;;  %v742_v2 = vpop.f32.mrb[4].mxu0 }
 0x100   : > { %v1320_v4 = vmul.f32 %v6415_v49, %v1164_v57  ;;  %v1322_v5 = vmul.f32 %v6392_v31, %v1166_v60  ;;  %v986_v6 = vadd.f32 %v985_v1, %v6395_v33  ;;  %v987_v7 = vpop.f32.mrb[5].mxu1  ;;  %v743_v8 = vadd.f32 %v742_v2, %v6382_v19  ;;  %v744_v11 = vpop.f32.mrb[5].mxu0 }
 0x101   : > { %v1321_v12 = vmul.f32 %v6421_v55, %v1165_v63  ;;  %v1323_v13 = vmul.f32 %v6400_v36, %v1167_v0  ;;  %v988_v15 = vadd.f32 %v987_v7, %v6403_v37  ;;  %v745_v9 = vadd.f32 %v744_v11, %v6387_v22 }
 0x102   : > { %v1476_v16 = vadd.f32 %v6425_v58, %v1320_v4  ;;  %v1478_v18 = vadd.f32 %v6407_v42, %v1322_v5  ;;  %v1168_v20 = vmax.f32 %v986_v6, 0.0  ;;  %v1170_v21 = vmax.f32 %v743_v8, 0.0 }
 0x103   : > { %v6445_v23 = vadd.f32 %v6428_v59, %v1321_v12  ;;  %v6448_v24 = vadd.f32 %v6410_v44, %v1323_v13  ;;  %v1169_v25 = vmax.f32 %v988_v15, 0.0  ;;  %v1171_v26 = vmax.f32 %v745_v9, 0.0  ;;  %v991_v27 = vpop.f32.mrb[6].mxu1  ;;  %v748_v28 = vpop.f32.mrb[6].mxu0 }
 0x104   : > { %v1594_v29 = vmax.f32 %v1474_v61, %v1476_v16  ;;  %v1324_v30 = vmul.f32 %v6415_v49, %v1168_v20  ;;  %v1326_v32 = vmul.f32 %v6392_v31, %v1170_v21  ;;  %v992_v34 = vadd.f32 %v991_v27, %v6395_v33  ;;  %v993_v35 = vpop.f32.mrb[7].mxu1  ;;  %v750_v38 = vpop.f32.mrb[7].mxu0 }
 0x105   : > { %v1325_v39 = vmul.f32 %v6421_v55, %v1169_v25  ;;  %v1327_v40 = vmul.f32 %v6400_v36, %v1171_v26  ;;  %v994_v41 = vadd.f32 %v993_v35, %v6403_v37  ;;  %v749_v43 = vadd.f32 %v748_v28, %v6382_v19 }
 0x106   : > { %v1480_v45 = vadd.f32 %v6425_v58, %v1324_v30  ;;  %v1482_v46 = vadd.f32 %v6407_v42, %v1326_v32  ;;  %v1172_v47 = vmax.f32 %v992_v34, 0.0  ;;  %v751_v48 = vadd.f32 %v750_v38, %v6387_v22 }
 0x107   : > { %v1481_v50 = vadd.f32 %v6428_v59, %v1325_v39  ;;  %v6462_v51 = vadd.f32 %v6410_v44, %v1327_v40  ;;  %v1173_v52 = vmax.f32 %v994_v41, 0.0  ;;  %v1174_v53 = vmax.f32 %v749_v43, 0.0  ;;  %v997_v54 = vpop.f32.mrb[8].mxu1  ;;  %v754_v56 = vpop.f32.mrb[8].mxu0 }
 0x108   : > { %v6464_v57 = vmax.f32 %v1478_v18, %v1480_v45  ;;  %v1328_v60 = vmul.f32 %v6415_v49, %v1172_v47  ;;  %v1175_v61 = vmax.f32 %v751_v48, 0.0  ;;  %v998_v63 = vadd.f32 %v997_v54, %v6395_v33  ;;  %v999_v0 = vpop.f32.mrb[9].mxu1  ;;  %v756_v1 = vpop.f32.mrb[9].mxu0 }
 0x109   : > { %v1329_v2 = vmul.f32 %v6421_v55, %v1173_v52  ;;  %v1330_v4 = vmul.f32 %v6392_v31, %v1174_v53  ;;  %v1000_v5 = vadd.f32 %v999_v0, %v6403_v37  ;;  %v755_v6 = vadd.f32 %v754_v56, %v6382_v19 }
 0x10a   : > { %v1654_v7 = vpack.c.bf16 %v6464_v57, %v1594_v29  ;;  %v1484_v8 = vadd.f32 %v6425_v58, %v1328_v60  ;;  %v1331_v11 = vmul.f32 %v6400_v36, %v1175_v61  ;;  %v1176_v12 = vmax.f32 %v998_v63, 0.0 }
 0x10b   : > { %v1485_v13 = vadd.f32 %v6428_v59, %v1329_v2  ;;  %v6477_v15 = vadd.f32 %v6407_v42, %v1330_v4  ;;  %v1177_v9 = vmax.f32 %v1000_v5, 0.0  ;;  %v1178_v16 = vmax.f32 %v755_v6, 0.0  ;;  %v1003_v18 = vpop.f32.mrb[10].mxu1  ;;  %v760_v20 = vpop.f32.mrb[10].mxu0 }
 0x10c   : > { %v6479_v21 = vmax.f32 %v1482_v46, %v1484_v8  ;;  %v6482_v25 = vadd.f32 %v6410_v44, %v1331_v11  ;;  %v1332_v26 = vmul.f32 %v6415_v49, %v1176_v12  ;;  %v757_v27 = vadd.f32 %v756_v1, %v6387_v22  ;;  %v1005_v28 = vpop.f32.mrb[11].mxu1  ;;  %v762_v29 = vpop.f32.mrb[11].mxu0 }
 0x10d   : > { %v1333_v30 = vmul.f32 %v6421_v55, %v1177_v9  ;;  %v1334_v32 = vmul.f32 %v6392_v31, %v1178_v16  ;;  %v1004_v34 = vadd.f32 %v1003_v18, %v6395_v33  ;;  %v1006_v35 = vadd.f32 %v1005_v28, %v6403_v37  ;;  %v5757_v18 = vld [vmem:[%s8252_s3 + $0x148] sm:$0xff]  }
 0x10e   : > { %v1682_v38 = vpack.c.bf16 %v6479_v21, %v6464_v57  ;;  %v6493_v39 = vadd.f32 %v6425_v58, %v1332_v26  ;;  %v1179_v40 = vmax.f32 %v757_v27, 0.0  ;;  %v1595_v41 = vmax.f32 %v6432_v62, %v6445_v23  ;;  %v5760_v57 = vld [vmem:[%s8252_s3 + $0x110] sm:$0xff]  }
 0x10f   : > { %v1489_v43 = vadd.f32 %v6428_v59, %v1333_v30  ;;  %v6499_v45 = vadd.f32 %v6407_v42, %v1334_v32  ;;  %v1180_v46 = vmax.f32 %v1004_v34, 0.0  ;;  %v1181_v47 = vmax.f32 %v1006_v35, 0.0  ;;  %v1009_v48 = vpop.f32.mrb[12].mxu1  ;;  %v766_v52 = vpop.f32.mrb[12].mxu0 }
 0x110   : > { %v1335_v53 = vmul.f32 %v6400_v36, %v1179_v40  ;;  %v1597_v54 = vmax.f32 %v6448_v24, %v1481_v50  ;;  %v761_v56 = vadd.f32 %v760_v20, %v6382_v19  ;;  %v763_v60 = vadd.f32 %v762_v29, %v6387_v22  ;;  %v1011_v61 = vpop.f32.mrb[13].mxu1  ;;  %v768_v63 = vpop.f32.mrb[13].mxu0  ;;  %v5756_v50 = vld [vmem:[%s8252_s3 + $0x100] sm:$0xff]  }
 0x111   : > { %v1336_v62 = vmul.f32 %v6415_v49, %v1180_v46  ;;  %v1337_v23 = vmul.f32 %v6421_v55, %v1181_v47  ;;  %v1010_v0 = vadd.f32 %v1009_v48, %v6395_v33  ;;  %v1012_v1 = vadd.f32 %v1011_v61, %v6403_v37 }
 0x112   : > { %v6510_v2 = vadd.f32 %v6410_v44, %v1335_v53  ;;  %v1655_v4 = vpack.c.bf16 %v1597_v54, %v1595_v41  ;;  %v1182_v5 = vmax.f32 %v761_v56, 0.0  ;;  %v1183_v24 = vmax.f32 %v763_v60, 0.0 }
 0x113   : > { %v6516_v6 = vadd.f32 %v6425_v58, %v1336_v62  ;;  %v6519_v8 = vadd.f32 %v6428_v59, %v1337_v23  ;;  %v1184_v11 = vmax.f32 %v1010_v0, 0.0  ;;  %v1185_v12 = vmax.f32 %v1012_v1, 0.0  ;;  %v1015_v9 = vpop.f32.mrb[14].mxu1  ;;  %v772_v16 = vpop.f32.mrb[14].mxu0 }
 0x114   : > { %2133 = vmatprep.mubr.bf16.mxu0 %v1655_v4  ;;  %v1338_v20 = vmul.f32 %v6392_v31, %v1182_v5  ;;  %v1339_v26 = vmul.f32 %v6400_v36, %v1183_v24  ;;  %v1599_v27 = vmax.f32 %v6462_v51, %v1485_v13  ;;  %v767_v28 = vadd.f32 %v766_v52, %v6382_v19  ;;  %v1017_v29 = vpop.f32.mrb[15].mxu1  ;;  %v774_v30 = vpop.f32.mrb[15].mxu0 }
 0x115   : > { %2134 = vmatmul.mubr.bf16.vlgmr.msra.gmra.mrb[60].mxu0 %v1654_v7  ;;  %v1340_v32 = vmul.f32 %v6415_v49, %v1184_v11  ;;  %v1341_v34 = vmul.f32 %v6421_v55, %v1185_v12  ;;  %v769_v35 = vadd.f32 %v768_v63, %v6387_v22  ;;  %v1016_v40 = vadd.f32 %v1015_v9, %v6395_v33  ;;  %v5758_v7 = vld [vmem:[%s8252_s3 + $0x108] sm:$0xff]  }
 0x116   : > { %v6533_v41 = vadd.f32 %v6407_v42, %v1338_v20  ;;  %v6536_v46 = vadd.f32 %v6410_v44, %v1339_v26  ;;  %v1683_v51 = vpack.c.bf16 %v1599_v27, %v1597_v54  ;;  %v1186_v13 = vmax.f32 %v767_v28, 0.0  ;;  %5094 = vmatpush3.bf16.msra.mxu0 %v5756_v50  ;;  %v5759_v54 = vld [vmem:[%s8252_s3 + $0x150] sm:$0xff]   ;;  %v5761_v20 = vld [vmem:[%s8252_s3 + $0x158] sm:$0xff]  }
 0x117   : > { %v6542_v47 = vadd.f32 %v6425_v58, %v1340_v32  ;;  %v6545_v48 = vadd.f32 %v6428_v59, %v1341_v34  ;;  %v1187_v52 = vmax.f32 %v769_v35, 0.0  ;;  %v1188_v53 = vmax.f32 %v1016_v40, 0.0  ;;  %v1021_v56 = vpop.f32.mrb[16].mxu1  ;;  %v778_v60 = vpop.f32.mrb[16].mxu0  ;;  %5095 = vmatprep.subr.bf16.mxu0 %v5757_v18 }
 0x118   : > { %2278 = vmatprep.mubr.bf16.mxu1 %v1683_v51  ;;  %v1342_v61 = vmul.f32 %v6392_v31, %v1186_v13  ;;  %v1018_v63 = vadd.f32 %v1017_v29, %v6403_v37  ;;  %v1601_v62 = vmax.f32 %v6482_v25, %v1489_v43  ;;  %v773_v23 = vadd.f32 %v772_v16, %v6382_v19  ;;  %v1023_v0 = vpop.f32.mrb[17].mxu1  ;;  %v780_v1 = vpop.f32.mrb[17].mxu0 }
 0x119   : > { %2279 = vmatmul.mubr.bf16.vlgmr.msra.gmra.mrb[64].mxu1 %v1682_v38  ;;  %v1343_v4 = vmul.f32 %v6400_v36, %v1187_v52  ;;  %v1344_v5 = vmul.f32 %v6415_v49, %v1188_v53  ;;  %v1600_v24 = vmax.f32 %v6477_v15, %v6493_v39  ;;  %v775_v50 = vadd.f32 %v774_v30, %v6387_v22  ;;  %v5762_v53 = vld [vmem:[%s8252_s3 + $0x118] sm:$0xff]  }
 0x11a   : > { %v6563_v11 = vadd.f32 %v6407_v42, %v1342_v61  ;;  %v1189_v25 = vmax.f32 %v1018_v63, 0.0  ;;  %v6565_v43 = vpack.c.bf16 %v1601_v62, %v1599_v27  ;;  %v1190_v12 = vmax.f32 %v773_v23, 0.0  ;;  %5096 = vmatpush3.bf16.msra.mxu0 %v5758_v7 }
 0x11b   : > { %v6571_v38 = vadd.f32 %v6410_v44, %v1343_v4  ;;  %v6574_v9 = vadd.f32 %v6425_v58, %v1344_v5  ;;  %v6577_v15 = vpack.c.bf16 %v1600_v24, %v6479_v21  ;;  %v1191_v39 = vmax.f32 %v775_v50, 0.0  ;;  %v1027_v16 = vpop.f32.mrb[18].mxu1  ;;  %v784_v18 = vpop.f32.mrb[18].mxu0  ;;  %5097 = vmatprep.subr.bf16.mxu0 %v5759_v54  ;;  %v5763_v54 = vld [vmem:[%s8252_s3 + $0x160] sm:$0xff]  }
 0x11c   : > { %v1345_v26 = vmul.f32 %v6421_v55, %v1189_v25  ;;  %2141 = vmatprep.mubr.bf16.mxu0 %v6565_v43  ;;  %v1346_v27 = vmul.f32 %v6392_v31, %v1190_v12  ;;  %v1022_v28 = vadd.f32 %v1021_v56, %v6395_v33  ;;  %v1024_v29 = vadd.f32 %v1023_v0, %v6403_v37  ;;  %v1029_v21 = vpop.f32.mrb[19].mxu1  ;;  %v786_v30 = vpop.f32.mrb[19].mxu0 }
 0x11d   : > { %2142 = vmatmul.mubr.bf16.gmra.mrb[64].mxu0 %v6577_v15  ;;  %v1347_v32 = vmul.f32 %v6400_v36, %v1191_v39  ;;  %v1603_v34 = vmax.f32 %v6510_v2, %v6519_v8  ;;  %v779_v35 = vadd.f32 %v778_v60, %v6382_v19  ;;  %v1602_v40 = vmax.f32 %v6499_v45, %v6516_v6 }
 0x11e   : > { %v6595_v51 = vadd.f32 %v6428_v59, %v1345_v26  ;;  %v6598_v13 = vadd.f32 %v6407_v42, %v1346_v27  ;;  %v1192_v7 = vmax.f32 %v1022_v28, 0.0  ;;  %v1193_v52 = vmax.f32 %v1024_v29, 0.0  ;;  %5098 = vmatpush3.bf16.msra.mxu0 %v5760_v57  ;;  %v5765_v28 = vld [vmem:[%s8252_s3 + $0x168] sm:$0xff]  }
 0x11f   : > { %v6604_v2 = vadd.f32 %v6410_v44, %v1347_v32  ;;  %v1685_v8 = vpack.c.bf16 %v1603_v34, %v1601_v62  ;;  %v1194_v56 = vmax.f32 %v779_v35, 0.0  ;;  %v1684_v60 = vpack.c.bf16 %v1602_v40, %v1600_v24  ;;  %v1033_v45 = vpop.f32.mrb[20].mxu1  ;;  %v790_v6 = vpop.f32.mrb[20].mxu0  ;;  %5099 = vmatprep.subr.bf16.mxu0 %v5761_v20 }
 0x120   : > { %v1348_v61 = vmul.f32 %v6415_v49, %v1192_v7  ;;  %v1349_v63 = vmul.f32 %v6421_v55, %v1193_v52  ;;  %v781_v23 = vadd.f32 %v780_v1, %v6387_v22  ;;  %v1028_v0 = vadd.f32 %v1027_v16, %v6395_v33  ;;  %v1035_v4 = vpop.f32.mrb[21].mxu1  ;;  %v792_v5 = vpop.f32.mrb[21].mxu0  ;;  %v5764_v16 = vld [vmem:[%s8252_s3 + $0x120] sm:$0xff]  }
 0x121   : > { %2286 = vmatprep.mubr.bf16.mxu1 %v1685_v8  ;;  %v1350_v62 = vmul.f32 %v6392_v31, %v1194_v56  ;;  %v1030_v24 = vadd.f32 %v1029_v21, %v6403_v37  ;;  %v6617_v50 = vmax.f32 %v6536_v46, %v6545_v48  ;;  %v785_v25 = vadd.f32 %v784_v18, %v6382_v19 }
 0x122   : > { %v6621_v12 = vadd.f32 %v6425_v58, %v1348_v61  ;;  %v6624_v1 = vadd.f32 %v6428_v59, %v1349_v63  ;;  %2287 = vmatmul.mubr.bf16.gmra.mrb[68].mxu1 %v1684_v60  ;;  %v1195_v57 = vmax.f32 %v781_v23, 0.0  ;;  %v1196_v39 = vmax.f32 %v1028_v0, 0.0  ;;  %5100 = vmatpush3.bf16.msra.mxu0 %v5762_v53 }
 0x123   : > { %v6630_v20 = vadd.f32 %v6407_v42, %v1350_v62  ;;  %v1197_v46 = vmax.f32 %v1030_v24, 0.0  ;;  %v6633_v48 = vpack.c.bf16 %v6617_v50, %v1603_v34  ;;  %v1198_v18 = vmax.f32 %v785_v25, 0.0  ;;  %v1039_v26 = vpop.f32.mrb[22].mxu1  ;;  %v796_v27 = vpop.f32.mrb[22].mxu0  ;;  %5101 = vmatprep.subr.bf16.mxu0 %v5763_v54 }
 0x124   : > { %v1351_v29 = vmul.f32 %v6400_v36, %v1195_v57  ;;  %v1352_v21 = vmul.f32 %v6415_v49, %v1196_v39  ;;  %v1604_v32 = vmax.f32 %v6533_v41, %v6542_v47  ;;  %v787_v35 = vadd.f32 %v786_v30, %v6387_v22  ;;  %v1041_v7 = vpop.f32.mrb[23].mxu1  ;;  %v798_v34 = vpop.f32.mrb[23].mxu0  ;;  %v5766_v30 = vld [vmem:[%s8252_s3 + $0x128] sm:$0xff]  }
 0x125   : > { %8304 = vst [vmem:[#allocation13_spill] sm:$0xff] %v6633_v48  ;;  %v1353_v52 = vmul.f32 %v6421_v55, %v1197_v46  ;;  %2149 = vmatprep.mubr.bf16.mxu0 %v6633_v48  ;;  %v1354_v53 = vmul.f32 %v6392_v31, %v1198_v18  ;;  %v1034_v8 = vadd.f32 %v1033_v45, %v6395_v33 }
 0x126   : > { %v1036_v56 = vadd.f32 %v1035_v4, %v6403_v37  ;;  %v6649_v60 = vadd.f32 %v6410_v44, %v1351_v29  ;;  %v6652_v54 = vadd.f32 %v6425_v58, %v1352_v21  ;;  %v6654_v41 = vpack.c.bf16 %v1604_v32, %v1602_v40  ;;  %5102 = vmatpush3.bf16.msra.mxu0 %v5764_v16  ;;  %v5767_v40 = vld [vmem:[%s8252_s3 + $0x170] sm:$0xff]  }
 0x127   : > { %v1199_v47 = vmax.f32 %v787_v35, 0.0  ;;  %v6660_v61 = vadd.f32 %v6428_v59, %v1353_v52  ;;  %v6663_v45 = vadd.f32 %v6407_v42, %v1354_v53  ;;  %v1200_v63 = vmax.f32 %v1034_v8, 0.0  ;;  %v1045_v0 = vpop.f32.mrb[24].mxu1  ;;  %v6665_v4 = vpop.f32.mrb[24].mxu0  ;;  %5103 = vmatprep.subr.bf16.mxu0 %v5765_v28 }
 0x128   : > { %8305 = vst [vmem:[#allocation14_spill] sm:$0xff] %v6654_v41  ;;  %v1201_v23 = vmax.f32 %v1036_v56, 0.0  ;;  %2150 = vmatmul.mubr.bf16.gmra.mrb[68].mxu0 %v6654_v41  ;;  %v1607_v24 = vmax.f32 %v6571_v38, %v6595_v51  ;;  %v791_v25 = vadd.f32 %v790_v6, %v6382_v19  ;;  %v1606_v57 = vmax.f32 %v6563_v11, %v6574_v9  ;;  %v1047_v39 = vpop.f32.mrb[25].mxu1  ;;  %v6677_v16 = vpop.f32.mrb[25].mxu0  ;;  %v5768_v11 = vld [vmem:[%s8252_s3 + $0x130] sm:$0xff]  }
 0x129   : > { %v1355_v62 = vmul.f32 %v6400_v36, %v1199_v47  ;;  %v1356_v46 = vmul.f32 %v6415_v49, %v1200_v63  ;;  %v793_v28 = vadd.f32 %v792_v5, %v6387_v22  ;;  %v1040_v29 = vadd.f32 %v1039_v26, %v6395_v33 }
 0x12a   : > { %v1357_v18 = vmul.f32 %v6421_v55, %v1201_v23  ;;  %v1687_v38 = vpack.c.bf16 %v1607_v24, %v6617_v50  ;;  %v1202_v51 = vmax.f32 %v791_v25, 0.0  ;;  %v1686_v6 = vpack.c.bf16 %v1606_v57, %v1604_v32  ;;  %5104 = vmatpush3.bf16.msra.mxu0 %v5766_v30  ;;  %v5769_v50 = vld [vmem:[%s8252_s3 + $0x178] sm:$0xff]  }
 0x12b   : > { %v6684_v21 = vadd.f32 %v6410_v44, %v1355_v62  ;;  %v6691_v9 = vadd.f32 %v6425_v58, %v1356_v46  ;;  %v1203_v5 = vmax.f32 %v793_v28, 0.0  ;;  %v1204_v26 = vmax.f32 %v1040_v29, 0.0  ;;  %v1051_v52 = vpop.f32.mrb[26].mxu1  ;;  %v808_v53 = vpop.f32.mrb[26].mxu0  ;;  %5105 = vmatprep.subr.bf16.mxu0 %v5767_v40 }
 0x12c   : > { %v6694_v35 = vadd.f32 %v6428_v59, %v1357_v18  ;;  %2294 = vmatprep.mubr.bf16.mxu1 %v1687_v38  ;;  %v1358_v32 = vmul.f32 %v6392_v31, %v1202_v51  ;;  %v1042_v8 = vadd.f32 %v1041_v7, %v6403_v37  ;;  %v1609_v56 = vmax.f32 %v6604_v2, %v6624_v1  ;;  %v1053_v30 = vpop.f32.mrb[27].mxu1  ;;  %v6704_v63 = vpop.f32.mrb[27].mxu0 }
 0x12d   : > { %v797_v47 = vadd.f32 %v796_v27, %v6382_v19  ;;  %2295 = vmatmul.mubr.bf16.gmra.mrb[72].mxu1 %v1686_v6  ;;  %v1359_v23 = vmul.f32 %v6400_v36, %v1203_v5  ;;  %v1360_v40 = vmul.f32 %v6415_v49, %v1204_v26  ;;  %v1608_v62 = vmax.f32 %v6598_v13, %v6621_v12  ;;  %v5770_v27 = vld [vmem:[%s8252_s3 + $0x138] sm:$0xff]  }
 0x12e   : > { %v799_v25 = vadd.f32 %v798_v34, %v6387_v22  ;;  %v6712_v7 = vadd.f32 %v6407_v42, %v1358_v32  ;;  %v1205_v46 = vmax.f32 %v1042_v8, 0.0  ;;  %v6714_v2 = vpack.c.bf16 %v1609_v56, %v1607_v24  ;;  %5106 = vmatpush3.bf16.msra.mxu0 %v5768_v11 }
 0x12f   : > { %v1206_v1 = vmax.f32 %v797_v47, 0.0  ;;  %v6720_v18 = vadd.f32 %v6410_v44, %v1359_v23  ;;  %v6723_v28 = vadd.f32 %v6425_v58, %v1360_v40  ;;  %v6725_v13 = vpack.c.bf16 %v1608_v62, %v1606_v57  ;;  %v1057_v34 = vpop.f32.mrb[28].mxu1  ;;  %v6727_v29 = vpop.f32.mrb[28].mxu0  ;;  %5107 = vmatprep.subr.bf16.mxu0 %v5769_v50 }
 0x130   : > { %8306 = vst [vmem:[#allocation15_spill] sm:$0xff] %v6714_v2  ;;  %v1207_v12 = vmax.f32 %v799_v25, 0.0  ;;  %v1361_v24 = vmul.f32 %v6421_v55, %v1205_v46  ;;  %2157 = vmatprep.mubr.bf16.mxu0 %v6714_v2  ;;  %v1046_v51 = vadd.f32 %v1045_v0, %v6395_v33  ;;  %v1048_v6 = vadd.f32 %v1047_v39, %v6403_v37  ;;  %v1059_v11 = vpop.f32.mrb[29].mxu1  ;;  %v6734_v5 = vpop.f32.mrb[29].mxu0 }
 0x131   : > { %8307 = vst [vmem:[#allocation16_spill] sm:$0xff] %v6725_v13  ;;  %v1362_v38 = vmul.f32 %v6392_v31, %v1206_v1  ;;  %2158 = vmatmul.mubr.bf16.gmra.mrb[72].mxu0 %v6725_v13  ;;  %v1611_v26 = vmax.f32 %v6649_v60, %v6660_v61  ;;  %v803_v50 = vadd.f32 %v6665_v4, %v6382_v19 }
 0x132   : > { %v1363_v57 = vmul.f32 %v6400_v36, %v1207_v12  ;;  %v1610_v32 = vmax.f32 %v6630_v20, %v6652_v54  ;;  %v1517_v0 = vadd.f32 %v6428_v59, %v1361_v24  ;;  %v1208_v8 = vmax.f32 %v1046_v51, 0.0  ;;  %5108 = vmatpush3.bf16.msra.mxu0 %v5770_v27 }
 0x133   : > { %v6746_v39 = vadd.f32 %v6407_v42, %v1362_v38  ;;  %v1209_v47 = vmax.f32 %v1048_v6, 0.0  ;;  %v1689_v40 = vpack.c.bf16 %v1611_v26, %v1609_v56  ;;  %v1210_v25 = vmax.f32 %v803_v50, 0.0  ;;  %v1063_v61 = vpop.f32.mrb[30].mxu1  ;;  %v6751_v46 = vpop.f32.mrb[30].mxu0 }
 0x134   : > { %v6749_v23 = vadd.f32 %v6410_v44, %v1363_v57  ;;  %v1688_v60 = vpack.c.bf16 %v1610_v32, %v1608_v62  ;;  %v1364_v4 = vmul.f32 %v6415_v49, %v1208_v8  ;;  %v805_v54 = vadd.f32 %v6677_v16, %v6387_v22  ;;  %v1065_v12 = vpop.f32.mrb[31].mxu1  ;;  %v6758_v27 = vpop.f32.mrb[31].mxu0 }
 0x135   : > { %v1365_v20 = vmul.f32 %v6421_v55, %v1209_v47  ;;  %v1052_v1 = vadd.f32 %v1051_v52, %v6395_v33  ;;  %2302 = vmatprep.mubr.bf16.mxu1 %v1689_v40  ;;  %v1366_v56 = vmul.f32 %v6392_v31, %v1210_v25  ;;  %v1054_v62 = vadd.f32 %v1053_v30, %v6403_v37 }
 0x136   : > { %v1613_v24 = vmax.f32 %v6684_v21, %v6694_v35  ;;  %v809_v38 = vadd.f32 %v808_v53, %v6382_v19  ;;  %v6766_v51 = vadd.f32 %v6425_v58, %v1364_v4  ;;  %2303 = vmatmul.mubr.bf16.gmra.mrb[76].mxu1 %v1688_v60  ;;  %v1211_v52 = vmax.f32 %v805_v54, 0.0 }
 0x137   : > { %v1521_v16 = vadd.f32 %v6428_v59, %v1365_v20  ;;  %v1212_v6 = vmax.f32 %v1052_v1, 0.0  ;;  %v6770_v57 = vadd.f32 %v6407_v42, %v1366_v56  ;;  %v1213_v50 = vmax.f32 %v1054_v62, 0.0  ;;  %v6774_v47 = vpop.f32.mrb[32].mxu1  ;;  %v6776_v21 = vpop.f32.mrb[32].mxu0 }
 0x138   : > { %v6772_v8 = vpack.c.bf16 %v1613_v24, %v1611_v26  ;;  %v1214_v30 = vmax.f32 %v809_v38, 0.0  ;;  %v1367_v35 = vmul.f32 %v6400_v36, %v1211_v52  ;;  %v1612_v40 = vmax.f32 %v6663_v45, %v6691_v9  ;;  %v6784_v60 = vpop.f32.mrb[33].mxu1  ;;  %v6786_v4 = vpop.f32.mrb[33].mxu0 }
 0x139   : > { %v1368_v53 = vmul.f32 %v6415_v49, %v1212_v6  ;;  %v811_v25 = vadd.f32 %v6704_v63, %v6387_v22  ;;  %v1369_v26 = vmul.f32 %v6421_v55, %v1213_v50  ;;  %v1058_v54 = vadd.f32 %v1057_v34, %v6395_v33 }
 0x13a   : > { %8308 = vst [vmem:[#allocation17_spill] sm:$0xff] %v6772_v8  ;;  %2165 = vmatprep.mubr.bf16.mxu0 %v6772_v8  ;;  %v1370_v20 = vmul.f32 %v6392_v31, %v1214_v30  ;;  %v1060_v1 = vadd.f32 %v1059_v11, %v6403_v37  ;;  %v1523_v56 = vadd.f32 %v6410_v44, %v1367_v35 }
 0x13b   : > { %v6795_v45 = vadd.f32 %v6425_v58, %v1368_v53  ;;  %v6797_v9 = vpack.c.bf16 %v1612_v40, %v1610_v32  ;;  %v1215_v63 = vmax.f32 %v811_v25, 0.0  ;;  %v1525_v62 = vadd.f32 %v6428_v59, %v1369_v26  ;;  %v6803_v50 = vpop.f32.mrb[34].mxu1  ;;  %v6805_v34 = vpop.f32.mrb[34].mxu0 }
 0x13c   : > { %v6801_v38 = vadd.f32 %v6407_v42, %v1370_v20  ;;  %v1216_v52 = vmax.f32 %v1058_v54, 0.0  ;;  %v1217_v6 = vmax.f32 %v1060_v1, 0.0  ;;  %v1615_v30 = vmax.f32 %v6720_v18, %v1517_v0  ;;  %v6814_v53 = vpop.f32.mrb[35].mxu1  ;;  %v6816_v25 = vpop.f32.mrb[35].mxu0 }
 0x13d   : > { %8309 = vst [vmem:[#allocation18_spill] sm:$0xff] %v6797_v9  ;;  %2166 = vmatmul.mubr.bf16.gmra.mrb[76].mxu0 %v6797_v9  ;;  %v1371_v11 = vmul.f32 %v6400_v36, %v1215_v63  ;;  %v815_v32 = vadd.f32 %v6727_v29, %v6382_v19  ;;  %v1614_v35 = vmax.f32 %v6712_v7, %v6723_v28 }
 0x13e   : > { %v1372_v26 = vmul.f32 %v6415_v49, %v1216_v52  ;;  %v1373_v20 = vmul.f32 %v6421_v55, %v1217_v6  ;;  %v817_v54 = vadd.f32 %v6734_v5, %v6387_v22  ;;  %v1064_v1 = vadd.f32 %v1063_v61, %v6395_v33 }
 0x13f   : > { %v6824_v18 = vadd.f32 %v6410_v44, %v1371_v11  ;;  %v1691_v29 = vpack.c.bf16 %v1615_v30, %v1613_v24  ;;  %v1218_v0 = vmax.f32 %v815_v32, 0.0  ;;  %v1690_v63 = vpack.c.bf16 %v1614_v35, %v1612_v40  ;;  %v6830_v17 = vpop.f32.mrb[36].mxu1  ;;  %v6832_v6 = vpop.f32.mrb[36].mxu0 }
 0x140   : > { %v6827_v7 = vadd.f32 %v6425_v58, %v1372_v26  ;;  %v1529_v28 = vadd.f32 %v6428_v59, %v1373_v20  ;;  %v1219_v3 = vmax.f32 %v817_v54, 0.0  ;;  %v1220_v52 = vmax.f32 %v1064_v1, 0.0  ;;  %v6839_v11 = vpop.f32.mrb[37].mxu1  ;;  %v6841_v32 = vpop.f32.mrb[37].mxu0 }
 0x141   : > { %2310 = vmatprep.mubr.bf16.mxu1 %v1691_v29  ;;  %v1374_v5 = vmul.f32 %v6392_v31, %v1218_v0  ;;  %v1066_v61 = vadd.f32 %v1065_v12, %v6403_v37  ;;  %v1617_v24 = vmax.f32 %v6749_v23, %v1521_v16  ;;  %v821_v40 = vadd.f32 %v6751_v46, %v6382_v19 }
 0x142   : > { %2311 = vmatmul.mubr.bf16.gmra.mrb[80].mxu1 %v1690_v63  ;;  %v1375_v26 = vmul.f32 %v6400_v36, %v1219_v3  ;;  %v1376_v20 = vmul.f32 %v6415_v49, %v1220_v52  ;;  %v1616_v54 = vmax.f32 %v6746_v39, %v6766_v51  ;;  %v823_v12 = vadd.f32 %v6758_v27, %v6387_v22 }
 0x143   : > { %v6850_v23 = vadd.f32 %v6407_v42, %v1374_v5  ;;  %v1221_v16 = vmax.f32 %v1066_v61, 0.0  ;;  %v6852_v46 = vpack.c.bf16 %v1617_v24, %v1615_v30  ;;  %v1222_v1 = vmax.f32 %v821_v40, 0.0  ;;  %v6862_v39 = vpop.f32.mrb[38].mxu1  ;;  %v6864_v51 = vpop.f32.mrb[38].mxu0 }
 0x144   : > { %v6855_v29 = vadd.f32 %v6410_v44, %v1375_v26  ;;  %v6858_v3 = vadd.f32 %v6425_v58, %v1376_v20  ;;  %v6860_v0 = vpack.c.bf16 %v1616_v54, %v1614_v35  ;;  %v1223_v63 = vmax.f32 %v823_v12, 0.0  ;;  %v6873_v61 = vpop.f32.mrb[39].mxu1  ;;  %v6875_v35 = vpop.f32.mrb[39].mxu0 }
 0x145   : > { %8310 = vst [vmem:[#allocation19_spill] sm:$0xff] %v6852_v46  ;;  %v1377_v27 = vmul.f32 %v6421_v55, %v1221_v16  ;;  %2173 = vmatprep.mubr.bf16.mxu0 %v6852_v46  ;;  %v1378_v30 = vmul.f32 %v6392_v31, %v1222_v1  ;;  %v1070_v52 = vadd.f32 %v6774_v47, %v6395_v33 }
 0x146   : > { %8311 = vst [vmem:[#allocation20_spill] sm:$0xff] %v6860_v0  ;;  %v1072_v5 = vadd.f32 %v6784_v60, %v6403_v37  ;;  %2174 = vmatmul.mubr.bf16.gmra.mrb[80].mxu0 %v6860_v0  ;;  %v1379_v40 = vmul.f32 %v6400_v36, %v1223_v63  ;;  %v1619_v26 = vmax.f32 %v1523_v56, %v1525_v62 }
 0x147   : > { %v827_v20 = vadd.f32 %v6776_v21, %v6382_v19  ;;  %v1618_v12 = vmax.f32 %v6770_v57, %v6795_v45  ;;  %v1533_v47 = vadd.f32 %v6428_v59, %v1377_v27  ;;  %v6885_v16 = vadd.f32 %v6407_v42, %v1378_v30  ;;  %v6890_v56 = vpop.f32.mrb[40].mxu1  ;;  %v6892_v62 = vpop.f32.mrb[40].mxu0 }
 0x148   : > { %v1224_v60 = vmax.f32 %v1070_v52, 0.0  ;;  %v1225_v1 = vmax.f32 %v1072_v5, 0.0  ;;  %v6888_v14 = vadd.f32 %v6410_v44, %v1379_v40  ;;  %v1693_v10 = vpack.c.bf16 %v1619_v26, %v1617_v24  ;;  %v6900_v30 = vpop.f32.mrb[41].mxu1  ;;  %v6902_v52 = vpop.f32.mrb[41].mxu0 }
 0x149   : > { %v1226_v0 = vmax.f32 %v827_v20, 0.0  ;;  %v1692_v63 = vpack.c.bf16 %v1618_v12, %v1616_v54  ;;  %v829_v45 = vadd.f32 %v6786_v4, %v6387_v22  ;;  %v1076_v27 = vadd.f32 %v6803_v50, %v6395_v33 }
 0x14a   : > { %v1380_v21 = vmul.f32 %v6415_v49, %v1224_v60  ;;  %v1381_v57 = vmul.f32 %v6421_v55, %v1225_v1  ;;  %2318 = vmatprep.mubr.bf16.mxu1 %v1693_v10  ;;  %v1078_v54 = vadd.f32 %v6814_v53, %v6403_v37  ;;  %v1621_v5 = vmax.f32 %v6824_v18, %v1529_v28 }
 0x14b   : > { %v1382_v24 = vmul.f32 %v6392_v31, %v1226_v0  ;;  %v833_v40 = vadd.f32 %v6805_v34, %v6382_v19  ;;  %2319 = vmatmul.mubr.bf16.gmra.mrb[84].mxu1 %v1692_v63  ;;  %v1227_v20 = vmax.f32 %v829_v45, 0.0  ;;  %v1228_v60 = vmax.f32 %v1076_v27, 0.0  ;;  %v6919_v46 = vpop.f32.mrb[42].mxu1  ;;  %v6921_v18 = vpop.f32.mrb[42].mxu0 }
 0x14c   : > { %v6911_v4 = vadd.f32 %v6425_v58, %v1380_v21  ;;  %v1537_v50 = vadd.f32 %v6428_v59, %v1381_v57  ;;  %v1229_v0 = vmax.f32 %v1078_v54, 0.0  ;;  %v6917_v1 = vpack.c.bf16 %v1621_v5, %v1619_v26  ;;  %v6929_v57 = vpop.f32.mrb[43].mxu1  ;;  %v6931_v45 = vpop.f32.mrb[43].mxu0 }
 0x14d   : > { %v6915_v10 = vadd.f32 %v6407_v42, %v1382_v24  ;;  %v1230_v53 = vmax.f32 %v833_v40, 0.0  ;;  %v1383_v34 = vmul.f32 %v6400_v36, %v1227_v20  ;;  %v1384_v28 = vmul.f32 %v6415_v49, %v1228_v60 }
 0x14e   : > { %8312 = vst [vmem:[#allocation21_spill] sm:$0xff] %v6917_v1  ;;  %v1620_v63 = vmax.f32 %v6801_v38, %v6827_v7  ;;  %v835_v21 = vadd.f32 %v6816_v25, %v6387_v22  ;;  %v1385_v26 = vmul.f32 %v6421_v55, %v1229_v0  ;;  %2181 = vmatprep.mubr.bf16.mxu0 %v6917_v1 }
 0x14f   : > { %v1386_v27 = vmul.f32 %v6392_v31, %v1230_v53  ;;  %v1082_v24 = vadd.f32 %v6830_v17, %v6395_v33  ;;  %v1084_v54 = vadd.f32 %v6839_v11, %v6403_v37  ;;  %v1539_v38 = vadd.f32 %v6410_v44, %v1383_v34  ;;  %v6950_v1 = vpop.f32.mrb[44].mxu1  ;;  %v6952_v17 = vpop.f32.mrb[44].mxu0 }
 0x150   : > { %v6942_v25 = vadd.f32 %v6425_v58, %v1384_v28  ;;  %v6944_v7 = vpack.c.bf16 %v1620_v63, %v1618_v12  ;;  %v1231_v40 = vmax.f32 %v835_v21, 0.0  ;;  %v1541_v20 = vadd.f32 %v6428_v59, %v1385_v26  ;;  %v6961_v21 = vpop.f32.mrb[45].mxu1  ;;  %v6963_v26 = vpop.f32.mrb[45].mxu0 }
 0x151   : > { %v6948_v60 = vadd.f32 %v6407_v42, %v1386_v27  ;;  %v1232_v0 = vmax.f32 %v1082_v24, 0.0  ;;  %v1233_v53 = vmax.f32 %v1084_v54, 0.0  ;;  %v1623_v34 = vmax.f32 %v6855_v29, %v1533_v47 }
 0x152   : > { %8313 = vst [vmem:[#allocation22_spill] sm:$0xff] %v6944_v7  ;;  %2182 = vmatmul.mubr.bf16.gmra.mrb[84].mxu0 %v6944_v7  ;;  %v1387_v11 = vmul.f32 %v6400_v36, %v1231_v40  ;;  %v839_v12 = vadd.f32 %v6832_v6, %v6382_v19  ;;  %v1622_v28 = vmax.f32 %v6850_v23, %v6858_v3 }
 0x153   : > { %v1388_v27 = vmul.f32 %v6415_v49, %v1232_v0  ;;  %v1389_v24 = vmul.f32 %v6421_v55, %v1233_v53  ;;  %v841_v54 = vadd.f32 %v6841_v32, %v6387_v22  ;;  %v1088_v29 = vadd.f32 %v6862_v39, %v6395_v33  ;;  %v6978_v53 = vpop.f32.mrb[46].mxu1  ;;  %v6980_v8 = vpop.f32.mrb[46].mxu0 }
 0x154   : > { %v6972_v47 = vadd.f32 %v6410_v44, %v1387_v11  ;;  %v1695_v6 = vpack.c.bf16 %v1623_v34, %v1621_v5  ;;  %v1234_v40 = vmax.f32 %v839_v12, 0.0  ;;  %v1694_v23 = vpack.c.bf16 %v1622_v28, %v1620_v63  ;;  %v6988_v11 = vpop.f32.mrb[47].mxu1  ;;  %v6990_v12 = vpop.f32.mrb[47].mxu0 }
 0x155   : > { %v6975_v3 = vadd.f32 %v6425_v58, %v1388_v27  ;;  %v1545_v7 = vadd.f32 %v6428_v59, %v1389_v24  ;;  %v1235_v0 = vmax.f32 %v841_v54, 0.0  ;;  %v1236_v9 = vmax.f32 %v1088_v29, 0.0 }
 0x156   : > { %2326 = vmatprep.mubr.bf16.mxu1 %v1695_v6  ;;  %v1390_v32 = vmul.f32 %v6392_v31, %v1234_v40  ;;  %v1090_v39 = vadd.f32 %v6873_v61, %v6403_v37  ;;  %v1625_v5 = vmax.f32 %v6888_v14, %v1537_v50  ;;  %v845_v63 = vadd.f32 %v6864_v51, %v6382_v19 }
 0x157   : > { %2327 = vmatmul.mubr.bf16.gmra.mrb[88].mxu1 %v1694_v23  ;;  %v1391_v27 = vmul.f32 %v6400_v36, %v1235_v0  ;;  %v1392_v24 = vmul.f32 %v6415_v49, %v1236_v9  ;;  %v1624_v54 = vmax.f32 %v6885_v16, %v6911_v4  ;;  %v847_v61 = vadd.f32 %v6875_v35, %v6387_v22  ;;  %v7011_v16 = vpop.f32.mrb[48].mxu1  ;;  %v7013_v4 = vpop.f32.mrb[48].mxu0 }
 0x158   : > { %v6999_v14 = vadd.f32 %v6407_v42, %v1390_v32  ;;  %v1237_v50 = vmax.f32 %v1090_v39, 0.0  ;;  %v7001_v51 = vpack.c.bf16 %v1625_v5, %v1623_v34  ;;  %v1238_v29 = vmax.f32 %v845_v63, 0.0  ;;  %v7022_v39 = vpop.f32.mrb[49].mxu1 }
 0x159   : > { %v7004_v6 = vadd.f32 %v6410_v44, %v1391_v27  ;;  %v7007_v40 = vadd.f32 %v6425_v58, %v1392_v24  ;;  %v7009_v9 = vpack.c.bf16 %v1624_v54, %v1622_v28  ;;  %v1239_v23 = vmax.f32 %v847_v61, 0.0  ;;  %v7024_v28 = vpop.f32.mrb[49].mxu0 }
 0x15a   : > { %8314 = vst [vmem:[#allocation23_spill] sm:$0xff] %v7001_v51  ;;  %v1393_v35 = vmul.f32 %v6421_v55, %v1237_v50  ;;  %2189 = vmatprep.mubr.bf16.mxu0 %v7001_v51  ;;  %v1394_v34 = vmul.f32 %v6392_v31, %v1238_v29  ;;  %v1094_v0 = vadd.f32 %v6890_v56, %v6395_v33 }
 0x15b   : > { %8315 = vst [vmem:[#allocation24_spill] sm:$0xff] %v7009_v9  ;;  %v1096_v32 = vadd.f32 %v6900_v30, %v6403_v37  ;;  %2190 = vmatmul.mubr.bf16.gmra.mrb[88].mxu0 %v7009_v9  ;;  %v1395_v63 = vmul.f32 %v6400_v36, %v1239_v23  ;;  %v1627_v27 = vmax.f32 %v1539_v38, %v1541_v20  ;;  %v7039_v38 = vpop.f32.mrb[50].mxu1  ;;  %v7041_v20 = vpop.f32.mrb[50].mxu0 }
 0x15c   : > { %v851_v24 = vadd.f32 %v6892_v62, %v6382_v19  ;;  %v1626_v61 = vmax.f32 %v6915_v10, %v6942_v25  ;;  %v1549_v56 = vadd.f32 %v6428_v59, %v1393_v35  ;;  %v7034_v50 = vadd.f32 %v6407_v42, %v1394_v34  ;;  %v7049_v34 = vpop.f32.mrb[51].mxu1 }
 0x15d   : > { %v1240_v30 = vmax.f32 %v1094_v0, 0.0  ;;  %v1241_v29 = vmax.f32 %v1096_v32, 0.0  ;;  %v7037_v51 = vadd.f32 %v6410_v44, %v1395_v63  ;;  %v1697_v9 = vpack.c.bf16 %v1627_v27, %v1625_v5  ;;  %v7051_v0 = vpop.f32.mrb[51].mxu0 }
 0x15e   : > { %v1242_v13 = vmax.f32 %v851_v24, 0.0  ;;  %v1696_v23 = vpack.c.bf16 %v1626_v61, %v1624_v54  ;;  %v853_v25 = vadd.f32 %v6902_v52, %v6387_v22  ;;  %v1100_v35 = vadd.f32 %v6919_v46, %v6395_v33 }
 0x15f   : > { %v1396_v62 = vmul.f32 %v6415_v49, %v1240_v30  ;;  %v1397_v10 = vmul.f32 %v6421_v55, %v1241_v29  ;;  %2334 = vmatprep.mubr.bf16.mxu1 %v1697_v9  ;;  %v1102_v54 = vadd.f32 %v6929_v57, %v6403_v37  ;;  %v1629_v32 = vmax.f32 %v6972_v47, %v1545_v7  ;;  %v7068_v2 = vpop.f32.mrb[52].mxu1  ;;  %v7070_v7 = vpop.f32.mrb[52].mxu0 }
 0x160   : > { %v1398_v5 = vmul.f32 %v6392_v31, %v1242_v13  ;;  %v857_v63 = vadd.f32 %v6921_v18, %v6382_v19  ;;  %2335 = vmatmul.mubr.bf16.gmra.mrb[92].mxu1 %v1696_v23  ;;  %v1243_v24 = vmax.f32 %v853_v25, 0.0  ;;  %v1244_v30 = vmax.f32 %v1100_v35, 0.0  ;;  %v7080_v25 = vpop.f32.mrb[53].mxu0 }
 0x161   : > { %v7060_v52 = vadd.f32 %v6425_v58, %v1396_v62  ;;  %v1553_v46 = vadd.f32 %v6428_v59, %v1397_v10  ;;  %v1245_v13 = vmax.f32 %v1102_v54, 0.0  ;;  %v7066_v29 = vpack.c.bf16 %v1629_v32, %v1627_v27  ;;  %v7078_v10 = vpop.f32.mrb[53].mxu1 }
 0x162   : > { %v7064_v9 = vadd.f32 %v6407_v42, %v1398_v5  ;;  %v1246_v57 = vmax.f32 %v857_v63, 0.0  ;;  %v1399_v18 = vmul.f32 %v6400_v36, %v1243_v24  ;;  %v1400_v47 = vmul.f32 %v6415_v49, %v1244_v30 }
 0x163   : > { %8316 = vst [vmem:[#allocation25_spill] sm:$0xff] %v7066_v29  ;;  %v1628_v23 = vmax.f32 %v6948_v60, %v6975_v3  ;;  %v859_v62 = vadd.f32 %v6931_v45, %v6387_v22  ;;  %v1401_v27 = vmul.f32 %v6421_v55, %v1245_v13  ;;  %2197 = vmatprep.mubr.bf16.mxu0 %v7066_v29  ;;  %v7097_v29 = vpop.f32.mrb[54].mxu1 }
 0x164   : > { %v1402_v35 = vmul.f32 %v6392_v31, %v1246_v57  ;;  %v1106_v5 = vadd.f32 %v6950_v1, %v6395_v33  ;;  %v1108_v54 = vadd.f32 %v6961_v21, %v6403_v37  ;;  %v1555_v60 = vadd.f32 %v6410_v44, %v1399_v18  ;;  %v7099_v1 = vpop.f32.mrb[54].mxu0 }
 0x165   : > { %v1556_v45 = vadd.f32 %v6425_v58, %v1400_v47  ;;  %v7091_v3 = vpack.c.bf16 %v1628_v23, %v1626_v61  ;;  %v1247_v63 = vmax.f32 %v859_v62, 0.0  ;;  %v1557_v24 = vadd.f32 %v6428_v59, %v1401_v27  ;;  %v7108_v62 = vpop.f32.mrb[55].mxu1  ;;  %v7110_v27 = vpop.f32.mrb[55].mxu0 }
 0x166   : > { %v7095_v30 = vadd.f32 %v6407_v42, %v1402_v35  ;;  %v1248_v13 = vmax.f32 %v1106_v5, 0.0  ;;  %v1249_v57 = vmax.f32 %v1108_v54, 0.0  ;;  %v1631_v18 = vmax.f32 %v7004_v6, %v1549_v56 }
 0x167   : > { %8317 = vst [vmem:[#allocation26_spill] sm:$0xff] %v7091_v3  ;;  %2198 = vmatmul.mubr.bf16.gmra.mrb[92].mxu0 %v7091_v3  ;;  %v1403_v21 = vmul.f32 %v6400_v36, %v1247_v63  ;;  %v863_v61 = vadd.f32 %v6952_v17, %v6382_v19  ;;  %v1630_v47 = vmax.f32 %v6999_v14, %v7007_v40  ;;  %v7123_v48 = vpop.f32.mrb[56].mxu1 }
 0x168   : > { %v1404_v35 = vmul.f32 %v6415_v49, %v1248_v13  ;;  %v1405_v5 = vmul.f32 %v6421_v55, %v1249_v57  ;;  %v865_v54 = vadd.f32 %v6963_v26, %v6387_v22  ;;  %v1112_v6 = vadd.f32 %v6978_v53, %v6395_v33  ;;  %v7125_v57 = vpop.f32.mrb[56].mxu0 }
 0x169   : > { %v1559_v56 = vadd.f32 %v6410_v44, %v1403_v21  ;;  %v1699_v17 = vpack.c.bf16 %v1631_v18, %v1629_v32  ;;  %v1250_v63 = vmax.f32 %v863_v61, 0.0  ;;  %v1698_v3 = vpack.c.bf16 %v1630_v47, %v1628_v23  ;;  %v7133_v21 = vpop.f32.mrb[57].mxu1  ;;  %v7135_v61 = vpop.f32.mrb[57].mxu0 }
 0x16a   : > { %v7120_v14 = vadd.f32 %v6425_v58, %v1404_v35  ;;  %v1561_v40 = vadd.f32 %v6428_v59, %v1405_v5  ;;  %v1251_v41 = vmax.f32 %v865_v54, 0.0  ;;  %v1252_v13 = vmax.f32 %v1112_v6, 0.0 }
 0x16b   : > { %2342 = vmatprep.mubr.bf16.mxu1 %v1699_v17  ;;  %v1406_v26 = vmul.f32 %v6392_v31, %v1250_v63  ;;  %v1114_v53 = vadd.f32 %v6988_v11, %v6403_v37  ;;  %v1633_v32 = vmax.f32 %v7037_v51, %v1553_v46  ;;  %v869_v23 = vadd.f32 %v6980_v8, %v6382_v19 }
 0x16c   : > { %2343 = vmatmul.mubr.bf16.gmra.mrb[96].mxu1 %v1698_v3  ;;  %v1407_v35 = vmul.f32 %v6400_v36, %v1251_v41  ;;  %v1408_v5 = vmul.f32 %v6415_v49, %v1252_v13  ;;  %v1632_v54 = vmax.f32 %v7034_v50, %v7060_v52  ;;  %v871_v11 = vadd.f32 %v6990_v12, %v6387_v22  ;;  %v7156_v50 = vpop.f32.mrb[58].mxu1 }
 0x16d   : > { %v7144_v51 = vadd.f32 %v6407_v42, %v1406_v26  ;;  %v1253_v46 = vmax.f32 %v1114_v53, 0.0  ;;  %v7146_v8 = vpack.c.bf16 %v1633_v32, %v1631_v18  ;;  %v1254_v6 = vmax.f32 %v869_v23, 0.0  ;;  %v7165_v26 = vpop.f32.mrb[59].mxu1 }
 0x16e   : > { %v7149_v17 = vadd.f32 %v6410_v44, %v1407_v35  ;;  %v7152_v41 = vadd.f32 %v6425_v58, %v1408_v5  ;;  %v7154_v3 = vpack.c.bf16 %v1632_v54, %v1630_v47  ;;  %v1255_v63 = vmax.f32 %v871_v11, 0.0 }
 0x16f   : > { %8318 = vst [vmem:[#allocation27_spill] sm:$0xff] %v7146_v8  ;;  %v1409_v12 = vmul.f32 %v6421_v55, %v1253_v46  ;;  %2205 = vmatprep.mubr.bf16.mxu0 %v7146_v8  ;;  %v1410_v52 = vmul.f32 %v6392_v31, %v1254_v6  ;;  %v1118_v18 = vadd.f32 %v7011_v16, %v6395_v33 }
 0x170   : > { %8319 = vst [vmem:[#allocation28_spill] sm:$0xff] %v7154_v3  ;;  %v1120_v13 = vadd.f32 %v7022_v39, %v6403_v37  ;;  %2206 = vmatmul.mubr.bf16.gmra.mrb[96].mxu0 %v7154_v3  ;;  %v1411_v47 = vmul.f32 %v6400_v36, %v1255_v63  ;;  %v1635_v53 = vmax.f32 %v1555_v60, %v1557_v24 }
 0x171   : > { %v875_v23 = vadd.f32 %v7013_v4, %v6382_v19  ;;  %v1634_v35 = vmax.f32 %v7064_v9, %v1556_v45  ;;  %v1565_v5 = vadd.f32 %v6428_v59, %v1409_v12  ;;  %v7174_v11 = vadd.f32 %v6407_v42, %v1410_v52 }
 0x172   : > { %v1256_v16 = vmax.f32 %v1118_v18, 0.0  ;;  %v1257_v46 = vmax.f32 %v1120_v13, 0.0  ;;  %v7177_v39 = vadd.f32 %v6410_v44, %v1411_v47  ;;  %v1701_v6 = vpack.c.bf16 %v1635_v53, %v1633_v32  ;;  %v7192_v13 = vpop.f32.mrb[58].mxu0 }
 0x173   : > { %v1258_v3 = vmax.f32 %v875_v23, 0.0  ;;  %v1700_v8 = vpack.c.bf16 %v1634_v35, %v1632_v54  ;;  %v877_v4 = vadd.f32 %v7024_v28, %v6387_v22  ;;  %v1124_v9 = vadd.f32 %v7039_v38, %v6395_v33  ;;  %v7194_v38 = vpop.f32.mrb[60].mxu1 }
 0x174   : > { %v1412_v60 = vmul.f32 %v6415_v49, %v1256_v16  ;;  %v1413_v24 = vmul.f32 %v6421_v55, %v1257_v46  ;;  %2350 = vmatprep.mubr.bf16.mxu1 %v1701_v6  ;;  %v1126_v63 = vadd.f32 %v7049_v34, %v6403_v37  ;;  %v1637_v12 = vmax.f32 %v1559_v56, %v1561_v40  ;;  %v7201_v40 = vpop.f32.mrb[59].mxu0 }
 0x175   : > { %v1414_v45 = vmul.f32 %v6392_v31, %v1258_v3  ;;  %v881_v32 = vadd.f32 %v7041_v20, %v6382_v19  ;;  %2351 = vmatmul.mubr.bf16.gmra.mrb[100].mxu1 %v1700_v8  ;;  %v1259_v18 = vmax.f32 %v877_v4, 0.0  ;;  %v1260_v28 = vmax.f32 %v1124_v9, 0.0  ;;  %v7203_v20 = vpop.f32.mrb[61].mxu1 }
 0x176   : > { %v1568_v54 = vadd.f32 %v6425_v58, %v1412_v60  ;;  %v1569_v52 = vadd.f32 %v6428_v59, %v1413_v24  ;;  %v1261_v47 = vmax.f32 %v1126_v63, 0.0  ;;  %v7199_v34 = vpack.c.bf16 %v1637_v12, %v1635_v53  ;;  %v1159_v6 = vpop.f32.mrb[62].mxu1 }
 0x177   : > { %v7197_v3 = vadd.f32 %v6407_v42, %v1414_v45  ;;  %v1262_v56 = vmax.f32 %v881_v32, 0.0  ;;  %v1415_v23 = vmul.f32 %v6400_v36, %v1259_v18  ;;  %v1416_v8 = vmul.f32 %v6415_v49, %v1260_v28  ;;  %v1160_v9 = vpop.f32.mrb[63].mxu1 }
 0x178   : > { %v1636_v16 = vmax.f32 %v7095_v30, %v7120_v14  ;;  %v883_v46 = vadd.f32 %v7051_v0, %v6387_v22  ;;  %v1417_v60 = vmul.f32 %v6421_v55, %v1261_v47  ;;  %2213 = vmatprep.mubr.bf16.mxu0 %v7199_v34  ;;  %v1130_v24 = vadd.f32 %v7068_v2, %v6395_v33 }
 0x179   : > { %v1418_v53 = vmul.f32 %v6392_v31, %v1262_v56  ;;  %v1132_v4 = vadd.f32 %v7078_v10, %v6403_v37  ;;  %v1571_v45 = vadd.f32 %v6410_v44, %v1415_v23  ;;  %v1572_v30 = vadd.f32 %v6425_v58, %v1416_v8 }
 0x17a   : > { %v7220_v14 = vpack.c.bf16 %v1636_v16, %v1634_v35  ;;  %v1263_v0 = vmax.f32 %v883_v46, 0.0  ;;  %v1573_v63 = vadd.f32 %v6428_v59, %v1417_v60  ;;  %v1264_v18 = vmax.f32 %v1130_v24, 0.0 }
 0x17b   : > { %v7224_v32 = vadd.f32 %v6407_v42, %v1418_v53  ;;  %v1265_v28 = vmax.f32 %v1132_v4, 0.0  ;;  %v1639_v10 = vmax.f32 %v7149_v17, %v1565_v5  ;;  %v887_v47 = vadd.f32 %v7070_v7, %v6382_v19 }
 0x17c   : > { %2214 = vmatmul.mubr.bf16.gmra.mrb[100].mxu0 %v7220_v14  ;;  %v1419_v2 = vmul.f32 %v6400_v36, %v1263_v0  ;;  %v1638_v35 = vmax.f32 %v7144_v51, %v7152_v41  ;;  %v1420_v56 = vmul.f32 %v6415_v49, %v1264_v18  ;;  %v889_v8 = vadd.f32 %v7080_v25, %v6387_v22 }
 0x17d   : > { %v1421_v23 = vmul.f32 %v6421_v55, %v1265_v28  ;;  %v1136_v46 = vadd.f32 %v7097_v29, %v6395_v33  ;;  %v1703_v60 = vpack.c.bf16 %v1639_v10, %v1637_v12  ;;  %v1266_v17 = vmax.f32 %v887_v47, 0.0 }
 0x17e   : > { %v1575_v6 = vadd.f32 %v6410_v44, %v1419_v2  ;;  %v1702_v5 = vpack.c.bf16 %v1638_v35, %v1636_v16  ;;  %v1576_v7 = vadd.f32 %v6425_v58, %v1420_v56  ;;  %v1267_v51 = vmax.f32 %v889_v8, 0.0 }
 0x17f   : > { %v1577_v53 = vadd.f32 %v6428_v59, %v1421_v23  ;;  %v1268_v41 = vmax.f32 %v1136_v46, 0.0  ;;  %2358 = vmatprep.mubr.bf16.mxu1 %v1703_v60  ;;  %v1422_v24 = vmul.f32 %v6392_v31, %v1266_v17  ;;  %v1138_v25 = vadd.f32 %v7108_v62, %v6403_v37 }
 0x180   : > { %v1641_v4 = vmax.f32 %v7177_v39, %v1569_v52  ;;  %v893_v29 = vadd.f32 %v7099_v1, %v6382_v19  ;;  %2359 = vmatmul.mubr.bf16.gmra.mrb[104].mxu1 %v1702_v5  ;;  %v1423_v12 = vmul.f32 %v6400_v36, %v1267_v51  ;;  %v1640_v9 = vmax.f32 %v7174_v11, %v1568_v54 }
 0x181   : > { %v1424_v16 = vmul.f32 %v6415_v49, %v1268_v41  ;;  %v895_v0 = vadd.f32 %v7110_v27, %v6387_v22  ;;  %v1578_v18 = vadd.f32 %v6407_v42, %v1422_v24  ;;  %v1269_v28 = vmax.f32 %v1138_v25, 0.0 }
 0x182   : > { %v7254_v2 = vpack.c.bf16 %v1641_v4, %v1639_v10  ;;  %v1270_v62 = vmax.f32 %v893_v29, 0.0  ;;  %v1579_v39 = vadd.f32 %v6410_v44, %v1423_v12  ;;  %v7258_v52 = vpack.c.bf16 %v1640_v9, %v1638_v35 }
 0x183   : > { %v1580_v1 = vadd.f32 %v6425_v58, %v1424_v16  ;;  %v1271_v47 = vmax.f32 %v895_v0, 0.0  ;;  %v1425_v56 = vmul.f32 %v6421_v55, %v1269_v28  ;;  %v1142_v27 = vadd.f32 %v7123_v48, %v6395_v33 }
 0x184   : > { %2221 = vmatprep.mubr.bf16.mxu0 %v7254_v2  ;;  %v1426_v11 = vmul.f32 %v6392_v31, %v1270_v62  ;;  %v1144_v54 = vadd.f32 %v7133_v21, %v6403_v37  ;;  %v1643_v23 = vmax.f32 %v1571_v45, %v1573_v63  ;;  %v1642_v35 = vmax.f32 %v7197_v3, %v1572_v30 }
 0x185   : > { %2222 = vmatmul.mubr.bf16.gmra.mrb[104].mxu0 %v7258_v52  ;;  %v1427_v10 = vmul.f32 %v6400_v36, %v1271_v47  ;;  %v899_v8 = vadd.f32 %v7125_v57, %v6382_v19  ;;  %v1581_v46 = vadd.f32 %v6428_v59, %v1425_v56  ;;  %v1272_v17 = vmax.f32 %v1142_v27, 0.0 }
 0x186   : > { %v1582_v60 = vadd.f32 %v6407_v42, %v1426_v11  ;;  %v1273_v5 = vmax.f32 %v1144_v54, 0.0  ;;  %v1705_v51 = vpack.c.bf16 %v1643_v23, %v1641_v4  ;;  %v1704_v21 = vpack.c.bf16 %v1642_v35, %v1640_v9 }
 0x187   : > { %v1583_v48 = vadd.f32 %v6410_v44, %v1427_v10  ;;  %v1274_v41 = vmax.f32 %v899_v8, 0.0  ;;  %v1428_v24 = vmul.f32 %v6415_v49, %v1272_v17  ;;  %v1148_v3 = vadd.f32 %v7156_v50, %v6395_v33 }
 0x188   : > { %v1429_v45 = vmul.f32 %v6421_v55, %v1273_v5  ;;  %v901_v57 = vadd.f32 %v7135_v61, %v6387_v22  ;;  %2366 = vmatprep.mubr.bf16.mxu1 %v1705_v51  ;;  %v1150_v63 = vadd.f32 %v7165_v26, %v6403_v37  ;;  %v1645_v25 = vmax.f32 %v1575_v6, %v1577_v53 }
 0x189   : > { %v1430_v30 = vmul.f32 %v6392_v31, %v1274_v41  ;;  %v1644_v4 = vmax.f32 %v7224_v32, %v1576_v7  ;;  %v1584_v29 = vadd.f32 %v6425_v58, %v1428_v24  ;;  %2367 = vmatmul.mubr.bf16.gmra.mrb[108].mxu1 %v1704_v21  ;;  %v1276_v16 = vmax.f32 %v1148_v3, 0.0  ;;  %v8327_v3 = vld [vmem:[#allocation20_spill] sm:$0xff] }
 0x18a   : > { %v1585_v12 = vadd.f32 %v6428_v59, %v1429_v45  ;;  %v1275_v9 = vmax.f32 %v901_v57, 0.0  ;;  %v1277_v0 = vmax.f32 %v1150_v63, 0.0  ;;  %v7288_v61 = vpack.c.bf16 %v1645_v25, %v1643_v23  ;;  %v8326_v45 = vld [vmem:[#allocation19_spill] sm:$0xff]  ;;  %v8328_v57 = vld [vmem:[#allocation21_spill] sm:$0xff]  ;;  %v8331_v63 = vld [vmem:[#allocation24_spill] sm:$0xff] }
 0x18b   : > { %v1586_v50 = vadd.f32 %v6407_v42, %v1430_v30  ;;  %v7290_v28 = vpack.c.bf16 %v1644_v4, %v1642_v35  ;;  %v1432_v62 = vmul.f32 %v6415_v49, %v1276_v16  ;;  %v1647_v6 = vmax.f32 %v1579_v39, %v1581_v46  ;;  %v8329_v30 = vld [vmem:[#allocation22_spill] sm:$0xff]  ;;  %v7350_v16 = vld [vmem:[%s8253_s4] sm:$0x7] }
 0x18c   : > { %v1431_v26 = vmul.f32 %v6400_v36, %v1275_v9  ;;  %v1646_v32 = vmax.f32 %v1578_v18, %v1580_v1  ;;  %v1433_v7 = vmul.f32 %v6421_v55, %v1277_v0  ;;  %2229 = vmatprep.mubr.bf16.mxu0 %v7288_v61  ;;  %v1649_v53 = vmax.f32 %v1583_v48, %v1585_v12  ;;  %v8335_v12 = vld [vmem:[#allocation28_spill] sm:$0xff]  ;;  %v8336_v0 = vld [vmem:[#allocation10_spill] sm:$0xff] }
 0x18d   : > { %v1648_v47 = vmax.f32 %v1582_v60, %v1584_v29  ;;  %v905_v56 = vadd.f32 %v7192_v13, %v6382_v19  ;;  %v1588_v11 = vadd.f32 %v6425_v58, %v1432_v62  ;;  %2230 = vmatmul.mubr.bf16.gmra.mrb[108].mxu0 %v7290_v28  ;;  %v1707_v54 = vpack.c.bf16 %v1647_v6, %v1645_v25  ;;  %v8332_v25 = vld [vmem:[#allocation25_spill] sm:$0xff]  ;;  %v8334_v29 = vld [vmem:[#allocation27_spill] sm:$0xff] }
 0x18e   : > { %v1587_v27 = vadd.f32 %v6410_v44, %v1431_v26  ;;  %v1706_v10 = vpack.c.bf16 %v1646_v32, %v1644_v4  ;;  %v1589_v39 = vadd.f32 %v6428_v59, %v1433_v7  ;;  %v7302_v18 = vpack.c.bf16 %v1649_v53, %v1647_v6  ;;  %v8333_v4 = vld [vmem:[#allocation26_spill] sm:$0xff] }
 0x18f   : > { %v7304_v1 = vpack.c.bf16 %v1648_v47, %v1646_v32  ;;  %v1278_v23 = vmax.f32 %v905_v56, 0.0  ;;  %2374 = vmatprep.mubr.bf16.mxu1 %v1707_v54  ;;  %v1650_v35 = vmax.f32 %v1586_v50, %v1588_v11  ;;  %v1154_v19 = vadd.f32 %v7194_v38, %v6395_v33 }
 0x190   : > { %v907_v13 = vadd.f32 %v7201_v40, %v6387_v22  ;;  %v1156_v8 = vadd.f32 %v7203_v20, %v6403_v37  ;;  %2237 = vmatprep.mubr.bf16.mxu0 %v7302_v18  ;;  %v1651_v46 = vmax.f32 %v1587_v27, %v1589_v39  ;;  %v7355_v62 = vrot.slane %v7350_v16, %v8336_v0 }
 0x191   : > { %v1434_v60 = vmul.f32 %v6392_v31, %v1278_v23  ;;  %2375 = vmatmul.mubr.bf16.gmra.mrb[112].mxu1 %v1706_v10  ;;  %v1708_v17 = vpack.c.bf16 %v1650_v35, %v1648_v47  ;;  %v1280_v5 = vmax.f32 %v1154_v19, 0.0 }
 0x192   : > { %v1279_v48 = vmax.f32 %v907_v13, 0.0  ;;  %v1281_v51 = vmax.f32 %v1156_v8, 0.0  ;;  %v1709_v21 = vpack.c.bf16 %v1651_v46, %v1649_v53  ;;  %v5773_v8 = vld [vmem:[%s8254_s5 + $0x48] sm:$0xff]  }
 0x193   : > { %v1590_v41 = vadd.f32 %v6407_v42, %v1434_v60  ;;  %v1436_v33 = vmul.f32 %v6415_v49, %v1280_v5  ;;  %v5774_v60 = vld [vmem:[%s8254_s5 + $0x8] sm:$0xff]  }
 0x194   : > { %v1435_v22 = vmul.f32 %v6400_v36, %v1279_v48  ;;  %v1437_v38 = vmul.f32 %v6421_v55, %v1281_v51  ;;  %2382 = vmatprep.mubr.bf16.mxu1 %v1709_v21  ;;  %v8320_v36 = vld [vmem:[#allocation13_spill] sm:$0xff]  ;;  %v8321_v55 = vld [vmem:[#allocation14_spill] sm:$0xff] }
 0x195   : > { %2238 = vmatmul.mubr.bf16.gmra.mrb[112].mxu0 %v7304_v1  ;;  %v1592_v37 = vadd.f32 %v6425_v58, %v1436_v33  ;;  %v8322_v58 = vld [vmem:[#allocation15_spill] sm:$0xff] }
 0x196   : > { %v1591_v31 = vadd.f32 %v6410_v44, %v1435_v22  ;;  %v1593_v40 = vadd.f32 %v6428_v59, %v1437_v38  ;;  %2423 = vmatprep.mubr.bf16.mxu0 %v6565_v43  ;;  %v8323_v44 = vld [vmem:[#allocation16_spill] sm:$0xff]  ;;  %v8324_v59 = vld [vmem:[#allocation17_spill] sm:$0xff]  ;;  %v8325_v43 = vld [vmem:[#allocation18_spill] sm:$0xff] }
 0x197   : > { %v1652_v24 = vmax.f32 %v1590_v41, %v1592_v37  ;;  %v5776_v41 = vld [vmem:[%s8254_s5 + $0x10] sm:$0xff]  }
 0x198   : > { %v1653_v20 = vmax.f32 %v1591_v31, %v1593_v40  ;;  %v5777_v40 = vld [vmem:[%s8254_s5 + $0x58] sm:$0xff]  }
 0x199   : > { %2383 = vmatmul.mubr.bf16.gmra.mrb[116].mxu1 %v1708_v17  ;;  %v7325_v49 = vpack.c.bf16 %v1652_v24, %v1650_v35  ;;  %v5778_v24 = vld [vmem:[%s8254_s5 + $0x18] sm:$0xff]  }
 0x19a   : > { %v7323_v42 = vpack.c.bf16 %v1653_v20, %v1651_v46 }
 0x19d   : > { %2424 = vmatmul.mubr.bf16.vlgmr.msra.gmra.mrb[116].mxu0 %v6577_v15  ;;  %v8330_v15 = vld [vmem:[#allocation23_spill] sm:$0xff] }
 0x19e   : > { %2431 = vmatprep.mubr.bf16.mxu0 %v8320_v36 }
 0x1a5   : > { %2432 = vmatmul.mubr.bf16.gmra.mrb[120].mxu0 %v8321_v55 }
 0x1a6   : > { %2439 = vmatprep.mubr.bf16.mxu0 %v8322_v58 }
 0x1ad   : > { %2440 = vmatmul.mubr.bf16.gmra.mrb[124].mxu0 %v8323_v44 }
 0x1ae   : > { %2447 = vmatprep.mubr.bf16.mxu0 %v8324_v59  ;;  %v5780_v59 = vld [vmem:[%s8254_s5 + $0x20] sm:$0xff]  }
 0x1b5   : > { %2448 = vmatmul.mubr.bf16.gmra.mrb[128].mxu0 %v8325_v43 }
 0x1b6   : > { %2455 = vmatprep.mubr.bf16.mxu0 %v8326_v45 }
 0x1bd   : > { %2456 = vmatmul.mubr.bf16.gmra.mrb[132].mxu0 %v8327_v3 }
 0x1be   : > { %2463 = vmatprep.mubr.bf16.mxu0 %v8328_v57 }
 0x1c5   : > { %2464 = vmatmul.mubr.bf16.gmra.mrb[136].mxu0 %v8329_v30 }
 0x1c6   : > { %2471 = vmatprep.mubr.bf16.mxu0 %v8330_v15  ;;  %v5781_v15 = vld [vmem:[%s8254_s5 + $0x68] sm:$0xff]  }
 0x1cd   : > { %2472 = vmatmul.mubr.bf16.gmra.mrb[140].mxu0 %v8331_v63 }
 0x1ce   : > { %2479 = vmatprep.mubr.bf16.mxu0 %v8332_v25 }
 0x1d5   : > { %2480 = vmatmul.mubr.bf16.gmra.mrb[144].mxu0 %v8333_v4 }
 0x1d6   : > { %2487 = vmatprep.mubr.bf16.mxu0 %v8334_v29 }
 0x1dd   : > { %2488 = vmatmul.mubr.bf16.gmra.mrb[148].mxu0 %v8335_v12 }
 0x1de   : > { %2495 = vmatprep.mubr.bf16.mxu0 %v7199_v34 }
 0x1e5   : > { %2496 = vmatmul.mubr.bf16.gmra.mrb[152].mxu0 %v7220_v14 }
 0x1e6   : > { %2503 = vmatprep.mubr.bf16.mxu0 %v7254_v2 }
 0x1e8   : > { %v4909_v9 = vpop.f32.mrb[60].mxu0 }
 0x1e9   : > { %v4910_v50 = vpop.f32.mrb[61].mxu0 }
 0x1ea   : > { %v4911_v26 = vadd.f32 %v4910_v50, %v4909_v9  ;;  %v4912_v6 = vpop.f32.mrb[62].mxu0 }
 0x1eb   : > { %v4913_v34 = vpop.f32.mrb[63].mxu0 }
 0x1ec   : > { %v4914_v14 = vadd.f32 %v4913_v34, %v4912_v6  ;;  %v5009_v2 = vpop.f32.mrb[64].mxu1  ;;  %v2136_v7 = vadd.f32 %v4911_v26, %v7355_v62  ;;  %v5783_v34 = vld [vmem:[%s8254_s5 + $0x70] sm:$0xff]  }
 0x1ed   : > { %2504 = vmatmul.mubr.bf16.gmra.mrb[156].mxu0 %v7258_v52  ;;  %v5010_v32 = vpop.f32.mrb[65].mxu1  ;;  %v5771_v52 = vld [vmem:[%s8254_s5 + $0x40] sm:$0xff]  }
 0x1ee   : > { %2511 = vmatprep.mubr.bf16.mxu0 %v7288_v61  ;;  %v5011_v53 = vadd.f32 %v5010_v32, %v5009_v2  ;;  %v5012_v47 = vpop.f32.mrb[66].mxu1  ;;  %v2139_v11 = vadd.f32 %v4914_v14, %v7355_v62  ;;  %v5772_v61 = vld [vmem:[%s8254_s5] sm:$0xff]   ;;  %5193 = vmatprep.subr.bf16.mxu1 %v5771_v52  ;;  %v5784_v2 = vld [vmem:[%s8254_s5 + $0x30] sm:$0xff]   ;;  %v5785_v52 = vld [vmem:[%s8254_s5 + $0x78] sm:$0xff]  }
 0x1ef   : > { %v5013_v56 = vpop.f32.mrb[67].mxu1  ;;  %5194 = vmatpush3.bf16.msra.mxu1 %v5772_v61 }
 0x1f0   : > { %v7363_v27 = vadd.f32 %v5011_v53, %v2136_v7  ;;  %v5014_v54 = vadd.f32 %v5013_v56, %v5012_v47  ;;  %v4915_v10 = vpop.f32.mrb[64].mxu0  ;;  %5195 = vmatprep.subr.bf16.mxu1 %v5773_v8 }
 0x1f1   : > { %v4916_v39 = vpop.f32.mrb[65].mxu0 }
 0x1f2   : > { %v7369_v23 = vadd.f32 %v5014_v54, %v2139_v11  ;;  %v4917_v35 = vadd.f32 %v4916_v39, %v4915_v10  ;;  %v4918_v19 = vpop.f32.mrb[66].mxu0  ;;  %v5786_v54 = vld [vmem:[%s8254_s5 + $0x38] sm:$0xff]  }
 0x1f3   : > { %v4919_v13 = vpop.f32.mrb[67].mxu0  ;;  %5196 = vmatpush3.bf16.msra.mxu1 %v5774_v60 }
 0x1f4   : > { %v4920_v46 = vadd.f32 %v4919_v13, %v4918_v19  ;;  %v2144_v5 = vadd.f32 %v4917_v35, %v7355_v62 }
 0x1f5   : > { %2512 = vmatmul.mubr.bf16.gmra.mrb[160].mxu0 %v7290_v28  ;;  %v5015_v17 = vpop.f32.mrb[68].mxu1 }
 0x1f6   : > { %2519 = vmatprep.mubr.bf16.mxu0 %v7302_v18  ;;  %v5016_v28 = vpop.f32.mrb[69].mxu1  ;;  %v5775_v18 = vld [vmem:[%s8254_s5 + $0x50] sm:$0xff]   ;;  %v2147_v33 = vadd.f32 %v4920_v46, %v7355_v62 }
 0x1f7   : > { %v5017_v48 = vadd.f32 %v5016_v28, %v5015_v17  ;;  %v5018_v51 = vpop.f32.mrb[70].mxu1  ;;  %5197 = vmatprep.subr.bf16.mxu1 %v5775_v18 }
 0x1f8   : > { %v5019_v21 = vpop.f32.mrb[71].mxu1  ;;  %5198 = vmatpush3.bf16.msra.mxu1 %v5776_v41 }
 0x1f9   : > { %v7386_v22 = vadd.f32 %v5017_v48, %v2144_v5  ;;  %v5020_v38 = vadd.f32 %v5019_v21, %v5018_v51  ;;  %5199 = vmatprep.subr.bf16.mxu1 %v5777_v40 }
 0x1fb   : > { %v7390_v37 = vadd.f32 %v5020_v38, %v2147_v33  ;;  %v4921_v31 = vpop.f32.mrb[68].mxu0 }
 0x1fc   : > { %v4922_v20 = vpop.f32.mrb[69].mxu0  ;;  %5200 = vmatpush3.bf16.msra.mxu1 %v5778_v24 }
 0x1fd   : > { %2520 = vmatmul.mubr.bf16.gmra.mrb[164].mxu0 %v7304_v1  ;;  %v4923_v36 = vadd.f32 %v4922_v20, %v4921_v31  ;;  %v4924_v55 = vpop.f32.mrb[70].mxu0 }
 0x1fe   : > { %2527 = vmatprep.mubr.bf16.mxu0 %v7323_v42  ;;  %v4925_v58 = vpop.f32.mrb[71].mxu0  ;;  %v5779_v42 = vld [vmem:[%s8254_s5 + $0x60] sm:$0xff]  }
 0x1ff   : > { %v4926_v1 = vadd.f32 %v4925_v58, %v4924_v55  ;;  %5201 = vmatprep.subr.bf16.mxu1 %v5779_v42  ;;  %v2152_v45 = vadd.f32 %v4923_v36, %v7355_v62 }
 0x200   : > { %v5021_v44 = vpop.f32.mrb[72].mxu1  ;;  %5202 = vmatpush3.bf16.msra.mxu1 %v5780_v59 }
 0x201   : > { %v5022_v43 = vpop.f32.mrb[73].mxu1  ;;  %v2155_v63 = vadd.f32 %v4926_v1, %v7355_v62  ;;  %5203 = vmatprep.subr.bf16.mxu1 %v5781_v15 }
 0x202   : > { %v5023_v3 = vadd.f32 %v5022_v43, %v5021_v44  ;;  %v5024_v57 = vpop.f32.mrb[74].mxu1 }
 0x203   : > { %v5025_v30 = vpop.f32.mrb[75].mxu1 }
 0x204   : > { %v7410_v25 = vadd.f32 %v5023_v3, %v2152_v45  ;;  %v5026_v4 = vadd.f32 %v5025_v30, %v5024_v57  ;;  %v4927_v29 = vpop.f32.mrb[72].mxu0 }
 0x205   : > { %2528 = vmatmul.mubr.bf16.gmra.mrb[168].mxu0 %v7325_v49  ;;  %v5782_v49 = vld [vmem:[%s8254_s5 + $0x28] sm:$0xff]   ;;  %v4928_v12 = vpop.f32.mrb[73].mxu0 }
 0x206   : > { %v7415_v9 = vadd.f32 %v5026_v4, %v2155_v63  ;;  %v4929_v50 = vadd.f32 %v4928_v12, %v4927_v29  ;;  %v4930_v26 = vpop.f32.mrb[74].mxu0  ;;  %5204 = vmatpush3.bf16.msra.mxu1 %v5782_v49 }
 0x207   : > { %v4931_v6 = vpop.f32.mrb[75].mxu0  ;;  %5205 = vmatprep.subr.bf16.mxu1 %v5783_v34 }
 0x208   : > { %v4932_v14 = vadd.f32 %v4931_v6, %v4930_v26  ;;  %v2160_v53 = vadd.f32 %v4929_v50, %v7355_v62 }
 0x209   : > { %v5027_v32 = vpop.f32.mrb[76].mxu1 }
 0x20a   : > { %v5028_v7 = vpop.f32.mrb[77].mxu1  ;;  %5206 = vmatpush3.bf16.msra.mxu1 %v5784_v2  ;;  %v2163_v10 = vadd.f32 %v4932_v14, %v7355_v62 }
 0x20b   : > { %v5029_v47 = vadd.f32 %v5028_v7, %v5027_v32  ;;  %v5030_v56 = vpop.f32.mrb[78].mxu1  ;;  %5207 = vmatprep.subr.bf16.mxu1 %v5785_v52 }
 0x20c   : > { %v5031_v11 = vpop.f32.mrb[79].mxu1 }
 0x20d   : > { %v7431_v61 = vadd.f32 %v5029_v47, %v2160_v53  ;;  %v5032_v39 = vadd.f32 %v5031_v11, %v5030_v56 }
 0x20e   : > { %5208 = vmatpush3.bf16.msra.mxu1 %v5786_v54 }
 0x20f   : > { %v7433_v35 = vadd.f32 %v5032_v39, %v2163_v10 }
 0x210   : > { %v4933_v19 = vpop.f32.mrb[76].mxu0 }
 0x211   : > { %v4934_v13 = vpop.f32.mrb[77].mxu0 }
 0x212   : > { %v4935_v8 = vadd.f32 %v4934_v13, %v4933_v19  ;;  %v4936_v46 = vpop.f32.mrb[78].mxu0 }
 0x213   : > { %v4937_v60 = vpop.f32.mrb[79].mxu0 }
 0x214   : > { %v4938_v17 = vadd.f32 %v4937_v60, %v4936_v46  ;;  %v2168_v48 = vadd.f32 %v4935_v8, %v7355_v62 }
 0x215   : > { %v5033_v28 = vpop.f32.mrb[80].mxu1 }
 0x216   : > { %v5034_v5 = vpop.f32.mrb[81].mxu1  ;;  %v2171_v41 = vadd.f32 %v4938_v17, %v7355_v62 }
 0x217   : > { %v5035_v51 = vadd.f32 %v5034_v5, %v5033_v28  ;;  %v5036_v18 = vpop.f32.mrb[82].mxu1 }
 0x218   : > { %v5037_v21 = vpop.f32.mrb[83].mxu1 }
 0x219   : > { %v7437_v33 = vadd.f32 %v5035_v51, %v2168_v48  ;;  %v5038_v38 = vadd.f32 %v5037_v21, %v5036_v18  ;;  %v4939_v31 = vpop.f32.mrb[80].mxu0 }
 0x21a   : > { %v4940_v40 = vpop.f32.mrb[81].mxu0 }
 0x21b   : > { %v7439_v20 = vadd.f32 %v5038_v38, %v2171_v41  ;;  %v4941_v24 = vadd.f32 %v4940_v40, %v4939_v31  ;;  %v4942_v36 = vpop.f32.mrb[82].mxu0 }
 0x21c   : > { %v4943_v55 = vpop.f32.mrb[83].mxu0 }
 0x21d   : > { %v4944_v58 = vadd.f32 %v4943_v55, %v4942_v36  ;;  %v2176_v44 = vadd.f32 %v4941_v24, %v7355_v62 }
 0x21e   : > { %v5039_v1 = vpop.f32.mrb[84].mxu1 }
 0x21f   : > { %v5040_v42 = vpop.f32.mrb[85].mxu1  ;;  %v2179_v3 = vadd.f32 %v4944_v58, %v7355_v62 }
 0x220   : > { %v5041_v59 = vadd.f32 %v5040_v42, %v5039_v1  ;;  %v5042_v43 = vpop.f32.mrb[86].mxu1 }
 0x221   : > { %v5043_v45 = vpop.f32.mrb[87].mxu1 }
 0x222   : > { %v7443_v57 = vadd.f32 %v5041_v59, %v2176_v44  ;;  %v5044_v30 = vadd.f32 %v5043_v45, %v5042_v43 }
 0x224   : > { %v7445_v15 = vadd.f32 %v5044_v30, %v2179_v3 }
 0x225   : > { %v4945_v63 = vpop.f32.mrb[84].mxu0 }
 0x226   : > { %v4946_v4 = vpop.f32.mrb[85].mxu0 }
 0x227   : > { %v4947_v29 = vadd.f32 %v4946_v4, %v4945_v63  ;;  %v4948_v49 = vpop.f32.mrb[86].mxu0 }
 0x228   : > { %v4949_v12 = vpop.f32.mrb[87].mxu0 }
 0x229   : > { %v4950_v50 = vadd.f32 %v4949_v12, %v4948_v49  ;;  %v2184_v34 = vadd.f32 %v4947_v29, %v7355_v62 }
 0x22a   : > { %v5045_v26 = vpop.f32.mrb[88].mxu1 }
 0x22b   : > { %v5046_v6 = vpop.f32.mrb[89].mxu1  ;;  %v2187_v7 = vadd.f32 %v4950_v50, %v7355_v62 }
 0x22c   : > { %v5047_v14 = vadd.f32 %v5046_v6, %v5045_v26  ;;  %v5048_v2 = vpop.f32.mrb[90].mxu1 }
 0x22d   : > { %v5049_v32 = vpop.f32.mrb[91].mxu1 }
 0x22e   : > { %v7449_v53 = vadd.f32 %v5047_v14, %v2184_v34  ;;  %v5050_v47 = vadd.f32 %v5049_v32, %v5048_v2  ;;  %v4951_v56 = vpop.f32.mrb[88].mxu0  ;;  %v7469_v2 = vld [vmem:[%s8254_s5 + $0x80] sm:$0xff]  }
 0x22f   : > { %v4952_v52 = vpop.f32.mrb[89].mxu0  ;;  %5476 = vmatprep.subr.bf16.mxu1 %v7469_v2 }
 0x230   : > { %v7451_v11 = vadd.f32 %v5050_v47, %v2187_v7  ;;  %v4953_v54 = vadd.f32 %v4952_v52, %v4951_v56  ;;  %v4954_v10 = vpop.f32.mrb[90].mxu0 }
 0x231   : > { %v4955_v39 = vpop.f32.mrb[91].mxu0 }
 0x232   : > { %v4956_v19 = vadd.f32 %v4955_v39, %v4954_v10  ;;  %v2192_v46 = vadd.f32 %v4953_v54, %v7355_v62 }
 0x233   : > { %v5051_v13 = vpop.f32.mrb[92].mxu1 }
 0x234   : > { %v5052_v8 = vpop.f32.mrb[93].mxu1  ;;  %v2195_v5 = vadd.f32 %v4956_v19, %v7355_v62 }
 0x235   : > { %v5053_v60 = vadd.f32 %v5052_v8, %v5051_v13  ;;  %v5054_v17 = vpop.f32.mrb[94].mxu1 }
 0x236   : > { %v5055_v28 = vpop.f32.mrb[95].mxu1 }
 0x237   : > { %v7455_v48 = vadd.f32 %v5053_v60, %v2192_v46  ;;  %v5056_v51 = vadd.f32 %v5055_v28, %v5054_v17 }
 0x239   : > { %v7457_v18 = vadd.f32 %v5056_v51, %v2195_v5 }
 0x23a   : > { %v4957_v21 = vpop.f32.mrb[92].mxu0 }
 0x23b   : > { %v4958_v41 = vpop.f32.mrb[93].mxu0 }
 0x23c   : > { %v4959_v38 = vadd.f32 %v4958_v41, %v4957_v21  ;;  %v4960_v31 = vpop.f32.mrb[94].mxu0 }
 0x23d   : > { %v4961_v40 = vpop.f32.mrb[95].mxu0 }
 0x23e   : > { %v4962_v24 = vadd.f32 %v4961_v40, %v4960_v31  ;;  %v2200_v58 = vadd.f32 %v4959_v38, %v7355_v62 }
 0x23f   : > { %v5057_v36 = vpop.f32.mrb[96].mxu1 }
 0x240   : > { %v5058_v55 = vpop.f32.mrb[97].mxu1  ;;  %v2203_v59 = vadd.f32 %v4962_v24, %v7355_v62 }
 0x241   : > { %v5059_v1 = vadd.f32 %v5058_v55, %v5057_v36  ;;  %v5060_v42 = vpop.f32.mrb[98].mxu1 }
 0x242   : > { %v5061_v44 = vpop.f32.mrb[99].mxu1 }
 0x243   : > { %v7461_v43 = vadd.f32 %v5059_v1, %v2200_v58  ;;  %v5062_v45 = vadd.f32 %v5061_v44, %v5060_v42  ;;  %v4963_v3 = vpop.f32.mrb[96].mxu0 }
 0x244   : > { %v4964_v30 = vpop.f32.mrb[97].mxu0 }
 0x245   : > { %v7463_v63 = vadd.f32 %v5062_v45, %v2203_v59  ;;  %v4965_v4 = vadd.f32 %v4964_v30, %v4963_v3  ;;  %v4966_v29 = vpop.f32.mrb[98].mxu0 }
 0x246   : > { %v4967_v49 = vpop.f32.mrb[99].mxu0 }
 0x247   : > { %v4968_v12 = vadd.f32 %v4967_v49, %v4966_v29  ;;  %v2208_v6 = vadd.f32 %v4965_v4, %v7355_v62 }
 0x248   : > { %v5063_v50 = vpop.f32.mrb[100].mxu1 }
 0x249   : > { %v5064_v26 = vpop.f32.mrb[101].mxu1  ;;  %v2211_v7 = vadd.f32 %v4968_v12, %v7355_v62 }
 0x24a   : > { %v5065_v34 = vadd.f32 %v5064_v26, %v5063_v50  ;;  %v5066_v14 = vpop.f32.mrb[102].mxu1 }
 0x24b   : > { %v5067_v32 = vpop.f32.mrb[103].mxu1 }
 0x24c   : > { %v7472_v47 = vadd.f32 %v5065_v34, %v2208_v6  ;;  %v5068_v56 = vadd.f32 %v5067_v32, %v5066_v14 }
 0x24e   : > { %v7475_v52 = vadd.f32 %v5068_v56, %v2211_v7 }
 0x24f   : > { %v4969_v54 = vpop.f32.mrb[100].mxu0 }
 0x250   : > { %v4970_v10 = vpop.f32.mrb[101].mxu0 }
 0x251   : > { %v4971_v39 = vadd.f32 %v4970_v10, %v4969_v54  ;;  %v4972_v19 = vpop.f32.mrb[102].mxu0 }
 0x252   : > { %v4973_v13 = vpop.f32.mrb[103].mxu0 }
 0x253   : > { %v4974_v8 = vadd.f32 %v4973_v13, %v4972_v19  ;;  %v5069_v46 = vpop.f32.mrb[104].mxu1  ;;  %v2216_v17 = vadd.f32 %v4971_v39, %v7355_v62 }
 0x254   : > { %v5070_v60 = vpop.f32.mrb[105].mxu1 }
 0x255   : > { %v5071_v28 = vadd.f32 %v5070_v60, %v5069_v46  ;;  %v5072_v5 = vpop.f32.mrb[106].mxu1  ;;  %v2219_v21 = vadd.f32 %v4974_v8, %v7355_v62 }
 0x256   : > { %v5073_v51 = vpop.f32.mrb[107].mxu1 }
 0x257   : > { %v7479_v41 = vadd.f32 %v5071_v28, %v2216_v17  ;;  %v5074_v38 = vadd.f32 %v5073_v51, %v5072_v5 }
 0x258   : > { %v4975_v31 = vpop.f32.mrb[104].mxu0 }
 0x259   : > { %v4976_v40 = vpop.f32.mrb[105].mxu0  ;;  %v7481_v24 = vadd.f32 %v5074_v38, %v2219_v21 }
 0x25a   : > { %v4977_v36 = vadd.f32 %v4976_v40, %v4975_v31  ;;  %v4978_v55 = vpop.f32.mrb[106].mxu0 }
 0x25b   : > { %v4979_v58 = vpop.f32.mrb[107].mxu0 }
 0x25c   : > { %v4980_v1 = vadd.f32 %v4979_v58, %v4978_v55  ;;  %v5075_v42 = vpop.f32.mrb[108].mxu1  ;;  %v2224_v59 = vadd.f32 %v4977_v36, %v7355_v62 }
 0x25d   : > { %v5076_v44 = vpop.f32.mrb[109].mxu1 }
 0x25e   : > { %v5077_v45 = vadd.f32 %v5076_v44, %v5075_v42  ;;  %v5078_v3 = vpop.f32.mrb[110].mxu1  ;;  %v2227_v4 = vadd.f32 %v4980_v1, %v7355_v62 }
 0x25f   : > { %v5079_v30 = vpop.f32.mrb[111].mxu1 }
 0x260   : > { %v7485_v29 = vadd.f32 %v5077_v45, %v2224_v59  ;;  %v5080_v49 = vadd.f32 %v5079_v30, %v5078_v3  ;;  %v4981_v12 = vpop.f32.mrb[108].mxu0 }
 0x261   : > { %v4982_v50 = vpop.f32.mrb[109].mxu0 }
 0x262   : > { %v7487_v26 = vadd.f32 %v5080_v49, %v2227_v4  ;;  %v4983_v6 = vadd.f32 %v4982_v50, %v4981_v12  ;;  %v4984_v34 = vpop.f32.mrb[110].mxu0 }
 0x263   : > { %v4985_v14 = vpop.f32.mrb[111].mxu0 }
 0x264   : > { %v4986_v32 = vadd.f32 %v4985_v14, %v4984_v34  ;;  %v5081_v7 = vpop.f32.mrb[112].mxu1  ;;  %v2232_v54 = vadd.f32 %v4983_v6, %v7355_v62  ;;  %v8337_v6 = vld [vmem:[#allocation11_spill] sm:$0xff] }
 0x265   : > { %v5082_v56 = vpop.f32.mrb[113].mxu1  ;;  %v7504_v34 = vrot.slane %v7350_v16, %v8337_v6 }
 0x266   : > { %v5083_v10 = vadd.f32 %v5082_v56, %v5081_v7  ;;  %v5084_v39 = vpop.f32.mrb[114].mxu1  ;;  %v2235_v13 = vadd.f32 %v4986_v32, %v7355_v62  ;;  %v8338_v56 = vld [vmem:[#allocation12_spill] sm:$0xff] }
 0x267   : > { %v5085_v19 = vpop.f32.mrb[115].mxu1 }
 0x268   : > { %v7491_v8 = vadd.f32 %v5083_v10, %v2232_v54  ;;  %v5086_v46 = vadd.f32 %v5085_v19, %v5084_v39  ;;  %v4987_v60 = vpop.f32.mrb[112].mxu0  ;;  %v7510_v54 = vrot.slane %v7350_v16, %v8338_v56 }
 0x269   : > { %v4988_v17 = vpop.f32.mrb[113].mxu0 }
 0x26a   : > { %v7493_v28 = vadd.f32 %v5086_v46, %v2235_v13  ;;  %v4989_v5 = vadd.f32 %v4988_v17, %v4987_v60  ;;  %v4990_v51 = vpop.f32.mrb[114].mxu0 }
 0x26b   : > { %v4991_v21 = vpop.f32.mrb[115].mxu0 }
 0x26c   : > { %v4992_v38 = vadd.f32 %v4991_v21, %v4990_v51  ;;  %v5087_v31 = vpop.f32.mrb[116].mxu1  ;;  %v2240_v36 = vadd.f32 %v4989_v5, %v7355_v62 }
 0x26d   : > { %v5088_v40 = vpop.f32.mrb[117].mxu1 }
 0x26e   : > { %v5089_v55 = vadd.f32 %v5088_v40, %v5087_v31  ;;  %v5090_v58 = vpop.f32.mrb[118].mxu1  ;;  %v2243_v42 = vadd.f32 %v4992_v38, %v7355_v62 }
 0x26f   : > { %v5091_v1 = vpop.f32.mrb[119].mxu1 }
 0x270   : > { %v7497_v44 = vadd.f32 %v5089_v55, %v2240_v36  ;;  %v5092_v59 = vadd.f32 %v5091_v1, %v5090_v58  ;;  %v5109_v45 = vpop.f32.mrb[116].mxu0 }
 0x271   : > { %v5110_v3 = vpop.f32.mrb[117].mxu0 }
 0x272   : > { %v7499_v30 = vadd.f32 %v5092_v59, %v2243_v42  ;;  %v5111_v4 = vadd.f32 %v5110_v3, %v5109_v45  ;;  %v5112_v49 = vpop.f32.mrb[118].mxu0 }
 0x273   : > { %v5113_v12 = vpop.f32.mrb[119].mxu0 }
 0x274   : > { %v2426_v50 = vadd.f32 %v5111_v4, %v7363_v27  ;;  %v5114_v14 = vadd.f32 %v5113_v12, %v5112_v49 }
 0x276   : > { %v2536_v32 = vmax.f32 %v2426_v50, 0.0  ;;  %v2429_v62 = vadd.f32 %v5114_v14, %v7369_v23 }
 0x278   : > { %v2568_v7 = vmul.f32 %v7504_v34, %v2536_v32  ;;  %v2537_v10 = vmax.f32 %v2429_v62, 0.0  ;;  %v5115_v39 = vpop.f32.mrb[120].mxu0 }
 0x279   : > { %v5116_v19 = vpop.f32.mrb[121].mxu0 }
 0x27a   : > { %v2569_v13 = vmul.f32 %v7504_v34, %v2537_v10  ;;  %v5117_v27 = vadd.f32 %v5116_v19, %v5115_v39  ;;  %v5118_v46 = vpop.f32.mrb[122].mxu0  ;;  %v2600_v17 = vadd.f32 %v7510_v54, %v2568_v7 }
 0x27b   : > { %v5119_v60 = vpop.f32.mrb[123].mxu0 }
 0x27c   : > { %v2601_v5 = vadd.f32 %v7510_v54, %v2569_v13  ;;  %v2434_v23 = vadd.f32 %v5117_v27, %v7386_v22  ;;  %v5120_v51 = vadd.f32 %v5119_v60, %v5118_v46 }
 0x27e   : > { %v2628_v21 = vmax.f32 %v2600_v17, %v2601_v5  ;;  %v2538_v38 = vmax.f32 %v2434_v23, 0.0  ;;  %v2437_v16 = vadd.f32 %v5120_v51, %v7390_v37 }
 0x280   : > { %v2570_v31 = vmul.f32 %v7504_v34, %v2538_v38  ;;  %v2539_v40 = vmax.f32 %v2437_v16, 0.0  ;;  %v5121_v36 = vpop.f32.mrb[124].mxu0 }
 0x281   : > { %v5122_v55 = vpop.f32.mrb[125].mxu0 }
 0x282   : > { %v2571_v58 = vmul.f32 %v7504_v34, %v2539_v40  ;;  %v5123_v1 = vadd.f32 %v5122_v55, %v5121_v36  ;;  %v5124_v42 = vpop.f32.mrb[126].mxu0  ;;  %v2602_v45 = vadd.f32 %v7510_v54, %v2570_v31  ;;  %v5788_v31 = vld [vmem:[%s8254_s5 + $0x88] sm:$0xff]  }
 0x283   : > { %v5125_v59 = vpop.f32.mrb[127].mxu0 }
 0x284   : > { %v2603_v3 = vadd.f32 %v7510_v54, %v2571_v58  ;;  %v2442_v22 = vadd.f32 %v5123_v1, %v7410_v25  ;;  %v5126_v4 = vadd.f32 %v5125_v59, %v5124_v42  ;;  %v5789_v59 = vld [vmem:[%s8254_s5 + $0x90] sm:$0xff]  }
 0x286   : > { %v2540_v49 = vmax.f32 %v2442_v22, 0.0  ;;  %v2445_v37 = vadd.f32 %v5126_v4, %v7415_v9  ;;  %v2629_v12 = vmax.f32 %v2602_v45, %v2603_v3 }
 0x288   : > { %v2572_v50 = vmul.f32 %v7504_v34, %v2540_v49  ;;  %v2541_v14 = vmax.f32 %v2445_v37, 0.0  ;;  %v5127_v32 = vpop.f32.mrb[128].mxu0  ;;  %v2642_v62 = vpack.c.bf16 %v2629_v12, %v2628_v21 }
 0x289   : > { %v5128_v7 = vpop.f32.mrb[129].mxu0 }
 0x28a   : > { %v2573_v10 = vmul.f32 %v7504_v34, %v2541_v14  ;;  %v5129_v39 = vadd.f32 %v5128_v7, %v5127_v32  ;;  %v5130_v19 = vpop.f32.mrb[130].mxu0  ;;  %v2604_v27 = vadd.f32 %v7510_v54, %v2572_v50 }
 0x28b   : > { %v5131_v13 = vpop.f32.mrb[131].mxu0 }
 0x28c   : > { %v2605_v25 = vadd.f32 %v7510_v54, %v2573_v10  ;;  %v2450_v46 = vadd.f32 %v5129_v39, %v7431_v61  ;;  %v5132_v60 = vadd.f32 %v5131_v13, %v5130_v19  ;;  %v5791_v19 = vld [vmem:[%s8254_s5 + $0xa0] sm:$0xff]  }
 0x28e   : > { %v2542_v9 = vmax.f32 %v2450_v46, 0.0  ;;  %v2453_v17 = vadd.f32 %v5132_v60, %v7433_v35  ;;  %v2630_v5 = vmax.f32 %v2604_v27, %v2605_v25 }
 0x290   : > { %v2574_v23 = vmul.f32 %v7504_v34, %v2542_v9  ;;  %v2543_v51 = vmax.f32 %v2453_v17, 0.0  ;;  %v5133_v21 = vpop.f32.mrb[132].mxu0  ;;  %v2648_v38 = vpack.c.bf16 %v2630_v5, %v2629_v12 }
 0x291   : > { %v5134_v16 = vpop.f32.mrb[133].mxu0 }
 0x292   : > { %v2575_v40 = vmul.f32 %v7504_v34, %v2543_v51  ;;  %v5135_v36 = vadd.f32 %v5134_v16, %v5133_v21  ;;  %v5136_v55 = vpop.f32.mrb[134].mxu0  ;;  %2884 = vmatprep.mubr.bf16.mxu1 %v2648_v38  ;;  %v2606_v35 = vadd.f32 %v7510_v54, %v2574_v23 }
 0x293   : > { %v5137_v61 = vpop.f32.mrb[135].mxu0  ;;  %2885 = vmatmul.mubr.bf16.vlgmr.msra.gmra.mrb[120].mxu1 %v2642_v62 }
 0x294   : > { %v2607_v58 = vadd.f32 %v7510_v54, %v2575_v40  ;;  %v2458_v1 = vadd.f32 %v5135_v36, %v7437_v33  ;;  %v5138_v42 = vadd.f32 %v5137_v61, %v5136_v55  ;;  %5477 = vmatpush3.bf16.msra.mxu1 %v7469_v2  ;;  %v5790_v2 = vld [vmem:[%s8254_s5 + $0x98] sm:$0xff]   ;;  %v5793_v36 = vld [vmem:[%s8254_s5 + $0xb0] sm:$0xff]  }
 0x295   : > { %5478 = vmatprep.subr.bf16.mxu1 %v5788_v31 }
 0x296   : > { %v2544_v45 = vmax.f32 %v2458_v1, 0.0  ;;  %v2461_v3 = vadd.f32 %v5138_v42, %v7439_v20  ;;  %v2631_v22 = vmax.f32 %v2606_v35, %v2607_v58 }
 0x298   : > { %v2576_v4 = vmul.f32 %v7504_v34, %v2544_v45  ;;  %v2545_v49 = vmax.f32 %v2461_v3, 0.0  ;;  %v5139_v37 = vpop.f32.mrb[136].mxu0  ;;  %v7543_v12 = vpack.c.bf16 %v2631_v22, %v2630_v5  ;;  %5479 = vmatpush3.bf16.msra.mxu1 %v5788_v31 }
 0x299   : > { %v5140_v33 = vpop.f32.mrb[137].mxu0  ;;  %5480 = vmatprep.subr.bf16.mxu1 %v5789_v59 }
 0x29a   : > { %v2577_v50 = vmul.f32 %v7504_v34, %v2545_v49  ;;  %v5141_v14 = vadd.f32 %v5140_v33, %v5139_v37  ;;  %v5142_v32 = vpop.f32.mrb[138].mxu0  ;;  %v2608_v20 = vadd.f32 %v7510_v54, %v2576_v4 }
 0x29b   : > { %v5143_v62 = vpop.f32.mrb[139].mxu0 }
 0x29c   : > { %v2609_v7 = vadd.f32 %v7510_v54, %v2577_v50  ;;  %v2466_v10 = vadd.f32 %v5141_v14, %v7443_v57  ;;  %v5144_v39 = vadd.f32 %v5143_v62, %v5142_v32  ;;  %5481 = vmatpush3.bf16.msra.mxu1 %v5789_v59  ;;  %v5792_v57 = vld [vmem:[%s8254_s5 + $0xa8] sm:$0xff]  }
 0x29d   : > { %5482 = vmatprep.subr.bf16.mxu1 %v5790_v2 }
 0x29e   : > { %v2546_v13 = vmax.f32 %v2466_v10, 0.0  ;;  %v2469_v27 = vadd.f32 %v5144_v39, %v7445_v15  ;;  %v2632_v25 = vmax.f32 %v2608_v20, %v2609_v7 }
 0x2a0   : > { %v2578_v46 = vmul.f32 %v7504_v34, %v2546_v13  ;;  %v2547_v60 = vmax.f32 %v2469_v27, 0.0  ;;  %v5145_v9 = vpop.f32.mrb[140].mxu0  ;;  %v2649_v17 = vpack.c.bf16 %v2632_v25, %v2631_v22  ;;  %5483 = vmatpush3.bf16.msra.mxu1 %v5790_v2 }
 0x2a1   : > { %v5146_v5 = vpop.f32.mrb[141].mxu0  ;;  %5484 = vmatprep.subr.bf16.mxu1 %v5791_v19 }
 0x2a2   : > { %v2579_v23 = vmul.f32 %v7504_v34, %v2547_v60  ;;  %v5147_v51 = vadd.f32 %v5146_v5, %v5145_v9  ;;  %v5148_v21 = vpop.f32.mrb[142].mxu0  ;;  %2892 = vmatprep.mubr.bf16.mxu1 %v2649_v17  ;;  %v2610_v15 = vadd.f32 %v7510_v54, %v2578_v46 }
 0x2a3   : > { %v5149_v38 = vpop.f32.mrb[143].mxu0  ;;  %2893 = vmatmul.mubr.bf16.gmra.mrb[124].mxu1 %v7543_v12 }
 0x2a4   : > { %v2611_v16 = vadd.f32 %v7510_v54, %v2579_v23  ;;  %v2474_v31 = vadd.f32 %v5147_v51, %v7449_v53  ;;  %v5150_v40 = vadd.f32 %v5149_v38, %v5148_v21  ;;  %5485 = vmatpush3.bf16.msra.mxu1 %v5791_v19  ;;  %v5794_v53 = vld [vmem:[%s8254_s5 + $0xb8] sm:$0xff]  }
 0x2a5   : > { %5486 = vmatprep.subr.bf16.mxu1 %v5792_v57 }
 0x2a6   : > { %v2548_v55 = vmax.f32 %v2474_v31, 0.0  ;;  %v2477_v61 = vadd.f32 %v5150_v40, %v7451_v11  ;;  %v2633_v35 = vmax.f32 %v2610_v15, %v2611_v16 }
 0x2a8   : > { %v2580_v58 = vmul.f32 %v7504_v34, %v2548_v55  ;;  %v2549_v1 = vmax.f32 %v2477_v61, 0.0  ;;  %v5151_v42 = vpop.f32.mrb[144].mxu0  ;;  %v7570_v59 = vpack.c.bf16 %v2633_v35, %v2632_v25  ;;  %5487 = vmatpush3.bf16.msra.mxu1 %v5792_v57 }
 0x2a9   : > { %v5152_v45 = vpop.f32.mrb[145].mxu0  ;;  %5488 = vmatprep.subr.bf16.mxu1 %v5793_v36 }
 0x2aa   : > { %v2581_v3 = vmul.f32 %v7504_v34, %v2549_v1  ;;  %v5153_v22 = vadd.f32 %v5152_v45, %v5151_v42  ;;  %v5154_v4 = vpop.f32.mrb[146].mxu0  ;;  %v2612_v11 = vadd.f32 %v7510_v54, %v2580_v58 }
 0x2ab   : > { %v5155_v49 = vpop.f32.mrb[147].mxu0 }
 0x2ac   : > { %v2613_v37 = vadd.f32 %v7510_v54, %v2581_v3  ;;  %v2482_v33 = vadd.f32 %v5153_v22, %v7455_v48  ;;  %v5156_v2 = vadd.f32 %v5155_v49, %v5154_v4  ;;  %5489 = vmatpush3.bf16.msra.mxu1 %v5793_v36 }
 0x2ad   : > { %5490 = vmatprep.subr.bf16.mxu1 %v5794_v53 }
 0x2ae   : > { %v2550_v50 = vmax.f32 %v2482_v33, 0.0  ;;  %v2485_v14 = vadd.f32 %v5156_v2, %v7457_v18  ;;  %v2634_v32 = vmax.f32 %v2612_v11, %v2613_v37 }
 0x2b0   : > { %v2582_v62 = vmul.f32 %v7504_v34, %v2550_v50  ;;  %v2551_v20 = vmax.f32 %v2485_v14, 0.0  ;;  %v5157_v7 = vpop.f32.mrb[148].mxu0  ;;  %v2650_v10 = vpack.c.bf16 %v2634_v32, %v2633_v35  ;;  %5491 = vmatpush3.bf16.msra.mxu1 %v5794_v53 }
 0x2b1   : > { %v5158_v39 = vpop.f32.mrb[149].mxu0 }
 0x2b2   : > { %v2583_v19 = vmul.f32 %v7504_v34, %v2551_v20  ;;  %v5159_v13 = vadd.f32 %v5158_v39, %v5157_v7  ;;  %v5160_v27 = vpop.f32.mrb[150].mxu0  ;;  %2900 = vmatprep.mubr.bf16.mxu1 %v2650_v10  ;;  %v2614_v25 = vadd.f32 %v7510_v54, %v2582_v62 }
 0x2b3   : > { %v5161_v48 = vpop.f32.mrb[151].mxu0  ;;  %2901 = vmatmul.mubr.bf16.gmra.mrb[128].mxu1 %v7570_v59 }
 0x2b4   : > { %v2615_v18 = vadd.f32 %v7510_v54, %v2583_v19  ;;  %v2490_v46 = vadd.f32 %v5159_v13, %v7461_v43  ;;  %v5162_v60 = vadd.f32 %v5161_v48, %v5160_v27 }
 0x2b6   : > { %v2552_v9 = vmax.f32 %v2490_v46, 0.0  ;;  %v2493_v17 = vadd.f32 %v5162_v60, %v7463_v63  ;;  %v2635_v5 = vmax.f32 %v2614_v25, %v2615_v18 }
 0x2b8   : > { %v2584_v57 = vmul.f32 %v7504_v34, %v2552_v9  ;;  %v2553_v23 = vmax.f32 %v2493_v17, 0.0  ;;  %v5163_v51 = vpop.f32.mrb[152].mxu0  ;;  %v7588_v21 = vpack.c.bf16 %v2635_v5, %v2634_v32 }
 0x2b9   : > { %v5164_v38 = vpop.f32.mrb[153].mxu0 }
 0x2ba   : > { %v2585_v15 = vmul.f32 %v7504_v34, %v2553_v23  ;;  %v5165_v16 = vadd.f32 %v5164_v38, %v5163_v51  ;;  %v5166_v31 = vpop.f32.mrb[154].mxu0  ;;  %v2616_v36 = vadd.f32 %v7510_v54, %v2584_v57 }
 0x2bb   : > { %v5167_v40 = vpop.f32.mrb[155].mxu0 }
 0x2bc   : > { %v2617_v43 = vadd.f32 %v7510_v54, %v2585_v15  ;;  %v2498_v55 = vadd.f32 %v5165_v16, %v7472_v47  ;;  %v5168_v63 = vadd.f32 %v5167_v40, %v5166_v31 }
 0x2be   : > { %v2554_v61 = vmax.f32 %v2498_v55, 0.0  ;;  %v2501_v35 = vadd.f32 %v5168_v63, %v7475_v52  ;;  %v2636_v58 = vmax.f32 %v2616_v36, %v2617_v43 }
 0x2c0   : > { %v2586_v1 = vmul.f32 %v7504_v34, %v2554_v61  ;;  %v2555_v42 = vmax.f32 %v2501_v35, 0.0  ;;  %v5169_v45 = vpop.f32.mrb[156].mxu0  ;;  %v2651_v53 = vpack.c.bf16 %v2636_v58, %v2635_v5 }
 0x2c1   : > { %v5170_v3 = vpop.f32.mrb[157].mxu0 }
 0x2c2   : > { %v2587_v22 = vmul.f32 %v7504_v34, %v2555_v42  ;;  %v5171_v4 = vadd.f32 %v5170_v3, %v5169_v45  ;;  %v5172_v49 = vpop.f32.mrb[158].mxu0  ;;  %2908 = vmatprep.mubr.bf16.mxu1 %v2651_v53  ;;  %v2618_v47 = vadd.f32 %v7510_v54, %v2586_v1 }
 0x2c3   : > { %v5173_v11 = vpop.f32.mrb[159].mxu0  ;;  %2909 = vmatmul.mubr.bf16.gmra.mrb[132].mxu1 %v7588_v21 }
 0x2c4   : > { %v2619_v37 = vadd.f32 %v7510_v54, %v2587_v22  ;;  %v2506_v52 = vadd.f32 %v5171_v4, %v7479_v41  ;;  %v5174_v33 = vadd.f32 %v5173_v11, %v5172_v49 }
 0x2c6   : > { %v2556_v2 = vmax.f32 %v2506_v52, 0.0  ;;  %v2509_v50 = vadd.f32 %v5174_v33, %v7481_v24  ;;  %v2637_v14 = vmax.f32 %v2618_v47, %v2619_v37 }
 0x2c8   : > { %v2588_v32 = vmul.f32 %v7504_v34, %v2556_v2  ;;  %v2557_v62 = vmax.f32 %v2509_v50, 0.0  ;;  %v5175_v20 = vpop.f32.mrb[160].mxu0  ;;  %v2646_v7 = vpack.c.bf16 %v2637_v14, %v2636_v58 }
 0x2c9   : > { %v5176_v10 = vpop.f32.mrb[161].mxu0 }
 0x2ca   : > { %v2589_v39 = vmul.f32 %v7504_v34, %v2557_v62  ;;  %v5177_v19 = vadd.f32 %v5176_v10, %v5175_v20  ;;  %v5178_v13 = vpop.f32.mrb[162].mxu0  ;;  %v2620_v48 = vadd.f32 %v7510_v54, %v2588_v32 }
 0x2cb   : > { %v5179_v27 = vpop.f32.mrb[163].mxu0 }
 0x2cc   : > { %v2621_v41 = vadd.f32 %v7510_v54, %v2589_v39  ;;  %v2514_v25 = vadd.f32 %v5177_v19, %v7485_v29  ;;  %v5180_v18 = vadd.f32 %v5179_v27, %v5178_v13 }
 0x2ce   : > { %v2558_v24 = vmax.f32 %v2514_v25, 0.0  ;;  %v2517_v46 = vadd.f32 %v5180_v18, %v7487_v26  ;;  %v2638_v60 = vmax.f32 %v2620_v48, %v2621_v41 }
 0x2d0   : > { %v2590_v9 = vmul.f32 %v7504_v34, %v2558_v24  ;;  %v2559_v17 = vmax.f32 %v2517_v46, 0.0  ;;  %v5181_v5 = vpop.f32.mrb[164].mxu0  ;;  %v2652_v57 = vpack.c.bf16 %v2638_v60, %v2637_v14 }
 0x2d1   : > { %v5182_v23 = vpop.f32.mrb[165].mxu0 }
 0x2d2   : > { %v2591_v51 = vmul.f32 %v7504_v34, %v2559_v17  ;;  %v5183_v38 = vadd.f32 %v5182_v23, %v5181_v5  ;;  %v5184_v15 = vpop.f32.mrb[166].mxu0  ;;  %2916 = vmatprep.mubr.bf16.mxu1 %v2652_v57  ;;  %v2622_v29 = vadd.f32 %v7510_v54, %v2590_v9 }
 0x2d3   : > { %v5185_v16 = vpop.f32.mrb[167].mxu0  ;;  %2917 = vmatmul.mubr.bf16.gmra.mrb[136].mxu1 %v2646_v7 }
 0x2d4   : > { %v2623_v31 = vadd.f32 %v7510_v54, %v2591_v51  ;;  %v2522_v26 = vadd.f32 %v5183_v38, %v7491_v8  ;;  %v5186_v40 = vadd.f32 %v5185_v16, %v5184_v15 }
 0x2d6   : > { %v2560_v36 = vmax.f32 %v2522_v26, 0.0  ;;  %v2525_v43 = vadd.f32 %v5186_v40, %v7493_v28  ;;  %v2639_v55 = vmax.f32 %v2622_v29, %v2623_v31  ;;  %v2703_v26 = vld [vmem:[%s8255_s6] sm:$0x7] }
 0x2d8   : > { %v2592_v63 = vmul.f32 %v7504_v34, %v2560_v36  ;;  %v2561_v61 = vmax.f32 %v2525_v43, 0.0  ;;  %v5187_v35 = vpop.f32.mrb[168].mxu0  ;;  %v2647_v58 = vpack.c.bf16 %v2639_v55, %v2638_v60 }
 0x2d9   : > { %v5188_v1 = vpop.f32.mrb[169].mxu0 }
 0x2da   : > { %v2593_v42 = vmul.f32 %v7504_v34, %v2561_v61  ;;  %v5189_v45 = vadd.f32 %v5188_v1, %v5187_v35  ;;  %v5190_v53 = vpop.f32.mrb[170].mxu0  ;;  %v2624_v22 = vadd.f32 %v7510_v54, %v2592_v63  ;;  %v2707_v63 = vrot.slane %v2703_v26, %v8336_v0 }
 0x2db   : > { %v5191_v3 = vpop.f32.mrb[171].mxu0 }
 0x2dc   : > { %v2625_v8 = vadd.f32 %v7510_v54, %v2593_v42  ;;  %v2530_v4 = vadd.f32 %v5189_v45, %v7497_v44  ;;  %v5192_v49 = vadd.f32 %v5191_v3, %v5190_v53  ;;  %v7636_v42 = vrot.slane %v2703_v26, %v8337_v6 }
 0x2de   : > { %v2562_v28 = vmax.f32 %v2530_v4, 0.0  ;;  %v2533_v11 = vadd.f32 %v5192_v49, %v7499_v30  ;;  %v2640_v47 = vmax.f32 %v2624_v22, %v2625_v8 }
 0x2e0   : > { %v2594_v37 = vmul.f32 %v7504_v34, %v2562_v28  ;;  %v2563_v52 = vmax.f32 %v2533_v11, 0.0  ;;  %v2653_v33 = vpack.c.bf16 %v2640_v47, %v2639_v55  ;;  %v7639_v11 = vrot.slane %v2703_v26, %v8338_v56 }
 0x2e2   : > { %v2595_v2 = vmul.f32 %v7504_v34, %v2563_v52  ;;  %2924 = vmatprep.mubr.bf16.mxu1 %v2653_v33  ;;  %v2626_v50 = vadd.f32 %v7510_v54, %v2594_v37 }
 0x2e3   : > { %2925 = vmatmul.mubr.bf16.gmra.mrb[140].mxu1 %v2647_v58 }
 0x2e4   : > { %v2627_v14 = vadd.f32 %v7510_v54, %v2595_v2  ;;  %5492 = vmatprep.mubr.bf16.mxu1 %v7543_v12 }
 0x2e6   : > { %v2641_v44 = vmax.f32 %v2626_v50, %v2627_v14 }
 0x2e8   : > { %v2654_v32 = vpack.c.bf16 %v2641_v44, %v2640_v47 }
 0x2eb   : > { %5493 = vmatmul.mubr.bf16.vlgmr.msra.gmra.mrb[144].mxu1 %v7570_v59 }
 0x2ec   : > { %5496 = vmatprep.mubr.bf16.mxu1 %v7588_v21 }
 0x2f3   : > { %5497 = vmatmul.mubr.bf16.gmra.mrb[148].mxu1 %v2646_v7 }
 0x2f4   : > { %5500 = vmatprep.mubr.bf16.mxu1 %v2647_v58 }
 0x2fb   : > { %5501 = vmatmul.mubr.bf16.gmra.mrb[152].mxu1 %v2654_v32 }
 0x366   : > { %v5209_v30 = vpop.f32.mrb[120].mxu1 }
 0x367   : > { %v5210_v62 = vpop.f32.mrb[121].mxu1 }
 0x368   : > { %v5211_v34 = vadd.f32 %v5210_v62, %v5209_v30  ;;  %v5212_v20 = vpop.f32.mrb[122].mxu1 }
 0x369   : > { %v5213_v10 = vpop.f32.mrb[123].mxu1 }
 0x36a   : > { %v5214_v39 = vadd.f32 %v5213_v10, %v5212_v20  ;;  %v2887_v58 = vadd.f32 %v5211_v34, %v2707_v63 }
 0x36c   : > { %v2890_v8 = vadd.f32 %v5214_v39, %v2707_v63 }
 0x376   : > { %v5215_v19 = vpop.f32.mrb[124].mxu1 }
 0x377   : > { %v5216_v13 = vpop.f32.mrb[125].mxu1 }
 0x378   : > { %v5217_v54 = vadd.f32 %v5216_v13, %v5215_v19  ;;  %v5218_v27 = vpop.f32.mrb[126].mxu1 }
 0x379   : > { %v5219_v12 = vpop.f32.mrb[127].mxu1 }
 0x37a   : > { %v5220_v48 = vadd.f32 %v5219_v12, %v5218_v27  ;;  %v2895_v61 = vadd.f32 %v5217_v54, %v2707_v63 }
 0x37c   : > { %v2898_v53 = vadd.f32 %v5220_v48, %v2707_v63 }
 0x386   : > { %v5221_v41 = vpop.f32.mrb[128].mxu1 }
 0x387   : > { %v5222_v25 = vpop.f32.mrb[129].mxu1 }
 0x388   : > { %v5223_v59 = vadd.f32 %v5222_v25, %v5221_v41  ;;  %v5224_v18 = vpop.f32.mrb[130].mxu1 }
 0x389   : > { %v5225_v21 = vpop.f32.mrb[131].mxu1 }
 0x38a   : > { %v5226_v7 = vadd.f32 %v5225_v21, %v5224_v18  ;;  %v2903_v62 = vadd.f32 %v5223_v59, %v2707_v63 }
 0x38c   : > { %v2906_v27 = vadd.f32 %v5226_v7, %v2707_v63 }
 0x396   : > { %v5227_v24 = vpop.f32.mrb[132].mxu1 }
 0x397   : > { %v5228_v46 = vpop.f32.mrb[133].mxu1 }
 0x398   : > { %v5229_v60 = vadd.f32 %v5228_v46, %v5227_v24  ;;  %v5230_v9 = vpop.f32.mrb[134].mxu1 }
 0x399   : > { %v5231_v17 = vpop.f32.mrb[135].mxu1 }
 0x39a   : > { %v5232_v5 = vadd.f32 %v5231_v17, %v5230_v9  ;;  %v2911_v14 = vadd.f32 %v5229_v60, %v2707_v63 }
 0x39c   : > { %v2914_v39 = vadd.f32 %v5232_v5, %v2707_v63 }
 0x3a6   : > { %v5233_v57 = vpop.f32.mrb[136].mxu1 }
 0x3a7   : > { %v5234_v23 = vpop.f32.mrb[137].mxu1 }
 0x3a8   : > { %v7627_v51 = vadd.f32 %v5234_v23, %v5233_v57  ;;  %v5236_v38 = vpop.f32.mrb[138].mxu1 }
 0x3a9   : > { %v5237_v15 = vpop.f32.mrb[139].mxu1 }
 0x3aa   : > { %v7629_v16 = vadd.f32 %v5237_v15, %v5236_v38  ;;  %v2919_v38 = vadd.f32 %v7627_v51, %v2707_v63 }
 0x3b6   : > { %v5239_v29 = vpop.f32.mrb[140].mxu1 }
 0x3b7   : > { %v5240_v31 = vpop.f32.mrb[141].mxu1 }
 0x3b8   : > { %v5241_v40 = vadd.f32 %v5240_v31, %v5239_v29  ;;  %v5242_v36 = vpop.f32.mrb[142].mxu1 }
 0x3b9   : > { %v5243_v43 = vpop.f32.mrb[143].mxu1 }
 0x3ba   : > { %v5244_v55 = vadd.f32 %v5243_v43, %v5242_v36  ;;  %v2927_v5 = vadd.f32 %v5241_v40, %v2707_v63  ;;  %v2922_v40 = vadd.f32 %v7629_v16, %v2707_v63 }
 0x3bc   : > { %v2930_v36 = vadd.f32 %v5244_v55, %v2707_v63 }
 0x3be   : > { %v5494_v35 = vpop.f32.mrb[144].mxu1 }
 0x3bf   : > { %v2976_v1 = vadd.f32 %v5494_v35, %v2895_v61  ;;  %v2967_v45 = vpop.f32.mrb[145].mxu1 }
 0x3c0   : > { %v2968_v3 = vadd.f32 %v2967_v45, %v2887_v58  ;;  %v5495_v22 = vpop.f32.mrb[146].mxu1 }
 0x3c1   : > { %v3016_v4 = vmax.f32 %v2976_v1, 0.0  ;;  %v2979_v49 = vadd.f32 %v5495_v22, %v2898_v53  ;;  %v2970_v28 = vpop.f32.mrb[147].mxu1 }
 0x3c2   : > { %v3014_v47 = vmax.f32 %v2968_v3, 0.0  ;;  %v2971_v37 = vadd.f32 %v2970_v28, %v2890_v8 }
 0x3c3   : > { %v3032_v52 = vmul.f32 %v7636_v42, %v3016_v4  ;;  %v3017_v33 = vmax.f32 %v2979_v49, 0.0 }
 0x3c4   : > { %v3030_v2 = vmul.f32 %v7636_v42, %v3014_v47  ;;  %v3015_v6 = vmax.f32 %v2971_v37, 0.0 }
 0x3c5   : > { %v3033_v50 = vmul.f32 %v7636_v42, %v3017_v33  ;;  %v3048_v56 = vadd.f32 %v7639_v11, %v3032_v52 }
 0x3c6   : > { %v7645_v44 = vadd.f32 %v7639_v11, %v3030_v2  ;;  %v3031_v32 = vmul.f32 %v7636_v42, %v3015_v6  ;;  %v5498_v30 = vpop.f32.mrb[148].mxu1 }
 0x3c7   : > { %v3049_v34 = vadd.f32 %v7639_v11, %v3033_v50  ;;  %v2992_v20 = vadd.f32 %v5498_v30, %v2911_v14  ;;  %v2983_v10 = vpop.f32.mrb[149].mxu1 }
 0x3c8   : > { %v3047_v19 = vadd.f32 %v7639_v11, %v3031_v32  ;;  %v2984_v13 = vadd.f32 %v2983_v10, %v2903_v62  ;;  %v5499_v54 = vpop.f32.mrb[150].mxu1  ;;  %v5957_v10 = vmov 0  }
 0x3c9   : > { %v3020_v12 = vmax.f32 %v2992_v20, 0.0  ;;  %v2995_v48 = vadd.f32 %v5499_v54, %v2914_v39  ;;  %v2986_v41 = vpop.f32.mrb[151].mxu1  ;;  %v3059_v25 = vmax.f32 %v3048_v56, %v3049_v34  ;;  %v5798_v34 = vld [vmem:[%s8256_s7 + $0x8] ss:$12 sps:$4 sm:$0xff]   ;;  %v3280_v20 = vld [vmem:[%s8257_s8 + $0x80] sm:$0xff] }
 0x3ca   : > { %v3018_v18 = vmax.f32 %v2984_v13, 0.0  ;;  %v2987_v21 = vadd.f32 %v2986_v41, %v2906_v27  ;;  %v3058_v59 = vmax.f32 %v7645_v44, %v3047_v19  ;;  %5520 = vmatprep.mubr.bf16.mxu0 %v5798_v34  ;;  %v3281_v39 = vld [vmem:[%s8257_s8 + $0x88] sm:$0xff]  ;;  %v3264_v19 = vld [vmem:[%s8257_s8] sm:$0xff]  ;;  %v3282_v54 = vld [vmem:[%s8257_s8 + $0x90] sm:$0xff] }
 0x3cb   : > { %v3036_v24 = vmul.f32 %v7636_v42, %v3020_v12  ;;  %v3021_v46 = vmax.f32 %v2995_v48, 0.0  ;;  %v3265_v13 = vld [vmem:[%s8257_s8 + $0x8] sm:$0xff]  ;;  %v3283_v27 = vld [vmem:[%s8257_s8 + $0x98] sm:$0xff]  ;;  %v3266_v12 = vld [vmem:[%s8257_s8 + $0x10] sm:$0xff] }
 0x3cc   : > { %v3034_v60 = vmul.f32 %v7636_v42, %v3018_v18  ;;  %v3019_v9 = vmax.f32 %v2987_v21, 0.0  ;;  %v3267_v48 = vld [vmem:[%s8257_s8 + $0x18] sm:$0xff]  ;;  %v3284_v41 = vld [vmem:[%s8257_s8 + $0xa0] sm:$0xff]  ;;  %v3269_v21 = vld [vmem:[%s8257_s8 + $0x28] sm:$0xff] }
 0x3cd   : > { %v3037_v17 = vmul.f32 %v7636_v42, %v3021_v46  ;;  %v3052_v15 = vadd.f32 %v7639_v11, %v3036_v24  ;;  %v3268_v18 = vld [vmem:[%s8257_s8 + $0x20] sm:$0xff] }
 0x3ce   : > { %v3050_v57 = vadd.f32 %v7639_v11, %v3034_v60  ;;  %v3035_v7 = vmul.f32 %v7636_v42, %v3019_v9  ;;  %v5502_v23 = vpop.f32.mrb[152].mxu1 }
 0x3cf   : > { %v3053_v29 = vadd.f32 %v7639_v11, %v3037_v17  ;;  %v3008_v31 = vadd.f32 %v5502_v23, %v2927_v5  ;;  %v2999_v26 = vpop.f32.mrb[153].mxu1  ;;  %v3270_v23 = vld [vmem:[%s8257_s8 + $0x30] sm:$0xff] }
 0x3d0   : > { %v3051_v43 = vadd.f32 %v7639_v11, %v3035_v7  ;;  %v3000_v61 = vadd.f32 %v2999_v26, %v2919_v38  ;;  %v5503_v35 = vpop.f32.mrb[154].mxu1  ;;  %v3287_v7 = vld [vmem:[%s8257_s8 + $0xb8] sm:$0xff] }
 0x3d1   : > { %v3024_v58 = vmax.f32 %v3008_v31, 0.0  ;;  %v3011_v1 = vadd.f32 %v5503_v35, %v2930_v36  ;;  %v3002_v45 = vpop.f32.mrb[155].mxu1  ;;  %v3061_v53 = vmax.f32 %v3052_v15, %v3053_v29  ;;  %v3271_v36 = vld [vmem:[%s8257_s8 + $0x38] sm:$0xff] }
 0x3d2   : > { %v3022_v3 = vmax.f32 %v3000_v61, 0.0  ;;  %v3003_v22 = vadd.f32 %v3002_v45, %v2922_v40  ;;  %v3060_v51 = vmax.f32 %v3050_v57, %v3051_v43  ;;  %v3288_v43 = vld [vmem:[%s8257_s8 + $0xc0] sm:$0xff] }
 0x3d3   : > { %v3040_v8 = vmul.f32 %v7636_v42, %v3024_v58  ;;  %v3025_v4 = vmax.f32 %v3011_v1, 0.0  ;;  %v5634_v49 = vpack.i.bf16 %v3059_v25, %v3061_v53  ;;  %v3285_v25 = vld [vmem:[%s8257_s8 + $0xa8] sm:$0xff] }
 0x3d4   : > { %v3038_v28 = vmul.f32 %v7636_v42, %v3022_v3  ;;  %v3023_v55 = vmax.f32 %v3003_v22, 0.0  ;;  %v3289_v53 = vld [vmem:[%s8257_s8 + $0xc8] sm:$0xff]  ;;  %v3272_v3 = vld [vmem:[%s8257_s8 + $0x40] sm:$0xff] }
 0x3d5   : > { %v3041_v47 = vmul.f32 %v7636_v42, %v3025_v4  ;;  %5635 = vrot.lane.b32.xlu0 %v5634_v49, %s5956_s16  ;;  %v3056_v37 = vadd.f32 %v7639_v11, %v3040_v8 }
 0x3d6   : > { %v3054_v16 = vadd.f32 %v7639_v11, %v3038_v28  ;;  %v3039_v63 = vmul.f32 %v7636_v42, %v3023_v55  ;;  %v3273_v28 = vld [vmem:[%s8257_s8 + $0x48] sm:$0xff]  ;;  %v3290_v55 = vld [vmem:[%s8257_s8 + $0xd0] sm:$0xff] }
 0x3d7   : > { %v3057_v52 = vadd.f32 %v7639_v11, %v3041_v47 }
 0x3d8   : > { %v3055_v33 = vadd.f32 %v7639_v11, %v3039_v63  ;;  %v5797_v11 = vld [vmem:[%s8256_s7 + $0x4] ss:$12 sps:$4 sm:$0xff]  }
 0x3d9   : > { %v3063_v2 = vmax.f32 %v3056_v37, %v3057_v52  ;;  %3744 = vmatprep.mubr.bf16.mxu1 %v5797_v11 }
 0x3da   : > { %v3062_v6 = vmax.f32 %v3054_v16, %v3055_v33 }
 0x3db   : > { %3073 = vrot.lane.b32.xlu1 %v3063_v2, %s5956_s16  ;;  %v3291_v2 = vld [vmem:[%s8257_s8 + $0xd8] sm:$0xff]  ;;  %s4627_s16 = sshll.u32 %s488_s24, 4  ;;  %s8209_s16 = int_to_ptr.vmem [resolvable:$true] %s4627_s16 }
 0x3dc   : > { %s5891_s27 = scalar_lea.vmem %s8209_s16, 16  ;;  %p5898_p0 = scmp.lt.s32.totalorder %s8209_s16, %s5896_s22 }
 0x3dd   : > { %p5892_p11 = scmp.ne.s32.totalorder %s8209_s16, %s5891_s27  ;;  %p5899_p1 = scmp.lt.s32.totalorder %s5897_s25, %s5891_s27 }
 0x3df   : > { %p5893_p12 = pnand %p5892_p11, %p6081_p5  ;;  %p5900_p2 = por %p5899_p1, %p5898_p0 }
 0x3e1   : > { %p5894_p13 = pneg %p5893_p12 }
 0x3e3   : > { %p5901_p3 = pnand %p5900_p2, %p5894_p13 }
 0x447   : > { %v5636_v50 = vpop.permute.xlu0 %5635 }
 0x448   : > { %v5638_v14 = vunpack.i.h.bf16 %v5636_v50  ;;  %v5637_v44 = vunpack.i.l.bf16 %v5636_v50 }
 0x44a   : > { %v3077_v32 = vsel %vm3076_vm1, %v3058_v59, %v5638_v14  ;;  %v3078_v30 = vsel %vm3076_vm1, %v3060_v51, %v5637_v44  ;;  %v3286_v59 = vld [vmem:[%s8257_s8 + $0xb0] sm:$0xff] }
 0x44b   : > { %v5639_v62 = vpack.i.bf16 %v3077_v32, %v3078_v30 }
 0x44d   : > { %v3074_v56 = vpop.permute.xlu1 %3073  ;;  %5640 = vxpose.xlu0.b32.start.end [1/1] (short) %v5639_v62, 128  ;;  %v3275_v62 = vld [vmem:[%s8257_s8 + $0x58] sm:$0xff] }
 0x44e   : > { %v3079_v42 = vsel %vm3076_vm1, %v3062_v6, %v3074_v56  ;;  %v3274_v6 = vld [vmem:[%s8257_s8 + $0x50] sm:$0xff]  ;;  %v3292_v56 = vld [vmem:[%s8257_s8 + $0xe0] sm:$0xff] }
 0x44f   : > { %3144 = vxpose.xlu1.b32.start.end [1/1] (short) %v3079_v42, 128 }
 0x46d   : > { %5722 = vset.pattern.permute.xlu1 %v5957_v10 }
 0x476   : > { %5721 = vset.pattern.permute.xlu0 %v5957_v10 }
 0x4a9   : > { %3383 = vperm.xlu1 %5722, %v3281_v39  }
 0x4ad   : > { %3303 = vperm.xlu1 %5722, %v3265_v13   ;;  %v3276_v13 = vld [vmem:[%s8257_s8 + $0x60] sm:$0xff] }
 0x4b1   : > { %3393 = vperm.xlu1 %5722, %v3283_v27  }
 0x4b2   : > { %3378 = vperm.xlu0 %5721, %v3280_v20  }
 0x4b5   : > { %3313 = vperm.xlu1 %5722, %v3267_v48  }
 0x4b6   : > { %3298 = vperm.xlu0 %5721, %v3264_v19   ;;  %v3293_v19 = vld [vmem:[%s8257_s8 + $0xe8] sm:$0xff] }
 0x4b9   : > { %3403 = vperm.xlu1 %5722, %v3285_v25   ;;  %v3277_v25 = vld [vmem:[%s8257_s8 + $0x68] sm:$0xff] }
 0x4ba   : > { %3388 = vperm.xlu0 %5721, %v3282_v54  }
 0x4bd   : > { %3323 = vperm.xlu1 %5722, %v3269_v21  }
 0x4be   : > { %3308 = vperm.xlu0 %5721, %v3266_v12  }
 0x4c1   : > { %3413 = vperm.xlu1 %5722, %v3287_v7  }
 0x4c2   : > { %3398 = vperm.xlu0 %5721, %v3284_v41  }
 0x4c5   : > { %3333 = vperm.xlu1 %5722, %v3271_v36  }
 0x4c6   : > { %3318 = vperm.xlu0 %5721, %v3268_v18   ;;  %v3294_v18 = vld [vmem:[%s8257_s8 + $0xf0] sm:$0xff] }
 0x4c9   : > { %3423 = vperm.xlu1 %5722, %v3289_v53  }
 0x4ca   : > { %3408 = vperm.xlu0 %5721, %v3286_v59  }
 0x4cd   : > { %v5641_v24 = vpop.trf.xlu0  ;;  %3343 = vperm.xlu1 %5722, %v3273_v28  }
 0x4ce   : > { %v5645_v60 = vunpack.i.h.bf16 %v5641_v24  ;;  %v5642_v9 = vunpack.i.l.bf16 %v5641_v24  ;;  %3328 = vperm.xlu0 %5721, %v3270_v23  }
 0x4cf   : > { %v3160_v46 = vpop.trf.xlu1 }
 0x4d1   : > { %v5646_v17 = vpop.trf.xlu0  ;;  %3433 = vperm.xlu1 %5722, %v3291_v2  }
 0x4d2   : > { %v5650_v5 = vunpack.i.h.bf16 %v5646_v17  ;;  %v5647_v57 = vunpack.i.l.bf16 %v5646_v17  ;;  %3418 = vperm.xlu0 %5721, %v3288_v43   ;;  %v3295_v17 = vld [vmem:[%s8257_s8 + $0xf8] sm:$0xff] }
 0x4d3   : > { %v3161_v38 = vpop.trf.xlu1 }
 0x4d4   : > { %v3184_v15 = vpack.c.bf16 %v5647_v57, %v5642_v9  ;;  %v3192_v29 = vpack.c.bf16 %v3161_v38, %v3160_v46  ;;  %v3176_v31 = vpack.c.bf16 %v5650_v5, %v5645_v60  ;;  %v3278_v5 = vld [vmem:[%s8257_s8 + $0x70] sm:$0xff] }
 0x4d5   : > { %v5651_v26 = vpop.trf.xlu0  ;;  %3353 = vperm.xlu1 %5722, %v3275_v62  }
 0x4d6   : > { %5259 = vmatprep.subr.bf16.mxu1 %v3184_v15  ;;  %5504 = vmatprep.subr.bf16.mxu0 %v3192_v29  ;;  %v5655_v35 = vunpack.i.h.bf16 %v5651_v26  ;;  %v5652_v40 = vunpack.i.l.bf16 %v5651_v26 }
 0x4d7   : > { %5260 = vmatpush3.bf16.msra.mxu1 %v3176_v31  ;;  %v3162_v61 = vpop.trf.xlu1  ;;  %5505 = vmatpush3.bf16.msra.mxu0 %v3192_v29  ;;  %v3279_v29 = vld [vmem:[%s8257_s8 + $0x78] sm:$0xff]  ;;  %v4098_v31 = vld [vmem:[%s8259_s10] sm:$0xff] }
 0x4d8   : > { %3338 = vperm.xlu0 %5721, %v3272_v3  }
 0x4d9   : > { %v5656_v58 = vpop.trf.xlu0  ;;  %3443 = vperm.xlu1 %5722, %v3293_v19  }
 0x4da   : > { %v5660_v1 = vunpack.i.h.bf16 %v5656_v58  ;;  %v5657_v45 = vunpack.i.l.bf16 %v5656_v58  ;;  %v4099_v58 = vld [vmem:[%s8259_s10 + $0x8] sm:$0xff] }
 0x4db   : > { %v3163_v22 = vpop.trf.xlu1 }
 0x4dc   : > { %v3185_v51 = vpack.c.bf16 %v5657_v45, %v5652_v40  ;;  %v3193_v8 = vpack.c.bf16 %v3163_v22, %v3162_v61  ;;  %v3177_v4 = vpack.c.bf16 %v5660_v1, %v5655_v35  ;;  %3428 = vperm.xlu0 %5721, %v3290_v55   ;;  %v4100_v1 = vld [vmem:[%s8259_s10 + $0x10] sm:$0xff] }
 0x4dd   : > { %v5661_v49 = vpop.trf.xlu0  ;;  %3363 = vperm.xlu1 %5722, %v3277_v25   ;;  %v5800_v25 = vld [vmem:[%s8256_s7 + $0x1c] ss:$12 sps:$4 sm:$0xff]  }
 0x4de   : > { %5261 = vmatprep.subr.bf16.mxu1 %v3185_v51  ;;  %5506 = vmatprep.subr.bf16.mxu0 %v3193_v8  ;;  %v5665_v16 = vunpack.i.h.bf16 %v5661_v49  ;;  %v5662_v63 = vunpack.i.l.bf16 %v5661_v49 }
 0x4df   : > { %5262 = vmatpush3.bf16.msra.mxu1 %v3177_v4  ;;  %v3164_v47 = vpop.trf.xlu1  ;;  %5507 = vmatpush3.bf16.msra.mxu0 %v3193_v8  ;;  %v4101_v8 = vld [vmem:[%s8259_s10 + $0x18] sm:$0xff]  ;;  %v4102_v4 = vld [vmem:[%s8259_s10 + $0x20] sm:$0xff] }
 0x4e0   : > { %3348 = vperm.xlu0 %5721, %v3274_v6  }
 0x4e1   : > { %v5666_v37 = vpop.trf.xlu0  ;;  %3453 = vperm.xlu1 %5722, %v3295_v17   ;;  %v5803_v17 = vld [vmem:[%s8256_s7 + $0x34] ss:$12 sps:$4 sm:$0xff]  }
 0x4e2   : > { %v5670_v52 = vunpack.i.h.bf16 %v5666_v37  ;;  %v5667_v33 = vunpack.i.l.bf16 %v5666_v37  ;;  %v4103_v37 = vld [vmem:[%s8259_s10 + $0x28] sm:$0xff] }
 0x4e3   : > { %v3165_v50 = vpop.trf.xlu1 }
 0x4e4   : > { %v3186_v14 = vpack.c.bf16 %v5667_v33, %v5662_v63  ;;  %v3194_v44 = vpack.c.bf16 %v3165_v50, %v3164_v47  ;;  %v3178_v32 = vpack.c.bf16 %v5670_v52, %v5665_v16  ;;  %3438 = vperm.xlu0 %5721, %v3292_v56   ;;  %v4104_v52 = vld [vmem:[%s8259_s10 + $0x30] sm:$0xff] }
 0x4e5   : > { %v5671_v30 = vpop.trf.xlu0  ;;  %3373 = vperm.xlu1 %5722, %v3279_v29   ;;  %v5815_v29 = vld [vmem:[%s8256_s7 + $0x80] ss:$12 sps:$4 sm:$0xff]  }
 0x4e6   : > { %5263 = vmatprep.subr.bf16.mxu1 %v3186_v14  ;;  %5508 = vmatprep.subr.bf16.mxu0 %v3194_v44  ;;  %v5675_v11 = vunpack.i.h.bf16 %v5671_v30  ;;  %v5672_v34 = vunpack.i.l.bf16 %v5671_v30 }
 0x4e7   : > { %5264 = vmatpush3.bf16.msra.mxu1 %v3178_v32  ;;  %v3166_v42 = vpop.trf.xlu1  ;;  %5509 = vmatpush3.bf16.msra.mxu0 %v3194_v44  ;;  %v4105_v44 = vld [vmem:[%s8259_s10 + $0x38] sm:$0xff]  ;;  %v4106_v32 = vld [vmem:[%s8259_s10 + $0x40] sm:$0xff] }
 0x4e8   : > { %3358 = vperm.xlu0 %5721, %v3276_v13  }
 0x4e9   : > { %v5676_v20 = vpop.trf.xlu0  ;;  %4121 = vperm.xlu1 %5722, %v4099_v58   ;;  %v5823_v58 = vld [vmem:[%s8256_s7 + $0xb0] ss:$12 sps:$4 sm:$0xff]  }
 0x4ea   : > { %v5680_v10 = vunpack.i.h.bf16 %v5676_v20  ;;  %v5677_v39 = vunpack.i.l.bf16 %v5676_v20  ;;  %v4107_v20 = vld [vmem:[%s8259_s10 + $0x48] sm:$0xff] }
 0x4eb   : > { %v3167_v54 = vpop.trf.xlu1 }
 0x4ec   : > { %v3187_v27 = vpack.c.bf16 %v5677_v39, %v5672_v34  ;;  %v3195_v12 = vpack.c.bf16 %v3167_v54, %v3166_v42  ;;  %v3179_v48 = vpack.c.bf16 %v5680_v10, %v5675_v11  ;;  %3448 = vperm.xlu0 %5721, %v3294_v18   ;;  %v4108_v10 = vld [vmem:[%s8259_s10 + $0x50] sm:$0xff]  ;;  %v5806_v18 = vld [vmem:[%s8256_s7 + $0x38] ss:$12 sps:$4 sm:$0xff]  }
 0x4ed   : > { %v5681_v41 = vpop.trf.xlu0  ;;  %4131 = vperm.xlu1 %5722, %v4101_v8   ;;  %v5818_v8 = vld [vmem:[%s8256_s7 + $0x78] ss:$12 sps:$4 sm:$0xff]  }
 0x4ee   : > { %5265 = vmatprep.subr.bf16.mxu1 %v3187_v27  ;;  %5510 = vmatprep.subr.bf16.mxu0 %v3195_v12  ;;  %v5685_v59 = vunpack.i.h.bf16 %v5681_v41  ;;  %v5682_v24 = vunpack.i.l.bf16 %v5681_v41  ;;  %v4109_v27 = vld [vmem:[%s8259_s10 + $0x58] sm:$0xff]  ;;  %v5799_v41 = vld [vmem:[%s8256_s7 + $0x20] ss:$12 sps:$4 sm:$0xff]  }
 0x4ef   : > { %5266 = vmatpush3.bf16.msra.mxu1 %v3179_v48  ;;  %v3168_v21 = vpop.trf.xlu1  ;;  %5511 = vmatpush3.bf16.msra.mxu0 %v3195_v12  ;;  %v4110_v12 = vld [vmem:[%s8259_s10 + $0x60] sm:$0xff] }
 0x4f0   : > { %3368 = vperm.xlu0 %5721, %v3278_v5   ;;  %v5795_v48 = vld [vmem:[%s8256_s7] ss:$12 sps:$4 sm:$0xff]   ;;  %v5814_v5 = vld [vmem:[%s8256_s7 + $0x68] ss:$12 sps:$4 sm:$0xff]  }
 0x4f1   : > { %v5686_v46 = vpop.trf.xlu0  ;;  %4141 = vperm.xlu1 %5722, %v4103_v37   ;;  %v5826_v37 = vld [vmem:[%s8256_s7 + $0xa8] ss:$12 sps:$4 sm:$0xff]  }
 0x4f2   : > { %v5690_v60 = vunpack.i.h.bf16 %v5686_v46  ;;  %v5687_v9 = vunpack.i.l.bf16 %v5686_v46  ;;  %v4403_v46 = vld [vmem:[%s8261_s12] sm:$0xff] }
 0x4f3   : > { %v3169_v57 = vpop.trf.xlu1 }
 0x4f4   : > { %v3188_v7 = vpack.c.bf16 %v5687_v9, %v5682_v24  ;;  %v3196_v23 = vpack.c.bf16 %v3169_v57, %v3168_v21  ;;  %v3180_v38 = vpack.c.bf16 %v5690_v60, %v5685_v59  ;;  %4116 = vperm.xlu0 %5721, %v4098_v31   ;;  %v4111_v21 = vld [vmem:[%s8259_s10 + $0x68] sm:$0xff]  ;;  %v4112_v59 = vld [vmem:[%s8259_s10 + $0x70] sm:$0xff]  ;;  %v4113_v24 = vld [vmem:[%s8259_s10 + $0x78] sm:$0xff] }
 0x4f5   : > { %v5691_v15 = vpop.trf.xlu0  ;;  %4151 = vperm.xlu1 %5722, %v4105_v44   ;;  %v5802_v60 = vld [vmem:[%s8256_s7 + $0x18] ss:$12 sps:$4 sm:$0xff]   ;;  %v5807_v9 = vld [vmem:[%s8256_s7 + $0x50] ss:$12 sps:$4 sm:$0xff]   ;;  %v4404_v57 = vld [vmem:[%s8261_s12 + $0x8] sm:$0xff] }
 0x4f6   : > { %5267 = vmatprep.subr.bf16.mxu1 %v3188_v7  ;;  %5512 = vmatprep.subr.bf16.mxu0 %v3196_v23  ;;  %v5695_v36 = vunpack.i.h.bf16 %v5691_v15  ;;  %v5692_v43 = vunpack.i.l.bf16 %v5691_v15  ;;  %v4405_v7 = vld [vmem:[%s8261_s12 + $0x10] sm:$0xff]  ;;  %v5808_v31 = vld [vmem:[%s8256_s7 + $0x4c] ss:$12 sps:$4 sm:$0xff]  }
 0x4f7   : > { %5268 = vmatpush3.bf16.msra.mxu1 %v3180_v38  ;;  %v3170_v26 = vpop.trf.xlu1  ;;  %5513 = vmatpush3.bf16.msra.mxu0 %v3196_v23  ;;  %v4406_v23 = vld [vmem:[%s8261_s12 + $0x18] sm:$0xff]  ;;  %v4407_v38 = vld [vmem:[%s8261_s12 + $0x20] sm:$0xff] }
 0x4f8   : > { %4126 = vperm.xlu0 %5721, %v4100_v1   ;;  %v5805_v15 = vld [vmem:[%s8256_s7 + $0x30] ss:$12 sps:$4 sm:$0xff]  }
 0x4f9   : > { %v5696_v61 = vpop.trf.xlu0  ;;  %4161 = vperm.xlu1 %5722, %v4107_v20   ;;  %v5811_v1 = vld [vmem:[%s8256_s7 + $0x64] ss:$12 sps:$4 sm:$0xff]  }
 0x4fa   : > { %v5700_v35 = vunpack.i.h.bf16 %v5696_v61  ;;  %v5697_v40 = vunpack.i.l.bf16 %v5696_v61  ;;  %v4410_v61 = vld [vmem:[%s8261_s12 + $0x38] sm:$0xff] }
 0x4fb   : > { %v3171_v45 = vpop.trf.xlu1  ;;  %v5837_v44 = vld [vmem:[%s8256_s7 + $0xf0] ss:$12 sps:$4 sm:$0xff]  }
 0x4fc   : > { %v3189_v53 = vpack.c.bf16 %v5697_v40, %v5692_v43  ;;  %v3197_v3 = vpack.c.bf16 %v3171_v45, %v3170_v26  ;;  %v3181_v22 = vpack.c.bf16 %v5700_v35, %v5695_v36  ;;  %4136 = vperm.xlu0 %5721, %v4102_v4   ;;  %v5822_v26 = vld [vmem:[%s8256_s7 + $0x98] ss:$12 sps:$4 sm:$0xff]   ;;  %v4408_v36 = vld [vmem:[%s8261_s12 + $0x28] sm:$0xff]  ;;  %v4409_v43 = vld [vmem:[%s8261_s12 + $0x30] sm:$0xff] }
 0x4fd   : > { %v5701_v51 = vpop.trf.xlu0  ;;  %4171 = vperm.xlu1 %5722, %v4109_v27   ;;  %v4553_v35 = vld [vmem:[#allocation2] sm:$0x1]  ;;  %v5810_v40 = vld [vmem:[%s8256_s7 + $0x48] ss:$12 sps:$4 sm:$0xff]   ;;  %v5839_v4 = vld [vmem:[%s8256_s7 + $0x110] ss:$12 sps:$4 sm:$0xff]  }
 0x4fe   : > { %5269 = vmatprep.subr.bf16.mxu1 %v3189_v53  ;;  %5514 = vmatprep.subr.bf16.mxu0 %v3197_v3  ;;  %v5705_v28 = vunpack.i.h.bf16 %v5701_v51  ;;  %v5702_v55 = vunpack.i.l.bf16 %v5701_v51  ;;  %v5830_v45 = vld [vmem:[%s8256_s7 + $0xc8] ss:$12 sps:$4 sm:$0xff]   ;;  %v5813_v53 = vld [vmem:[%s8256_s7 + $0x60] ss:$12 sps:$4 sm:$0xff]   ;;  %v5838_v51 = vld [vmem:[%s8256_s7 + $0xf8] ss:$12 sps:$4 sm:$0xff]  }
 0x4ff   : > { %5270 = vmatpush3.bf16.msra.mxu1 %v3181_v22  ;;  %v3172_v49 = vpop.trf.xlu1  ;;  %5515 = vmatpush3.bf16.msra.mxu0 %v3197_v3  ;;  %v5831_v3 = vld [vmem:[%s8256_s7 + $0xe0] ss:$12 sps:$4 sm:$0xff]   ;;  %v5816_v22 = vld [vmem:[%s8256_s7 + $0x7c] ss:$12 sps:$4 sm:$0xff]  }
 0x500   : > { %4146 = vperm.xlu0 %5721, %v4104_v52   ;;  %v5855_v52 = vld [vmem:[%s8256_s7 + $0x170] ss:$12 sps:$4 sm:$0xff]  }
 0x501   : > { %v5706_v47 = vpop.trf.xlu0  ;;  %4181 = vperm.xlu1 %5722, %v4111_v21   ;;  %v5853_v20 = vld [vmem:[%s8256_s7 + $0x150] ss:$12 sps:$4 sm:$0xff]  }
 0x502   : > { %v5710_v16 = vunpack.i.h.bf16 %v5706_v47  ;;  %v5707_v63 = vunpack.i.l.bf16 %v5706_v47  ;;  %v5847_v47 = vld [vmem:[%s8256_s7 + $0x140] ss:$12 sps:$4 sm:$0xff]  }
 0x503   : > { %v3173_v33 = vpop.trf.xlu1 }
 0x504   : > { %v3190_v2 = vpack.c.bf16 %v5707_v63, %v5702_v55  ;;  %v3198_v6 = vpack.c.bf16 %v3173_v33, %v3172_v49  ;;  %v3182_v50 = vpack.c.bf16 %v5710_v16, %v5705_v28  ;;  %4156 = vperm.xlu0 %5721, %v4106_v32   ;;  %v5819_v49 = vld [vmem:[%s8256_s7 + $0x94] ss:$12 sps:$4 sm:$0xff]   ;;  %v5821_v55 = vld [vmem:[%s8256_s7 + $0x90] ss:$12 sps:$4 sm:$0xff]   ;;  %v5824_v16 = vld [vmem:[%s8256_s7 + $0xac] ss:$12 sps:$4 sm:$0xff]  }
 0x505   : > { %v5711_v14 = vpop.trf.xlu0  ;;  %4191 = vperm.xlu1 %5722, %v4113_v24   ;;  %v5846_v28 = vld [vmem:[%s8256_s7 + $0x128] ss:$12 sps:$4 sm:$0xff]   ;;  %v5854_v63 = vld [vmem:[%s8256_s7 + $0x158] ss:$12 sps:$4 sm:$0xff]  }
 0x506   : > { %5271 = vmatprep.subr.bf16.mxu1 %v3190_v2  ;;  %5516 = vmatprep.subr.bf16.mxu0 %v3198_v6  ;;  %v5715_v62 = vunpack.i.h.bf16 %v5711_v14  ;;  %v5712_v56 = vunpack.i.l.bf16 %v5711_v14  ;;  %v5827_v33 = vld [vmem:[%s8256_s7 + $0xc4] ss:$12 sps:$4 sm:$0xff]   ;;  %v5829_v2 = vld [vmem:[%s8256_s7 + $0xc0] ss:$12 sps:$4 sm:$0xff]  }
 0x507   : > { %5272 = vmatpush3.bf16.msra.mxu1 %v3182_v50  ;;  %v3174_v30 = vpop.trf.xlu1  ;;  %5517 = vmatpush3.bf16.msra.mxu0 %v3198_v6  ;;  %v5832_v6 = vld [vmem:[%s8256_s7 + $0xdc] ss:$12 sps:$4 sm:$0xff]   ;;  %v5834_v50 = vld [vmem:[%s8256_s7 + $0xd8] ss:$12 sps:$4 sm:$0xff]   ;;  %v5835_v14 = vld [vmem:[%s8256_s7 + $0xf4] ss:$12 sps:$4 sm:$0xff]  }
 0x508   : > { %4166 = vperm.xlu0 %5721, %v4108_v10   ;;  %v5840_v32 = vld [vmem:[%s8256_s7 + $0x10c] ss:$12 sps:$4 sm:$0xff]  }
 0x509   : > { %v5716_v42 = vpop.trf.xlu0  ;;  %4418 = vperm.xlu1 %5722, %v4404_v57   ;;  %v5856_v10 = vld [vmem:[%s8256_s7 + $0x16c] ss:$12 sps:$4 sm:$0xff]  }
 0x50a   : > { %v5720_v11 = vunpack.i.h.bf16 %v5716_v42  ;;  %v5717_v34 = vunpack.i.l.bf16 %v5716_v42  ;;  %v5848_v42 = vld [vmem:[%s8256_s7 + $0x13c] ss:$12 sps:$4 sm:$0xff]  }
 0x50b   : > { %v3175_v39 = vpop.trf.xlu1 }
 0x50c   : > { %v3191_v19 = vpack.c.bf16 %v5717_v34, %v5712_v56  ;;  %v3199_v13 = vpack.c.bf16 %v3175_v39, %v3174_v30  ;;  %v3183_v54 = vpack.c.bf16 %v5720_v11, %v5715_v62  ;;  %4176 = vperm.xlu0 %5721, %v4110_v12   ;;  %v5842_v30 = vld [vmem:[%s8256_s7 + $0x108] ss:$12 sps:$4 sm:$0xff]   ;;  %v5843_v62 = vld [vmem:[%s8256_s7 + $0x124] ss:$12 sps:$4 sm:$0xff]   ;;  %v5845_v56 = vld [vmem:[%s8256_s7 + $0x120] ss:$12 sps:$4 sm:$0xff]  }
 0x50d   : > { %4428 = vperm.xlu1 %5722, %v4406_v23   ;;  %v5850_v11 = vld [vmem:[%s8256_s7 + $0x138] ss:$12 sps:$4 sm:$0xff]   ;;  %v5851_v34 = vld [vmem:[%s8256_s7 + $0x154] ss:$12 sps:$4 sm:$0xff]  }
 0x50e   : > { %5273 = vmatprep.subr.bf16.mxu1 %v3191_v19  ;;  %5518 = vmatprep.subr.bf16.mxu0 %v3199_v13  ;;  %v5858_v39 = vld [vmem:[%s8256_s7 + $0x168] ss:$12 sps:$4 sm:$0xff]  }
 0x50f   : > { %5274 = vmatpush3.bf16.msra.mxu1 %v3183_v54  ;;  %5519 = vmatpush3.bf16.msra.mxu0 %v3199_v13 }
 0x510   : > { %4186 = vperm.xlu0 %5721, %v4112_v59  }
 0x511   : > { %4438 = vperm.xlu1 %5722, %v4408_v36  }
 0x512   : > { %3745 = vmatmul.mubr.bf16.vlgmr.msra.gmra.mrb[156].mxu1 %v5795_v48  ;;  %5521 = vmatmul.mubr.bf16.vlgmr.msra.gmra.mrb[172].mxu0 %v5799_v41 }
 0x513   : > { %3752 = vmatprep.mubr.bf16.mxu1 %v5800_v25  ;;  %5524 = vmatprep.mubr.bf16.mxu0 %v5806_v18 }
 0x514   : > { %4413 = vperm.xlu0 %5721, %v4403_v46  }
 0x515   : > { %4448 = vperm.xlu1 %5722, %v4410_v61  }
 0x518   : > { %4423 = vperm.xlu0 %5721, %v4405_v7  }
 0x51a   : > { %3753 = vmatmul.mubr.bf16.gmra.mrb[160].mxu1 %v5802_v60  ;;  %5525 = vmatmul.mubr.bf16.gmra.mrb[176].mxu0 %v5807_v9 }
 0x51b   : > { %3760 = vmatprep.mubr.bf16.mxu1 %v5803_v17  ;;  %5528 = vmatprep.mubr.bf16.mxu0 %v5814_v5 }
 0x51c   : > { %4433 = vperm.xlu0 %5721, %v4407_v38  }
 0x520   : > { %4443 = vperm.xlu0 %5721, %v4409_v43  }
 0x522   : > { %3761 = vmatmul.mubr.bf16.gmra.mrb[164].mxu1 %v5805_v15  ;;  %5529 = vmatmul.mubr.bf16.gmra.mrb[180].mxu0 %v5815_v29 }
 0x523   : > { %3768 = vmatprep.mubr.bf16.mxu1 %v5808_v31  ;;  %5532 = vmatprep.mubr.bf16.mxu0 %v5822_v26 }
 0x524   : > { %4556 = vperm.xlu0 %5721, %v4553_v35  }
 0x528   : > { %v7987_v13 = vpop.permute.xlu1 %3383 }
 0x52a   : > { %3769 = vmatmul.mubr.bf16.gmra.mrb[168].mxu1 %v5810_v40  ;;  %5533 = vmatmul.mubr.bf16.gmra.mrb[184].mxu0 %v5823_v58 }
 0x52b   : > { %3776 = vmatprep.mubr.bf16.mxu1 %v5811_v1  ;;  %5536 = vmatprep.mubr.bf16.mxu0 %v5830_v45  ;;  %v5861_v45 = vld [vmem:[%s8258_s9 + $0x4] ss:$8 sps:$4 sm:$0xff]  }
 0x52c   : > { %v3304_v27 = vpop.permute.xlu1 %3303 }
 0x530   : > { %v7991_v48 = vpop.permute.xlu1 %3393 }
 0x531   : > { %v7985_v19 = vpop.permute.xlu0 %3378 }
 0x532   : > { %3777 = vmatmul.mubr.bf16.gmra.mrb[172].mxu1 %v5813_v53  ;;  %5537 = vmatmul.mubr.bf16.gmra.mrb[188].mxu0 %v5831_v3 }
 0x533   : > { %3784 = vmatprep.mubr.bf16.mxu1 %v5816_v22  ;;  %5540 = vmatprep.mubr.bf16.mxu0 %v5838_v51 }
 0x534   : > { %v3314_v25 = vpop.permute.xlu1 %3313 }
 0x535   : > { %v3299_v54 = vpop.permute.xlu0 %3298 }
 0x538   : > { %v7995_v21 = vpop.permute.xlu1 %3403 }
 0x539   : > { %v7989_v12 = vpop.permute.xlu0 %3388 }
 0x53a   : > { %3785 = vmatmul.mubr.bf16.gmra.mrb[176].mxu1 %v5818_v8  ;;  %5541 = vmatmul.mubr.bf16.gmra.mrb[192].mxu0 %v5839_v4 }
 0x53b   : > { %3792 = vmatprep.mubr.bf16.mxu1 %v5819_v49  ;;  %5544 = vmatprep.mubr.bf16.mxu0 %v5846_v28 }
 0x53c   : > { %v3324_v24 = vpop.permute.xlu1 %3323 }
 0x53d   : > { %v3309_v41 = vpop.permute.xlu0 %3308 }
 0x540   : > { %v7999_v60 = vpop.permute.xlu1 %3413 }
 0x541   : > { %v7993_v18 = vpop.permute.xlu0 %3398 }
 0x542   : > { %3793 = vmatmul.mubr.bf16.gmra.mrb[180].mxu1 %v5821_v55  ;;  %5545 = vmatmul.mubr.bf16.gmra.mrb[196].mxu0 %v5847_v47 }
 0x543   : > { %3800 = vmatprep.mubr.bf16.mxu1 %v5824_v16  ;;  %5548 = vmatprep.mubr.bf16.mxu0 %v5854_v63 }
 0x544   : > { %v8003_v17 = vpop.permute.xlu1 %3333 }
 0x545   : > { %v3319_v59 = vpop.permute.xlu0 %3318 }
 0x548   : > { %v8007_v58 = vpop.permute.xlu1 %3423 }
 0x549   : > { %v7997_v46 = vpop.permute.xlu0 %3408 }
 0x54a   : > { %3801 = vmatmul.mubr.bf16.gmra.mrb[184].mxu1 %v5826_v37  ;;  %5549 = vmatmul.mubr.bf16.gmra.mrb[200].mxu0 %v5855_v52 }
 0x54b   : > { %3808 = vmatprep.mubr.bf16.mxu1 %v5827_v33  ;;  %4306 = vmatprep.mubr.bf16.mxu0 %v5861_v45 }
 0x54d   : > { %v8001_v9 = vpop.permute.xlu0 %3328 }
 0x551   : > { %v8005_v5 = vpop.permute.xlu0 %3418 }
 0x552   : > { %3809 = vmatmul.mubr.bf16.gmra.mrb[188].mxu1 %v5829_v2 }
 0x553   : > { %3816 = vmatprep.mubr.bf16.mxu1 %v5832_v6 }
 0x557   : > { %v8009_v1 = vpop.permute.xlu0 %3338 }
 0x55a   : > { %3817 = vmatmul.mubr.bf16.gmra.mrb[192].mxu1 %v5834_v50  ;;  %v3344_v50 = vpop.permute.xlu1 %3343 }
 0x55b   : > { %3824 = vmatprep.mubr.bf16.mxu1 %v5835_v14  ;;  %v8016_v14 = vpop.permute.xlu0 %3428 }
 0x562   : > { %3825 = vmatmul.mubr.bf16.gmra.mrb[196].mxu1 %v5837_v44 }
 0x563   : > { %3832 = vmatprep.mubr.bf16.mxu1 %v5840_v32 }
 0x56a   : > { %3833 = vmatmul.mubr.bf16.gmra.mrb[200].mxu1 %v5842_v30 }
 0x56b   : > { %3840 = vmatprep.mubr.bf16.mxu1 %v5843_v62 }
 0x572   : > { %3841 = vmatmul.mubr.bf16.gmra.mrb[204].mxu1 %v5845_v56 }
 0x573   : > { %3848 = vmatprep.mubr.bf16.mxu1 %v5848_v42 }
 0x57a   : > { %3849 = vmatmul.mubr.bf16.gmra.mrb[208].mxu1 %v5850_v11 }
 0x57b   : > { %3856 = vmatprep.mubr.bf16.mxu1 %v5851_v34 }
 0x582   : > { %3857 = vmatmul.mubr.bf16.gmra.mrb[212].mxu1 %v5853_v20 }
 0x583   : > { %3864 = vmatprep.mubr.bf16.mxu1 %v5856_v10 }
 0x58a   : > { %3865 = vmatmul.mubr.bf16.gmra.mrb[216].mxu1 %v5858_v39 }
 0x5e5   : > { %v5275_v57 = vpop.f32.mrb[156].mxu1  ;;  %v5522_v7 = vpop.f32.mrb[172].mxu0 }
 0x5e6   : > { %v5276_v23 = vpop.f32.mrb[157].mxu1  ;;  %v3907_v38 = vpop.f32.mrb[173].mxu0 }
 0x5e7   : > { %v5277_v15 = vadd.f32 %v5276_v23, %v5275_v57  ;;  %v5278_v29 = vpop.f32.mrb[158].mxu1  ;;  %v5523_v31 = vpop.f32.mrb[174].mxu0 }
 0x5e8   : > { %v5279_v26 = vpop.f32.mrb[159].mxu1  ;;  %v3910_v36 = vpop.f32.mrb[175].mxu0 }
 0x5e9   : > { %v5280_v43 = vadd.f32 %v5279_v26, %v5278_v29  ;;  %v3747_v61 = vadd.f32 %v5277_v15, %v3299_v54  ;;  %v8024_v23 = vpop.permute.xlu1 %3433 }
 0x5eb   : > { %v3908_v35 = vadd.f32 %v3907_v38, %v3747_v61  ;;  %v3750_v40 = vadd.f32 %v5280_v43, %v3304_v27  ;;  %v3349_v38 = vpop.permute.xlu0 %3348 }
 0x5ed   : > { %v3911_v53 = vadd.f32 %v3910_v36, %v3750_v40  ;;  %v5281_v3 = vpop.f32.mrb[160].mxu1  ;;  %v5526_v22 = vpop.f32.mrb[176].mxu0  ;;  %v4034_v4 = vmax.f32 %v3908_v35, 0.0 }
 0x5ee   : > { %v5282_v51 = vpop.f32.mrb[161].mxu1  ;;  %v3923_v8 = vpop.f32.mrb[177].mxu0 }
 0x5ef   : > { %v4035_v49 = vmax.f32 %v3911_v53, 0.0  ;;  %v5283_v28 = vadd.f32 %v5282_v51, %v5281_v3  ;;  %v5284_v55 = vpop.f32.mrb[162].mxu1  ;;  %v5527_v47 = vpop.f32.mrb[178].mxu0 }
 0x5f0   : > { %v5285_v16 = vpop.f32.mrb[163].mxu1  ;;  %v3926_v63 = vpop.f32.mrb[179].mxu0 }
 0x5f1   : > { %v8014_v37 = vpack.c.bf16 %v4035_v49, %v4034_v4  ;;  %v3755_v52 = vadd.f32 %v5283_v28, %v3309_v41  ;;  %v5286_v33 = vadd.f32 %v5285_v16, %v5284_v55  ;;  %v3354_v49 = vpop.permute.xlu1 %3353  ;;  %v8038_v28 = vpop.permute.xlu0 %3438 }
 0x5f3   : > { %v3916_v2 = vadd.f32 %v5522_v7, %v3755_v52  ;;  %v3758_v6 = vadd.f32 %v5286_v33, %v3314_v25 }
 0x5f5   : > { %v3919_v44 = vadd.f32 %v5523_v31, %v3758_v6  ;;  %v5287_v32 = vpop.f32.mrb[164].mxu1  ;;  %v8018_v30 = vpop.f32.mrb[180].mxu0  ;;  %v4036_v42 = vmax.f32 %v3916_v2, 0.0 }
 0x5f6   : > { %v5288_v62 = vpop.f32.mrb[165].mxu1  ;;  %v3939_v56 = vpop.f32.mrb[181].mxu0 }
 0x5f7   : > { %v4037_v11 = vmax.f32 %v3919_v44, 0.0  ;;  %v5289_v34 = vadd.f32 %v5288_v62, %v5287_v32  ;;  %v5290_v20 = vpop.f32.mrb[166].mxu1  ;;  %v8020_v10 = vpop.f32.mrb[182].mxu0 }
 0x5f8   : > { %v5291_v39 = vpop.f32.mrb[167].mxu1  ;;  %v3942_v54 = vpop.f32.mrb[183].mxu0 }
 0x5f9   : > { %v8022_v27 = vpack.c.bf16 %v4037_v11, %v4036_v42  ;;  %v5292_v41 = vadd.f32 %v5291_v39, %v5290_v20  ;;  %v3763_v25 = vadd.f32 %v5289_v34, %v3319_v59  ;;  %v8051_v20 = vpop.permute.xlu1 %3443  ;;  %v3359_v39 = vpop.permute.xlu0 %3358 }
 0x5fb   : > { %v3924_v57 = vadd.f32 %v3923_v8, %v3763_v25  ;;  %v3766_v7 = vadd.f32 %v5292_v41, %v3324_v24 }
 0x5fd   : > { %v3927_v15 = vadd.f32 %v3926_v63, %v3766_v7  ;;  %v5293_v29 = vpop.f32.mrb[168].mxu1  ;;  %v8026_v31 = vpop.f32.mrb[184].mxu0  ;;  %v4038_v43 = vmax.f32 %v3924_v57, 0.0 }
 0x5fe   : > { %v5294_v26 = vpop.f32.mrb[169].mxu1  ;;  %v8028_v36 = vpop.f32.mrb[185].mxu0 }
 0x5ff   : > { %v4039_v61 = vmax.f32 %v3927_v15, 0.0  ;;  %v5295_v35 = vadd.f32 %v5294_v26, %v5293_v29  ;;  %v5296_v40 = vpop.f32.mrb[170].mxu1  ;;  %v8030_v45 = vpop.f32.mrb[186].mxu0 }
 0x600   : > { %v5297_v53 = vpop.f32.mrb[171].mxu1  ;;  %v8032_v59 = vpop.f32.mrb[187].mxu0 }
 0x601   : > { %v8034_v24 = vpack.c.bf16 %v4039_v61, %v4038_v43  ;;  %v3771_v3 = vadd.f32 %v5295_v35, %v8001_v9  ;;  %v5298_v51 = vadd.f32 %v5297_v53, %v5296_v40 }
 0x603   : > { %v3932_v8 = vadd.f32 %v5526_v22, %v3771_v3  ;;  %v3774_v4 = vadd.f32 %v5298_v51, %v8003_v17  ;;  %v3364_v51 = vpop.permute.xlu1 %3363 }
 0x605   : > { %v3935_v55 = vadd.f32 %v5527_v47, %v3774_v4  ;;  %v5299_v16 = vpop.f32.mrb[172].mxu1  ;;  %v8040_v63 = vpop.f32.mrb[188].mxu0  ;;  %v4040_v2 = vmax.f32 %v3932_v8, 0.0 }
 0x606   : > { %v5300_v52 = vpop.f32.mrb[173].mxu1  ;;  %v8042_v33 = vpop.f32.mrb[189].mxu0 }
 0x607   : > { %v4041_v6 = vmax.f32 %v3935_v55, 0.0  ;;  %v5301_v44 = vadd.f32 %v5300_v52, %v5299_v16  ;;  %v5302_v32 = vpop.f32.mrb[174].mxu1  ;;  %v8044_v62 = vpop.f32.mrb[190].mxu0 }
 0x608   : > { %v5303_v9 = vpop.f32.mrb[175].mxu1  ;;  %v8046_v22 = vpop.f32.mrb[191].mxu0 }
 0x609   : > { %v8048_v17 = vpack.c.bf16 %v4041_v6, %v4040_v2  ;;  %v5304_v42 = vadd.f32 %v5303_v9, %v5302_v32  ;;  %v3779_v47 = vadd.f32 %v5301_v44, %v8009_v1  ;;  %v8064_v8 = vpop.permute.xlu0 %3448 }
 0x60b   : > { %v3940_v11 = vadd.f32 %v3939_v56, %v3779_v47  ;;  %v3782_v34 = vadd.f32 %v5304_v42, %v3344_v50 }
 0x60d   : > { %v3943_v41 = vadd.f32 %v3942_v54, %v3782_v34  ;;  %v5305_v25 = vpop.f32.mrb[176].mxu1  ;;  %v8053_v57 = vpop.f32.mrb[192].mxu0  ;;  %v4042_v29 = vmax.f32 %v3940_v11, 0.0 }
 0x60e   : > { %v5306_v7 = vpop.f32.mrb[177].mxu1  ;;  %v8055_v15 = vpop.f32.mrb[193].mxu0 }
 0x60f   : > { %v4043_v26 = vmax.f32 %v3943_v41, 0.0  ;;  %v5307_v43 = vadd.f32 %v5306_v7, %v5305_v25  ;;  %v5308_v61 = vpop.f32.mrb[178].mxu1  ;;  %v8057_v35 = vpop.f32.mrb[194].mxu0 }
 0x610   : > { %v5309_v40 = vpop.f32.mrb[179].mxu1  ;;  %v8059_v1 = vpop.f32.mrb[195].mxu0 }
 0x611   : > { %v8061_v50 = vpack.c.bf16 %v4043_v26, %v4042_v29  ;;  %v3787_v56 = vadd.f32 %v5307_v43, %v3349_v38  ;;  %v5310_v53 = vadd.f32 %v5309_v40, %v5308_v61  ;;  %v8078_v41 = vpop.permute.xlu1 %3453  ;;  %v3369_v25 = vpop.permute.xlu0 %3368 }
 0x613   : > { %v3948_v54 = vadd.f32 %v8018_v30, %v3787_v56  ;;  %v3790_v3 = vadd.f32 %v5310_v53, %v3354_v49 }
 0x615   : > { %v3951_v4 = vadd.f32 %v8020_v10, %v3790_v3  ;;  %v5311_v55 = vpop.f32.mrb[180].mxu1  ;;  %v8067_v16 = vpop.f32.mrb[196].mxu0  ;;  %v4044_v6 = vmax.f32 %v3948_v54, 0.0 }
 0x616   : > { %v5312_v52 = vpop.f32.mrb[181].mxu1  ;;  %v8069_v2 = vpop.f32.mrb[197].mxu0 }
 0x617   : > { %v4045_v44 = vmax.f32 %v3951_v4, 0.0  ;;  %v5313_v32 = vadd.f32 %v5312_v52, %v5311_v55  ;;  %v5314_v9 = vpop.f32.mrb[182].mxu1  ;;  %v8071_v38 = vpop.f32.mrb[198].mxu0 }
 0x618   : > { %v5315_v42 = vpop.f32.mrb[183].mxu1  ;;  %v8073_v30 = vpop.f32.mrb[199].mxu0 }
 0x619   : > { %v8075_v49 = vpack.c.bf16 %v4045_v44, %v4044_v6  ;;  %v5316_v47 = vadd.f32 %v5315_v42, %v5314_v9  ;;  %v3795_v11 = vadd.f32 %v5313_v32, %v3359_v39 }
 0x61b   : > { %v3956_v10 = vadd.f32 %v8028_v36, %v3795_v11  ;;  %v3798_v34 = vadd.f32 %v5316_v47, %v3364_v51 }
 0x61d   : > { %v3959_v7 = vadd.f32 %v8032_v59, %v3798_v34  ;;  %v5317_v29 = vpop.f32.mrb[184].mxu1  ;;  %v8081_v26 = vpop.f32.mrb[200].mxu0  ;;  %v4046_v40 = vmax.f32 %v3956_v10, 0.0 }
 0x61e   : > { %v5318_v43 = vpop.f32.mrb[185].mxu1  ;;  %v8083_v61 = vpop.f32.mrb[201].mxu0 }
 0x61f   : > { %v4047_v56 = vmax.f32 %v3959_v7, 0.0  ;;  %v5319_v53 = vadd.f32 %v5318_v43, %v5317_v29  ;;  %v5320_v54 = vpop.f32.mrb[186].mxu1  ;;  %v8085_v3 = vpop.f32.mrb[202].mxu0 }
 0x620   : > { %v5321_v39 = vpop.f32.mrb[187].mxu1  ;;  %v8087_v36 = vpop.f32.mrb[203].mxu0 }
 0x621   : > { %v8089_v51 = vpack.c.bf16 %v4047_v56, %v4046_v40  ;;  %v3803_v4 = vadd.f32 %v5319_v53, %v3369_v25  ;;  %v5322_v55 = vadd.f32 %v5321_v39, %v5320_v54  ;;  %v3374_v59 = vpop.permute.xlu1 %3373 }
 0x623   : > { %v3964_v52 = vadd.f32 %v8026_v31, %v3803_v4  ;;  %v3806_v6 = vadd.f32 %v5322_v55, %v3374_v59 }
 0x625   : > { %v3967_v44 = vadd.f32 %v8030_v45, %v3806_v6  ;;  %v5323_v32 = vpop.f32.mrb[188].mxu1  ;;  %v4048_v42 = vmax.f32 %v3964_v52, 0.0 }
 0x626   : > { %v5324_v9 = vpop.f32.mrb[189].mxu1 }
 0x627   : > { %v4049_v47 = vmax.f32 %v3967_v44, 0.0  ;;  %v5325_v11 = vadd.f32 %v5324_v9, %v5323_v32  ;;  %v5326_v10 = vpop.f32.mrb[190].mxu1 }
 0x628   : > { %v5327_v34 = vpop.f32.mrb[191].mxu1 }
 0x629   : > { %v8093_v7 = vpack.c.bf16 %v4049_v47, %v4048_v42  ;;  %v5328_v29 = vadd.f32 %v5327_v34, %v5326_v10  ;;  %v3811_v43 = vadd.f32 %v5325_v11, %v7985_v19 }
 0x62b   : > { %v3972_v25 = vadd.f32 %v8042_v33, %v3811_v43  ;;  %v3814_v40 = vadd.f32 %v5328_v29, %v7987_v13 }
 0x62d   : > { %v3975_v31 = vadd.f32 %v8046_v22, %v3814_v40  ;;  %v5329_v56 = vpop.f32.mrb[192].mxu1  ;;  %v4050_v53 = vmax.f32 %v3972_v25, 0.0 }
 0x62e   : > { %v5330_v45 = vpop.f32.mrb[193].mxu1 }
 0x62f   : > { %v4051_v54 = vmax.f32 %v3975_v31, 0.0  ;;  %v5331_v39 = vadd.f32 %v5330_v45, %v5329_v56  ;;  %v5332_v4 = vpop.f32.mrb[194].mxu1 }
 0x630   : > { %v5333_v55 = vpop.f32.mrb[195].mxu1 }
 0x631   : > { %v4090_v59 = vpack.c.bf16 %v4051_v54, %v4050_v53  ;;  %v3819_v52 = vadd.f32 %v5331_v39, %v7989_v12  ;;  %v5334_v6 = vadd.f32 %v5333_v55, %v5332_v4 }
 0x633   : > { %v3980_v44 = vadd.f32 %v8040_v63, %v3819_v52  ;;  %v3822_v19 = vadd.f32 %v5334_v6, %v7991_v48  ;;  %5395 = vmatprep.subr.bf16.mxu0 %v4090_v59 }
 0x634   : > { %5396 = vmatpush3.bf16.msra.mxu0 %v8014_v37 }
 0x635   : > { %v3983_v13 = vadd.f32 %v8044_v62, %v3822_v19  ;;  %v5335_v33 = vpop.f32.mrb[196].mxu1  ;;  %v4052_v32 = vmax.f32 %v3980_v44, 0.0 }
 0x636   : > { %v5336_v22 = vpop.f32.mrb[197].mxu1 }
 0x637   : > { %v4053_v9 = vmax.f32 %v3983_v13, 0.0  ;;  %v5337_v42 = vadd.f32 %v5336_v22, %v5335_v33  ;;  %v5338_v47 = vpop.f32.mrb[198].mxu1 }
 0x638   : > { %v5339_v11 = vpop.f32.mrb[199].mxu1 }
 0x639   : > { %v5340_v10 = vadd.f32 %v5339_v11, %v5338_v47  ;;  %v3827_v12 = vadd.f32 %v5337_v42, %v7993_v18  ;;  %v4091_v34 = vpack.c.bf16 %v4053_v9, %v4052_v32 }
 0x63b   : > { %v3988_v63 = vadd.f32 %v8055_v15, %v3827_v12  ;;  %5397 = vmatprep.subr.bf16.mxu0 %v4091_v34  ;;  %v3830_v48 = vadd.f32 %v5340_v10, %v7995_v21 }
 0x63c   : > { %5398 = vmatpush3.bf16.msra.mxu0 %v8022_v27 }
 0x63d   : > { %v3991_v37 = vadd.f32 %v8059_v1, %v3830_v48  ;;  %v5341_v62 = vpop.f32.mrb[200].mxu1  ;;  %v4054_v43 = vmax.f32 %v3988_v63, 0.0 }
 0x63e   : > { %v5342_v29 = vpop.f32.mrb[201].mxu1 }
 0x63f   : > { %v4055_v25 = vmax.f32 %v3991_v37, 0.0  ;;  %v5343_v40 = vadd.f32 %v5342_v29, %v5341_v62  ;;  %v5344_v31 = vpop.f32.mrb[202].mxu1 }
 0x640   : > { %v5345_v56 = vpop.f32.mrb[203].mxu1 }
 0x641   : > { %v4092_v45 = vpack.c.bf16 %v4055_v25, %v4054_v43  ;;  %v3835_v18 = vadd.f32 %v5343_v40, %v7997_v46  ;;  %v5346_v53 = vadd.f32 %v5345_v56, %v5344_v31 }
 0x643   : > { %v3996_v15 = vadd.f32 %v8053_v57, %v3835_v18  ;;  %v3838_v54 = vadd.f32 %v5346_v53, %v7999_v60  ;;  %5399 = vmatprep.subr.bf16.mxu0 %v4092_v45 }
 0x644   : > { %5400 = vmatpush3.bf16.msra.mxu0 %v8034_v24 }
 0x645   : > { %v3999_v21 = vadd.f32 %v8057_v35, %v3838_v54  ;;  %v5347_v27 = vpop.f32.mrb[204].mxu1  ;;  %v4056_v39 = vmax.f32 %v3996_v15, 0.0  ;;  %v5859_v54 = vld [vmem:[%s8258_s9] ss:$8 sps:$4 sm:$0xff]  }
 0x646   : > { %v5348_v1 = vpop.f32.mrb[205].mxu1 }
 0x647   : > { %v4057_v4 = vmax.f32 %v3999_v21, 0.0  ;;  %v5349_v55 = vadd.f32 %v5348_v1, %v5347_v27  ;;  %v5350_v59 = vpop.f32.mrb[206].mxu1  ;;  %v5871_v21 = vld [vmem:[%s8258_s9 + $0x44] ss:$8 sps:$4 sm:$0xff]   ;;  %v5873_v27 = vld [vmem:[%s8258_s9 + $0x40] ss:$8 sps:$4 sm:$0xff]  }
 0x648   : > { %v5351_v52 = vpop.f32.mrb[207].mxu1  ;;  %v5874_v1 = vld [vmem:[%s8258_s9 + $0x54] ss:$8 sps:$4 sm:$0xff]  }
 0x649   : > { %v5352_v6 = vadd.f32 %v5351_v52, %v5350_v59  ;;  %v3843_v46 = vadd.f32 %v5349_v55, %v8005_v5  ;;  %v4093_v44 = vpack.c.bf16 %v4057_v4, %v4056_v39  ;;  %v5876_v39 = vld [vmem:[%s8258_s9 + $0x50] ss:$8 sps:$4 sm:$0xff]   ;;  %v5877_v4 = vld [vmem:[%s8258_s9 + $0x64] ss:$8 sps:$4 sm:$0xff]   ;;  %v5879_v55 = vld [vmem:[%s8258_s9 + $0x60] ss:$8 sps:$4 sm:$0xff]  }
 0x64a   : > { %v5880_v59 = vld [vmem:[%s8258_s9 + $0x74] ss:$8 sps:$4 sm:$0xff]   ;;  %v5882_v52 = vld [vmem:[%s8258_s9 + $0x70] ss:$8 sps:$4 sm:$0xff]  }
 0x64b   : > { %v4004_v57 = vadd.f32 %v8069_v2, %v3843_v46  ;;  %5401 = vmatprep.subr.bf16.mxu0 %v4093_v44  ;;  %v3846_v60 = vadd.f32 %v5352_v6, %v8007_v58  ;;  %v5883_v6 = vld [vmem:[%s8260_s11] sm:$0xff]  }
 0x64c   : > { %5402 = vmatpush3.bf16.msra.mxu0 %v8048_v17  ;;  %5568 = vmatprep.mubr.bf16.mxu1 %v5883_v6 }
 0x64d   : > { %v4007_v24 = vadd.f32 %v8073_v30, %v3846_v60  ;;  %v5353_v35 = vpop.f32.mrb[208].mxu1  ;;  %v4058_v13 = vmax.f32 %v4004_v57, 0.0 }
 0x64e   : > { %v5354_v19 = vpop.f32.mrb[209].mxu1 }
 0x64f   : > { %v4059_v33 = vmax.f32 %v4007_v24, 0.0  ;;  %v5355_v22 = vadd.f32 %v5354_v19, %v5353_v35  ;;  %v5356_v32 = vpop.f32.mrb[210].mxu1  ;;  %v4117_v24 = vpop.permute.xlu0 %4116 }
 0x650   : > { %v5357_v9 = vpop.f32.mrb[211].mxu1 }
 0x651   : > { %v4094_v42 = vpack.c.bf16 %v4059_v33, %v4058_v13  ;;  %v3851_v5 = vadd.f32 %v5355_v22, %v8016_v14  ;;  %v5358_v47 = vadd.f32 %v5357_v9, %v5356_v32  ;;  %v4122_v33 = vpop.permute.xlu1 %4121 }
 0x653   : > { %v4012_v2 = vadd.f32 %v8067_v16, %v3851_v5  ;;  %v3854_v11 = vadd.f32 %v5358_v47, %v8024_v23  ;;  %5403 = vmatprep.subr.bf16.mxu0 %v4094_v42 }
 0x654   : > { %5404 = vmatpush3.bf16.msra.mxu0 %v8061_v50 }
 0x655   : > { %v4015_v58 = vadd.f32 %v8071_v38, %v3854_v11  ;;  %v5359_v17 = vpop.f32.mrb[212].mxu1  ;;  %v4060_v10 = vmax.f32 %v4012_v2, 0.0 }
 0x656   : > { %v5360_v30 = vpop.f32.mrb[213].mxu1 }
 0x657   : > { %v4061_v12 = vmax.f32 %v4015_v58, 0.0  ;;  %v5361_v34 = vadd.f32 %v5360_v30, %v5359_v17  ;;  %v5362_v63 = vpop.f32.mrb[214].mxu1  ;;  %v4127_v58 = vpop.permute.xlu0 %4126 }
 0x658   : > { %v5363_v48 = vpop.f32.mrb[215].mxu1 }
 0x659   : > { %v5364_v37 = vadd.f32 %v5363_v48, %v5362_v63  ;;  %v3859_v14 = vadd.f32 %v5361_v34, %v8038_v28  ;;  %v4095_v62 = vpack.c.bf16 %v4061_v12, %v4060_v10  ;;  %v4132_v12 = vpop.permute.xlu1 %4131 }
 0x65b   : > { %v4020_v16 = vadd.f32 %v8083_v61, %v3859_v14  ;;  %5405 = vmatprep.subr.bf16.mxu0 %v4095_v62  ;;  %v3862_v23 = vadd.f32 %v5364_v37, %v8051_v20 }
 0x65c   : > { %5406 = vmatpush3.bf16.msra.mxu0 %v8075_v49 }
 0x65d   : > { %v4023_v50 = vadd.f32 %v8087_v36, %v3862_v23  ;;  %v5365_v38 = vpop.f32.mrb[216].mxu1  ;;  %v4062_v43 = vmax.f32 %v4020_v16, 0.0 }
 0x65e   : > { %v5366_v29 = vpop.f32.mrb[217].mxu1 }
 0x65f   : > { %v4063_v25 = vmax.f32 %v4023_v50, 0.0  ;;  %v5367_v40 = vadd.f32 %v5366_v29, %v5365_v38  ;;  %v5368_v31 = vpop.f32.mrb[218].mxu1  ;;  %v4137_v50 = vpop.permute.xlu0 %4136 }
 0x660   : > { %v5369_v56 = vpop.f32.mrb[219].mxu1 }
 0x661   : > { %v4096_v45 = vpack.c.bf16 %v4063_v25, %v4062_v43  ;;  %v3867_v28 = vadd.f32 %v5367_v40, %v8064_v8  ;;  %v5370_v18 = vadd.f32 %v5369_v56, %v5368_v31  ;;  %v5862_v8 = vld [vmem:[%s8258_s9 + $0x14] ss:$8 sps:$4 sm:$0xff]   ;;  %v4142_v25 = vpop.permute.xlu1 %4141 }
 0x663   : > { %v4028_v61 = vadd.f32 %v8081_v26, %v3867_v28  ;;  %v3870_v53 = vadd.f32 %v5370_v18, %v8078_v41  ;;  %5407 = vmatprep.subr.bf16.mxu0 %v4096_v45  ;;  %v5864_v41 = vld [vmem:[%s8258_s9 + $0x10] ss:$8 sps:$4 sm:$0xff]   ;;  %v5865_v26 = vld [vmem:[%s8258_s9 + $0x24] ss:$8 sps:$4 sm:$0xff]  }
 0x664   : > { %5408 = vmatpush3.bf16.msra.mxu0 %v8089_v51  ;;  %v5868_v51 = vld [vmem:[%s8258_s9 + $0x34] ss:$8 sps:$4 sm:$0xff]  }
 0x665   : > { %v4031_v20 = vadd.f32 %v8085_v3, %v3870_v53  ;;  %v4064_v49 = vmax.f32 %v4028_v61, 0.0  ;;  %v5867_v3 = vld [vmem:[%s8258_s9 + $0x20] ss:$8 sps:$4 sm:$0xff]  }
 0x667   : > { %v4065_v36 = vmax.f32 %v4031_v20, 0.0  ;;  %v4147_v20 = vpop.permute.xlu0 %4146 }
 0x669   : > { %v4097_v15 = vpack.c.bf16 %v4065_v36, %v4064_v49 }
 0x66b   : > { %5409 = vmatprep.subr.bf16.mxu0 %v4097_v15 }
 0x66c   : > { %5410 = vmatpush3.bf16.msra.mxu0 %v8093_v7  ;;  %v5870_v7 = vld [vmem:[%s8258_s9 + $0x30] ss:$8 sps:$4 sm:$0xff]  }
 0x66f   : > { %4307 = vmatmul.mubr.bf16.vlgmr.msra.gmra.mrb[204].mxu0 %v5859_v54  ;;  %v4152_v54 = vpop.permute.xlu1 %4151 }
 0x670   : > { %4314 = vmatprep.mubr.bf16.mxu0 %v5862_v8 }
 0x677   : > { %4315 = vmatmul.mubr.bf16.gmra.mrb[208].mxu0 %v5864_v41 }
 0x678   : > { %4322 = vmatprep.mubr.bf16.mxu0 %v5865_v26 }
 0x67f   : > { %4323 = vmatmul.mubr.bf16.gmra.mrb[212].mxu0 %v5867_v3 }
 0x680   : > { %4330 = vmatprep.mubr.bf16.mxu0 %v5868_v51 }
 0x687   : > { %4331 = vmatmul.mubr.bf16.gmra.mrb[216].mxu0 %v5870_v7 }
 0x688   : > { %4338 = vmatprep.mubr.bf16.mxu0 %v5871_v21 }
 0x68f   : > { %4339 = vmatmul.mubr.bf16.gmra.mrb[220].mxu0 %v5873_v27 }
 0x690   : > { %4346 = vmatprep.mubr.bf16.mxu0 %v5874_v1  ;;  %v4157_v1 = vpop.permute.xlu0 %4156 }
 0x697   : > { %4347 = vmatmul.mubr.bf16.gmra.mrb[224].mxu0 %v5876_v39 }
 0x698   : > { %4354 = vmatprep.mubr.bf16.mxu0 %v5877_v4 }
 0x69f   : > { %4355 = vmatmul.mubr.bf16.gmra.mrb[228].mxu0 %v5879_v55 }
 0x6a0   : > { %4362 = vmatprep.mubr.bf16.mxu0 %v5880_v59  ;;  %v4162_v59 = vpop.permute.xlu1 %4161 }
 0x6a7   : > { %4363 = vmatmul.mubr.bf16.gmra.mrb[232].mxu0 %v5882_v52 }
 0x742   : > { %v5411_v46 = vpop.f32.mrb[204].mxu0 }
 0x743   : > { %v5412_v44 = vpop.f32.mrb[205].mxu0 }
 0x744   : > { %v5413_v57 = vadd.f32 %v5412_v44, %v5411_v46  ;;  %v5414_v60 = vpop.f32.mrb[206].mxu0 }
 0x745   : > { %v5415_v35 = vpop.f32.mrb[207].mxu0 }
 0x746   : > { %v4309_v19 = vadd.f32 %v5413_v57, %v4117_v24  ;;  %v5416_v13 = vadd.f32 %v5415_v35, %v5414_v60 }
 0x748   : > { %v4312_v22 = vadd.f32 %v5416_v13, %v4122_v33  ;;  %v4371_v32 = vmax.f32 %v4309_v19, 0.0  ;;  %v4167_v19 = vpop.permute.xlu0 %4166 }
 0x74a   : > { %v4372_v9 = vmax.f32 %v4312_v22, 0.0  ;;  %v5417_v42 = vpop.f32.mrb[208].mxu0 }
 0x74b   : > { %v5418_v5 = vpop.f32.mrb[209].mxu0 }
 0x74c   : > { %v5419_v47 = vadd.f32 %v5418_v5, %v5417_v42  ;;  %v5420_v2 = vpop.f32.mrb[210].mxu0  ;;  %v4395_v11 = vpack.c.bf16 %v4372_v9, %v4371_v32  ;;  %v4172_v32 = vpop.permute.xlu1 %4171 }
 0x74d   : > { %v5421_v17 = vpop.f32.mrb[211].mxu0 }
 0x74e   : > { %v4317_v30 = vadd.f32 %v5419_v47, %v4127_v58  ;;  %v5422_v10 = vadd.f32 %v5421_v17, %v5420_v2  ;;  %5552 = vmatprep.subr.bf16.mxu1 %v4395_v11 }
 0x74f   : > { %5553 = vmatpush3.bf16.msra.mxu1 %v4395_v11 }
 0x750   : > { %v4320_v34 = vadd.f32 %v5422_v10, %v4132_v12  ;;  %v4373_v63 = vmax.f32 %v4317_v30, 0.0  ;;  %v4177_v30 = vpop.permute.xlu0 %4176 }
 0x752   : > { %v4374_v48 = vmax.f32 %v4320_v34, 0.0  ;;  %v5423_v37 = vpop.f32.mrb[212].mxu0 }
 0x753   : > { %v5424_v14 = vpop.f32.mrb[213].mxu0 }
 0x754   : > { %v5425_v62 = vadd.f32 %v5424_v14, %v5423_v37  ;;  %v5426_v16 = vpop.f32.mrb[214].mxu0  ;;  %v4396_v23 = vpack.c.bf16 %v4374_v48, %v4373_v63  ;;  %v4182_v63 = vpop.permute.xlu1 %4181 }
 0x755   : > { %v5427_v38 = vpop.f32.mrb[215].mxu0 }
 0x756   : > { %v4325_v29 = vadd.f32 %v5425_v62, %v4137_v50  ;;  %v5428_v43 = vadd.f32 %v5427_v38, %v5426_v16  ;;  %5554 = vmatprep.subr.bf16.mxu1 %v4396_v23 }
 0x757   : > { %5555 = vmatpush3.bf16.msra.mxu1 %v4396_v23 }
 0x758   : > { %v4328_v40 = vadd.f32 %v5428_v43, %v4142_v25  ;;  %v4375_v31 = vmax.f32 %v4325_v29, 0.0  ;;  %v4187_v29 = vpop.permute.xlu0 %4186 }
 0x75a   : > { %v4376_v56 = vmax.f32 %v4328_v40, 0.0  ;;  %v5429_v45 = vpop.f32.mrb[216].mxu0 }
 0x75b   : > { %v5430_v28 = vpop.f32.mrb[217].mxu0 }
 0x75c   : > { %v5431_v18 = vadd.f32 %v5430_v28, %v5429_v45  ;;  %v5432_v61 = vpop.f32.mrb[218].mxu0  ;;  %v4397_v53 = vpack.c.bf16 %v4376_v56, %v4375_v31  ;;  %v4192_v31 = vpop.permute.xlu1 %4191 }
 0x75d   : > { %v5433_v49 = vpop.f32.mrb[219].mxu0 }
 0x75e   : > { %v4333_v36 = vadd.f32 %v5431_v18, %v4147_v20  ;;  %v5434_v15 = vadd.f32 %v5433_v49, %v5432_v61  ;;  %5556 = vmatprep.subr.bf16.mxu1 %v4397_v53  ;;  %v5884_v61 = vld [vmem:[%s8260_s11 + $0x8] sm:$0xff]   ;;  %v8339_v20 = vmov 0.0   ;;  %v5886_v49 = vld [vmem:[%s8260_s11 + $0x18] sm:$0xff]  }
 0x75f   : > { %5557 = vmatpush3.bf16.msra.mxu1 %v4397_v53  ;;  %v5885_v53 = vld [vmem:[%s8260_s11 + $0x10] sm:$0xff]  }
 0x760   : > { %v4336_v8 = vadd.f32 %v5434_v15, %v4152_v54  ;;  %v4377_v41 = vmax.f32 %v4333_v36, 0.0  ;;  %v4414_v36 = vpop.permute.xlu0 %4413  ;;  %v4419_v15 = vpop.permute.xlu1 %4418 }
 0x762   : > { %v4378_v26 = vmax.f32 %v4336_v8, 0.0  ;;  %v5435_v3 = vpop.f32.mrb[220].mxu0 }
 0x763   : > { %v5436_v51 = vpop.f32.mrb[221].mxu0 }
 0x764   : > { %v5437_v7 = vadd.f32 %v5436_v51, %v5435_v3  ;;  %v5438_v21 = vpop.f32.mrb[222].mxu0  ;;  %v4398_v27 = vpack.c.bf16 %v4378_v26, %v4377_v41  ;;  %v4424_v54 = vpop.permute.xlu0 %4423 }
 0x765   : > { %v5439_v39 = vpop.f32.mrb[223].mxu0  ;;  %v4429_v8 = vpop.permute.xlu1 %4428 }
 0x766   : > { %v4341_v4 = vadd.f32 %v5437_v7, %v4157_v1  ;;  %v5440_v55 = vadd.f32 %v5439_v39, %v5438_v21  ;;  %5558 = vmatprep.subr.bf16.mxu1 %v4398_v27 }
 0x767   : > { %5559 = vmatpush3.bf16.msra.mxu1 %v4398_v27 }
 0x768   : > { %v4344_v52 = vadd.f32 %v5440_v55, %v4162_v59  ;;  %v4379_v6 = vmax.f32 %v4341_v4, 0.0  ;;  %v4434_v51 = vpop.permute.xlu0 %4433 }
 0x769   : > { %v4439_v39 = vpop.permute.xlu1 %4438 }
 0x76a   : > { %v4380_v46 = vmax.f32 %v4344_v52, 0.0  ;;  %v5441_v44 = vpop.f32.mrb[224].mxu0 }
 0x76b   : > { %v5442_v57 = vpop.f32.mrb[225].mxu0 }
 0x76c   : > { %v5443_v60 = vadd.f32 %v5442_v57, %v5441_v44  ;;  %v5444_v24 = vpop.f32.mrb[226].mxu0  ;;  %v4399_v35 = vpack.c.bf16 %v4380_v46, %v4379_v6  ;;  %v4444_v44 = vpop.permute.xlu0 %4443 }
 0x76d   : > { %v5445_v13 = vpop.f32.mrb[227].mxu0 }
 0x76e   : > { %v4349_v33 = vadd.f32 %v5443_v60, %v4167_v19  ;;  %v5446_v22 = vadd.f32 %v5445_v13, %v5444_v24  ;;  %5560 = vmatprep.subr.bf16.mxu1 %v4399_v35  ;;  %v4449_v19 = vpop.permute.xlu1 %4448 }
 0x76f   : > { %5561 = vmatpush3.bf16.msra.mxu1 %v4399_v35 }
 0x770   : > { %v4352_v9 = vadd.f32 %v5446_v22, %v4172_v32  ;;  %v4381_v42 = vmax.f32 %v4349_v33, 0.0 }
 0x772   : > { %v4382_v5 = vmax.f32 %v4352_v9, 0.0  ;;  %v5447_v47 = vpop.f32.mrb[228].mxu0 }
 0x773   : > { %v5448_v2 = vpop.f32.mrb[229].mxu0 }
 0x774   : > { %v5449_v11 = vadd.f32 %v5448_v2, %v5447_v47  ;;  %v5450_v58 = vpop.f32.mrb[230].mxu0  ;;  %v4400_v17 = vpack.c.bf16 %v4382_v5, %v4381_v42 }
 0x775   : > { %v5451_v10 = vpop.f32.mrb[231].mxu0 }
 0x776   : > { %v4357_v12 = vadd.f32 %v5449_v11, %v4177_v30  ;;  %v5452_v34 = vadd.f32 %v5451_v10, %v5450_v58  ;;  %5562 = vmatprep.subr.bf16.mxu1 %v4400_v17  ;;  %v4557_v30 = vpop.permute.xlu0 %4556 }
 0x777   : > { %5563 = vmatpush3.bf16.msra.mxu1 %v4400_v17  ;;  %v4548_v17 = vld [vmem:[%s8262_s13] sm:$0x1]  ;;  %v4562_v10 = vrot.slane %v4557_v30, %v8336_v0 }
 0x778   : > { %v4360_v48 = vadd.f32 %v5452_v34, %v4182_v63  ;;  %v4383_v37 = vmax.f32 %v4357_v12, 0.0 }
 0x77a   : > { %v4384_v14 = vmax.f32 %v4360_v48, 0.0  ;;  %v5453_v62 = vpop.f32.mrb[232].mxu0 }
 0x77b   : > { %v5454_v16 = vpop.f32.mrb[233].mxu0 }
 0x77c   : > { %v5455_v23 = vadd.f32 %v5454_v16, %v5453_v62  ;;  %v5456_v50 = vpop.f32.mrb[234].mxu0  ;;  %v4401_v38 = vpack.c.bf16 %v4384_v14, %v4383_v37 }
 0x77d   : > { %v5457_v43 = vpop.f32.mrb[235].mxu0 }
 0x77e   : > { %v4365_v25 = vadd.f32 %v5455_v23, %v4187_v29  ;;  %v5458_v40 = vadd.f32 %v5457_v43, %v5456_v50  ;;  %5564 = vmatprep.subr.bf16.mxu1 %v4401_v38 }
 0x77f   : > { %5565 = vmatpush3.bf16.msra.mxu1 %v4401_v38 }
 0x780   : > { %v4368_v56 = vadd.f32 %v5458_v40, %v4192_v31  ;;  %v4385_v45 = vmax.f32 %v4365_v25, 0.0 }
 0x782   : > { %v4386_v28 = vmax.f32 %v4368_v56, 0.0 }
 0x784   : > { %v4402_v18 = vpack.c.bf16 %v4386_v28, %v4385_v45 }
 0x786   : > { %5566 = vmatprep.subr.bf16.mxu1 %v4402_v18 }
 0x787   : > { %5567 = vmatpush3.bf16.msra.mxu1 %v4402_v18 }
 0x788   : > { %5576 = vmatprep.subr.bf16.mxu1 %v8339_v20 }
 0x78a   : > { %5569 = vmatmul.mubr.bf16.vlgmr.msra.gmra.mrb[220].mxu1 %v5884_v61 }
 0x78b   : > { %5572 = vmatprep.mubr.bf16.mxu1 %v5885_v53 }
 0x792   : > { %5573 = vmatmul.mubr.bf16.gmra.mrb[224].mxu1 %v5886_v49 }
 0x793   : > { %5584 = vmatprep.mubr.msk.bf16.mxu1 %vm5958_vm2, %v8339_v20 }
 0x85d   : > { %v5570_v41 = vpop.f32.mrb[220].mxu1 }
 0x85e   : > { %v4518_v26 = vadd.f32 %v5570_v41, %v4424_v54  ;;  %v4509_v3 = vpop.f32.mrb[221].mxu1 }
 0x85f   : > { %v4510_v7 = vadd.f32 %v4509_v3, %v4414_v36  ;;  %v5571_v21 = vpop.f32.mrb[222].mxu1 }
 0x860   : > { %v4521_v27 = vadd.f32 %v5571_v21, %v4429_v8  ;;  %v4512_v1 = vpop.f32.mrb[223].mxu1  ;;  %v4542_v55 = vmax.f32 %v4518_v26, 0.0 }
 0x861   : > { %v4513_v4 = vadd.f32 %v4512_v1, %v4419_v15  ;;  %v4540_v52 = vmax.f32 %v4510_v7, 0.0 }
 0x862   : > { %v4543_v59 = vmax.f32 %v4521_v27, 0.0 }
 0x863   : > { %v4541_v6 = vmax.f32 %v4513_v4, 0.0 }
 0x864   : > { %v4550_v46 = vpack.c.bf16 %v4543_v59, %v4542_v55 }
 0x865   : > { %v4549_v57 = vpack.c.bf16 %v4541_v6, %v4540_v52  ;;  %v5574_v60 = vpop.f32.mrb[224].mxu1 }
 0x866   : > { %v4534_v24 = vadd.f32 %v5574_v60, %v4444_v44  ;;  %v4525_v35 = vpop.f32.mrb[225].mxu1 }
 0x867   : > { %v4526_v13 = vadd.f32 %v4525_v35, %v4434_v51  ;;  %v5575_v33 = vpop.f32.mrb[226].mxu1  ;;  %5577 = vmatpush3.bf16.msra.mxu1 %v4549_v57 }
 0x868   : > { %v4537_v22 = vadd.f32 %v5575_v33, %v4449_v19  ;;  %v4528_v32 = vpop.f32.mrb[227].mxu1  ;;  %5578 = vmatprep.subr.bf16.mxu1 %v8339_v20  ;;  %v4546_v42 = vmax.f32 %v4534_v24, 0.0 }
 0x869   : > { %v4529_v9 = vadd.f32 %v4528_v32, %v4439_v39  ;;  %v4544_v47 = vmax.f32 %v4526_v13, 0.0 }
 0x86a   : > { %v4547_v5 = vmax.f32 %v4537_v22, 0.0 }
 0x86b   : > { %v4545_v2 = vmax.f32 %v4529_v9, 0.0  ;;  %5579 = vmatpush3.bf16.msra.mxu1 %v4550_v46 }
 0x86c   : > { %v4552_v11 = vpack.c.bf16 %v4547_v5, %v4546_v42  ;;  %5580 = vmatprep.subr.bf16.mxu1 %v8339_v20 }
 0x86d   : > { %v4551_v58 = vpack.c.bf16 %v4545_v2, %v4544_v47 }
 0x86f   : > { %5581 = vmatpush3.bf16.msra.mxu1 %v4551_v58 }
 0x870   : > { %5582 = vmatprep.subr.bf16.mxu1 %v8339_v20 }
 0x873   : > { %5583 = vmatpush3.bf16.msra.mxu1 %v4552_v11 }
 0x876   : > { %5585 = vmatmul.mubr.msk.bf16.vlgmr.msra.gmra.mrb[228].mxu1 %vm3076_vm1, %v4548_v17 }
 0x949   : > { %v4600_v12 = vpop.f32.mrb[228].mxu1 }
 0x94a   : > { %v4601_v34 = vadd.f32 %v4600_v12, %v4562_v10  ;;  %v5586_v63 = vpop.f32.mrb[229].mxu1 }
 0x94b   : > { %v4603_v48 = vpop.f32.mrb[230].mxu1 }
 0x94c   : > { %v4606_v37 = vsub.f32 0.0, %v4601_v34  ;;  %v5587_v14 = vpop.f32.mrb[231].mxu1 }
 0x94e   : > { %v4607_v62 = vmul.f32 1.442695, %v4606_v37 }
 0x950   : > { %5887 = vpow2.f32 %v4607_v62 }
 0x95a   : > { %v5888_v16 = vpop.eup %5887 }
 0x95b   : > { %v4609_v23 = vadd.f32 1.0, %v5888_v16 }
 0x95d   : > { %5889 = vrcp.f32 %v4609_v23 }
 0x967   : > { %v5890_v0 = vpop.eup %5889 }
 0x968   : > { %4613 = vst.msk [vmem:[%s488_s24] sm:$0x1] %vm4612_vm3, %v5890_v0 }
 0x969   : > { %5904 = shalt.err (!%p5901_p3)
}
 0x96a   : > { %s5905_s30 = scalar_lea.hbm %s8207_s0, 16  ;;  %s5909_s24 = scalar_lea.hbm %s8264_s15, 48 }
 0x96b   : > { %p5906_p4 = scmp.ne.s32.totalorder %s8207_s0, %s5905_s30  ;;  %p5910_p9 = scmp.lt.u32.totalorder %s8207_s0, %s8264_s15 }
 0x96c   : > { %p5911_p10 = scmp.lt.u32.totalorder %s5909_s24, %s5905_s30  ;;  %p5913_p12 = scmp.lt.u32.totalorder %s5905_s30, %s8207_s0 }
 0x96d   : > { %p5907_p7 = pnand %p5906_p4, %p6081_p5 }
 0x96e   : > { %p5912_p11 = por %p5911_p10, %p5910_p9 }
 0x96f   : > { %p5908_p8 = pneg %p5907_p7 }
 0x970   : > { %p5914_p13 = por %p5913_p12, %p5912_p11 }
 0x972   : > { %p5915_p0 = pnand %p5914_p13, %p5908_p8 }
 0x974   : > { %5918 = shalt.err (!%p5915_p0)
}
 0x975   : > { %5591 = dma.vmem_to_hbm [thread:$0]  (%p6081_p5), %s8209_s16, 16, %s8207_s0, %s4615_s28  }
 0x976 PF: > { %p5597_p1 = scmp.ge.s32.totalorder %s5953_s23, 2  ;;  %s4639_s14 = sand.u32 1, %s5941_s20  }
 0x977   : > { %s4640_s22 = scalar_lea.sflag [#allocation4], %s4639_s14 }
 0x978   : > { %p5594_p2 = pnand %p5597_p1, %p6085_p6 }
 0x97a   : > { %5936 = dma.done.wait (!%p5594_p2), %s4640_s22, 16  }
 0x97b   : > { %5938 = vsyncadd (!%p5594_p2), %s4640_s22, 4294967280  ;;  %s8341_s23 = sld [smem:[#allocation7_spill]]  ;;  %s8342_s25 = sld [smem:[#allocation6_spill]] }
 0x97c   : > { %s8343_s22 = sld [smem:[#allocation8_spill]]  ;;  %s8344_s20 = smov %s5945_s21 }
 0x981   : > { %p27_p3 = scmp.ge.s32.totalorder %s8341_s23, 5   ;;  %s8345_s21 = smov %s8342_s25 }
 0x983   :  { %29 = sbr.rel (!%p27_p3) target bundleno = 6 (0x6), region = 115 }
 0x98a   :  { %4644 = vsyncpa [#allocation4], 1 }
 0x98b   :  { %4646 = vsyncpa [#allocation4 + $0x1], 1 }

</bundles_post_ra>
